<compile_context>
chip_gen: v5e
topology: v5e:2x2
jax: 0.10.0
libtpu: 0.0.40
codegen_flags: <defaults>
</compile_context>

<pallas_src>
import functools

import jax
import jax.numpy as jnp
import numpy as np
from jax.experimental import pallas as pl
from jax.experimental.pallas import tpu as pltpu


# ---------------------------------------------------------------------------
# align_corners=True bilinear-x2 coordinate helpers (match PyTorch).
# ---------------------------------------------------------------------------
def _interp_coords(n_in, n_out):
    if n_out == 1 or n_in == 1:
        z = np.zeros((n_out,), np.int32)
        return z, z, np.zeros((n_out,), np.float32)
    scale = np.float32((n_in - 1) / (n_out - 1))
    c = np.arange(n_out, dtype=np.float32) * scale
    i0 = np.clip(np.floor(c).astype(np.int32), 0, n_in - 1)
    i1 = np.clip(i0 + 1, 0, n_in - 1)
    f = (c - i0.astype(np.float32)).astype(np.float32)
    return i0, i1, f


def _w_interp_im2col_matrix(W, Wo):
    """(W, Wo, 3): W-axis bilinear x2 interp with the conv's W zero-padding and
    its three dx taps folded in (im2col along W)."""
    i0, i1, f = _interp_coords(W, Wo)
    m = np.zeros((Wo + 2, W), np.float32)          # rows 0 / Wo+1 stay zero = conv pad
    r = np.arange(Wo)
    np.add.at(m, (r + 1, i0), 1.0 - f)
    np.add.at(m, (r + 1, i1), f)
    a = np.zeros((W, Wo, 3), np.float32)
    for dx in range(3):
        a[:, :, dx] = m[dx:dx + Wo, :].T
    return a


def _h_row_tables(H, Ho, Wo):
    """Per padded-output-row source pixel offsets / lerp weights.
    Rows 0 and Ho+1 are the conv's zero-pad rows (weights 0)."""
    i0, i1, f = _interp_coords(H, Ho)
    off0 = np.zeros((Ho + 2,), np.int32)
    off1 = np.zeros((Ho + 2,), np.int32)
    w0 = np.zeros((Ho + 2,), np.float32)
    w1 = np.zeros((Ho + 2,), np.float32)
    off0[1:Ho + 1] = i0.astype(np.int32) * Wo
    off1[1:Ho + 1] = i1.astype(np.int32) * Wo
    w0[1:Ho + 1] = 1.0 - f
    w1[1:Ho + 1] = f
    return off0, off1, w0, w1


# ---------------------------------------------------------------------------
# Pallas kernel: per (batch n, output-row tile t)
#   1) H-axis bilinear interp (+ conv H zero-pad) as 2-tap per-row lerp (VPU)
#   2) 3x3 conv as 3 MXU matmuls (dy taps), dx taps already folded into K
# ---------------------------------------------------------------------------
def _upconv_kernel(off0_ref, off1_ref, w0_ref, w1_ref,   # SMEM (Ho+2,)
                   xw_ref,                               # (1, H*Wo, K) VMEM
                   wk_ref,                               # (3, K, Cout) VMEM
                   b_ref,                                 # (1, Cout) VMEM f32
                   o_ref,                                 # (1, TH*Wo, Cout)
                   up_ref,                                # ((TH+2)*Wo, K) f32 scratch
                   *, th, wo):
    t = pl.program_id(1)
    row0 = pl.multiple_of(t * th, th)                     # first output row of this tile

    # 1) H-axis bilinear interp (+ the conv's zero-pad rows): a 2-tap lerp per
    #    padded output row, written straight into the pixel-major scratch.
    #    Pure VPU work (2 MACs/element) instead of a dense (TH, H) matmul.
    for p in range(th + 2):
        src = row0 + p                                    # padded output-row index
        s0 = off0_ref[src]
        s1 = off1_ref[src]
        if wo % 8 == 0:
            s0 = pl.multiple_of(s0, 8)
            s1 = pl.multiple_of(s1, 8)
        r0 = xw_ref[0, pl.ds(s0, wo), :].astype(jnp.float32)
        r1 = xw_ref[0, pl.ds(s1, wo), :].astype(jnp.float32)
        up_ref[pl.ds(p * wo, wo), :] = w0_ref[src] * r0 + w1_ref[src] * r1

    # 2) 3x3 conv: dx taps + W padding are folded into K = 3*Cin by the
    #    pre-pass, so each dy tap is one contiguous pixel-major window and one
    #    MXU matmul with M = TH*Wo.  Accumulator is seeded by the first dot.
    acc = None
    for dy in range(3):
        patch = up_ref[pl.ds(dy * wo, th * wo), :].astype(wk_ref.dtype)
        d = jnp.dot(patch, wk_ref[dy], preferred_element_type=jnp.float32)
        acc = d if acc is None else acc + d

    o_ref[0] = (acc + b_ref[...]).astype(o_ref.dtype)


# ---------------------------------------------------------------------------
# Tile / VMEM planning (generation aware: v5e/v6e 128 MiB, v7x 64 MiB).
# ---------------------------------------------------------------------------
def _plan_tiles(N, H, W, Cin, Cout, compute_dtype, out_dtype):
    Ho, Wo = 2 * H, 2 * W
    K = 3 * Cin
    cbytes = jnp.dtype(compute_dtype).itemsize
    obytes = jnp.dtype(out_dtype).itemsize
    lanes = lambda n: -(-n // 128) * 128                  # layout padding of minor dim

    try:
        info = pltpu.get_tpu_info()
        vmem_cap = int(getattr(info, "vmem_capacity_bytes", 64 * 2**20))
    except Exception:
        vmem_cap = 64 * 2**20
    # ~75% of physical VMEM as the scoped limit (v5e/v6e ~96 MiB, v7x ~48 MiB).
    vmem_limit = int(min(vmem_cap * 3 // 4, 100 * 2**20))
    budget = int(vmem_limit * 0.55)

    fixed = 2 * H * Wo * lanes(K) * cbytes                # xw block, double-buffered
    fixed += 2 * 3 * K * lanes(Cout) * cbytes             # conv weights
    per_row = (2 * Wo * lanes(Cout) * obytes              # output block, double-buffered
               + Wo * lanes(K) * 4                        # f32 H-interp scratch
               + Wo * lanes(K) * cbytes                   # conv patch (live value)
               + Wo * lanes(Cout) * 4)                    # f32 accumulator
    max_rows = max((budget - fixed) // max(per_row, 1), 1)
    max_rows = int(min(max_rows, 64))                     # unrolled lerp-loop length cap

    # TH must divide Ho; prefer multiples of 8; keep >= 4 grid steps total so
    # v7x's two TensorCores both get work.
    divs = [d for d in range(1, Ho + 1) if Ho % d == 0]
    pref = [d for d in divs if d % 8 == 0] or divs
    cands = sorted(d for d in pref if d <= max_rows) or [min(pref)]
    th = cands[-1]
    i = len(cands) - 1
    while N * (Ho // th) < 4 and i > 0:
        i -= 1
        th = cands[i]
    return th, vmem_limit


# ---------------------------------------------------------------------------
# Module wrapper: Upsample2D.forward (NCHW in / NCHW out, like PyTorch).
# ---------------------------------------------------------------------------
def upsample2d_forward(x_nchw, w_oihw, bias, *, compute_dtype=jnp.float32,
                       channels_last=False):
    N, Cin, H, W = x_nchw.shape
    Cout = w_oihw.shape[0]
    Ho, Wo = 2 * H, 2 * W
    K = 3 * Cin
    out_dtype = x_nchw.dtype

    th, vmem_limit = _plan_tiles(N, H, W, Cin, Cout, compute_dtype, out_dtype)
    n_tiles = Ho // th

    # XLA pre-pass: W-axis bilinear x2 + W zero-pad + dx im2col, fused with the
    # NCHW -> pixel-major layout change, applied to the SMALL pre-upsample
    # input.  compute_dtype inputs with f32 accumulation; HIGHEST precision
    # only on the f32 self-test path.
    # TODO(synk): for very large Cin a non-folded (K = Cin) variant would cut
    # this buffer's 3x footprint; not needed at decoder Cin and keeps one path.
    aw = jnp.asarray(_w_interp_im2col_matrix(W, Wo), compute_dtype)  # (W, Wo, 3)
    prec = (jax.lax.Precision.HIGHEST
            if jnp.dtype(compute_dtype) == jnp.dtype(jnp.float32)
            else jax.lax.Precision.DEFAULT)
    xw = jnp.einsum("nchw,wxd->nhxdc", x_nchw.astype(compute_dtype), aw,
                    precision=prec, preferred_element_type=jnp.float32)
    xw = xw.reshape(N, H * Wo, K).astype(compute_dtype)              # (N, H*Wo, 3*Cin)

    off0, off1, hw0, hw1 = _h_row_tables(H, Ho, Wo)
    off0, off1 = jnp.asarray(off0), jnp.asarray(off1)
    hw0, hw1 = jnp.asarray(hw0), jnp.asarray(hw1)

    # Conv weights: OIHW -> (dy, (dx, cin), cout), matching the im2col K order.
    wk = jnp.transpose(w_oihw, (2, 3, 1, 0)).reshape(3, K, Cout).astype(compute_dtype)
    b2 = bias.reshape(1, Cout).astype(jnp.float32)

    kernel = functools.partial(_upconv_kernel, th=th, wo=Wo)
    smem_spec = pl.BlockSpec(memory_space=pltpu.MemorySpace.SMEM)

    y = pl.pallas_call(
        kernel,
        out_shape=jax.ShapeDtypeStruct((N, Ho * Wo, Cout), out_dtype),
        grid_spec=pltpu.PrefetchScalarGridSpec(
            num_scalar_prefetch=0,
            grid=(N, n_tiles),
            in_specs=[
                smem_spec, smem_spec, smem_spec, smem_spec,
                # constant-in-t index maps -> fetched once per batch element
                pl.BlockSpec((1, H * Wo, K), lambda n, t: (n, 0, 0)),
                pl.BlockSpec((3, K, Cout), lambda n, t: (0, 0, 0)),
                pl.BlockSpec((1, Cout), lambda n, t: (0, 0)),
            ],
            out_specs=pl.BlockSpec((1, th * Wo, Cout), lambda n, t: (n, t, 0)),
            scratch_shapes=[pltpu.VMEM(((th + 2) * Wo, K), jnp.float32)],
        ),
        compiler_params=pltpu.CompilerParams(
            dimension_semantics=("parallel", "parallel"),
            vmem_limit_bytes=vmem_limit,
        ),
    )(off0, off1, hw0, hw1, xw, wk, b2)

    y = y.reshape(N, Ho, Wo, Cout)
    if channels_last:
        return y
    # TODO(synk): this NHWC -> NCHW transpose is a full HBM round-trip of the
    # 4x output; pass channels_last=True when the consumer accepts NHWC.
    return jnp.transpose(y, (0, 3, 1, 2))


# ---------------------------------------------------------------------------
# Independent reference: gather/lerp upsample + XLA conv (mirrors PyTorch).
# ---------------------------------------------------------------------------
def _reference_forward(x_nchw, w_oihw, bias):
    N, C, H, W = x_nchw.shape
    Ho, Wo = 2 * H, 2 * W
    y0, y1, fy = _interp_coords(H, Ho)
    x0, x1, fx = _interp_coords(W, Wo)
    top = x_nchw[:, :, y0, :]
    bot = x_nchw[:, :, y1, :]
    rows = top * (1.0 - fy)[None, None, :, None] + bot * fy[None, None, :, None]
    up = rows[:, :, :, x0] * (1.0 - fx) + rows[:, :, :, x1] * fx
    out = jax.lax.conv_general_dilated(
        up, w_oihw, window_strides=(1, 1), padding=((1, 1), (1, 1)),
        dimension_numbers=("NCHW", "OIHW", "NCHW"),
        precision=jax.lax.Precision.HIGHEST)
    return out + bias[None, :, None, None]


if __name__ == "__main__":
    N, Cin, Cout, H, W = 2, 4, 8, 16, 16

    key = jax.random.PRNGKey(0)
    kx, kw, kb = jax.random.split(key, 3)
    x = jax.random.normal(kx, (N, Cin, H, W), dtype=jnp.float32)
    # shapes match nn.Conv2d(Cin, Cout, 3, 1, 1)
    w = jax.random.normal(kw, (Cout, Cin, 3, 3), dtype=jnp.float32) * 0.1
    b = jax.random.normal(kb, (Cout,), dtype=jnp.float32) * 0.1

    # compute_dtype=jnp.bfloat16 is the production setting; f32 here so the
    # result can be checked against the f32 XLA reference.
    out = jax.jit(upsample2d_forward)(x, w, b)
    out = jax.block_until_ready(out)
    assert out.shape == (N, Cout, 2 * H, 2 * W), out.shape

    ref = _reference_forward(x, w, b)
    # Tolerance allows for the MXU's reduced-precision f32 matmul passes inside
    # the kernel while still catching any real interp / tap / layout bug.
    np.testing.assert_allclose(np.asarray(out), np.asarray(ref),
                               rtol=2e-2, atol=2e-2)

    print("KERNEL_OK")
</pallas_src>

<mosaic_0001>
module attributes {stable_mosaic.version = 11 : i64} {
  func.func @_upconv_kernel(%arg0: i32, %arg1: i32, %arg2: memref<34xi32, #tpu.memory_space<smem>>, %arg3: memref<34xi32, #tpu.memory_space<smem>>, %arg4: memref<34xf32, #tpu.memory_space<smem>>, %arg5: memref<34xf32, #tpu.memory_space<smem>>, %arg6: memref<1x512x12xf32, #tpu.memory_space<vmem>>, %arg7: memref<3x12x8xf32, #tpu.memory_space<vmem>>, %arg8: memref<1x8xf32, #tpu.memory_space<vmem>>, %arg9: memref<1x512x8xf32, #tpu.memory_space<vmem>>, %arg10: memref<576x12xf32, #tpu.memory_space<vmem>>) attributes {dimension_semantics = [#tpu.dimension_semantics<parallel>, #tpu.dimension_semantics<parallel>], iteration_bounds = array<i64: 2, 2>, scalar_prefetch = 0 : i64, scratch_operands = 1 : i64, tpu.core_type = #tpu.core_type<tc>, window_params = [{transform_indices = @transform_0, window_bounds = array<i64: 34>}, {transform_indices = @transform_1, window_bounds = array<i64: 34>}, {transform_indices = @transform_2, window_bounds = array<i64: 34>}, {transform_indices = @transform_3, window_bounds = array<i64: 34>}, {transform_indices = @transform_4, window_bounds = array<i64: 1, 512, 12>}, {pipeline_mode = #tpu.pipeline_mode<synchronous>, transform_indices = @transform_5, window_bounds = array<i64: 3, 12, 8>}, {pipeline_mode = #tpu.pipeline_mode<synchronous>, transform_indices = @transform_6, window_bounds = array<i64: 1, 8>}, {transform_indices = @transform_7, window_bounds = array<i64: 1, 512, 8>}]} {
    %c16_i32 = arith.constant 16 : i32
    %0 = arith.muli %arg1, %c16_i32 : i32
    %1 = tpu.assume_multiple %0, 16 : i32
    %c0_i32 = arith.constant 0 : i32
    %2 = arith.addi %1, %c0_i32 : i32
    %3 = arith.index_cast %2 : i32 to index
    %4 = memref.load %arg2[%3] : memref<34xi32, #tpu.memory_space<smem>>
    %5 = arith.index_cast %2 : i32 to index
    %6 = memref.load %arg3[%5] : memref<34xi32, #tpu.memory_space<smem>>
    %7 = tpu.assume_multiple %4, 8 : i32
    %8 = tpu.assume_multiple %6, 8 : i32
    %c0 = arith.constant 0 : index
    %9 = arith.index_cast %7 : i32 to index
    %c0_0 = arith.constant 0 : index
    %10 = vector.load %arg6[%c0, %9, %c0_0] : memref<1x512x12xf32, #tpu.memory_space<vmem>>, vector<1x32x12xf32>
    %11 = vector.shape_cast %10 : vector<1x32x12xf32> to vector<32x12xf32>
    %c0_1 = arith.constant 0 : index
    %12 = arith.index_cast %8 : i32 to index
    %c0_2 = arith.constant 0 : index
    %13 = vector.load %arg6[%c0_1, %12, %c0_2] : memref<1x512x12xf32, #tpu.memory_space<vmem>>, vector<1x32x12xf32>
    %14 = vector.shape_cast %13 : vector<1x32x12xf32> to vector<32x12xf32>
    %15 = arith.index_cast %2 : i32 to index
    %16 = memref.load %arg4[%15] : memref<34xf32, #tpu.memory_space<smem>>
    %17 = vector.broadcast %16 : f32 to vector<32x12xf32>
    %18 = arith.mulf %17, %11 : vector<32x12xf32>
    %19 = arith.index_cast %2 : i32 to index
    %20 = memref.load %arg5[%19] : memref<34xf32, #tpu.memory_space<smem>>
    %21 = vector.broadcast %20 : f32 to vector<32x12xf32>
    %22 = arith.mulf %21, %14 : vector<32x12xf32>
    %23 = arith.addf %18, %22 : vector<32x12xf32>
    %c0_3 = arith.constant 0 : index
    %c0_4 = arith.constant 0 : index
    %24 = vector.load %arg10[%c0_3, %c0_4] : memref<576x12xf32, #tpu.memory_space<vmem>>, vector<32x12xf32>
    tpu.vector_store %arg10[%c0_3, %c0_4], %23 {strides = array<i32>} : memref<576x12xf32, #tpu.memory_space<vmem>>, vector<32x12xf32>,
    %c1_i32 = arith.constant 1 : i32
    %25 = arith.addi %1, %c1_i32 : i32
    %26 = arith.index_cast %25 : i32 to index
    %27 = memref.load %arg2[%26] : memref<34xi32, #tpu.memory_space<smem>>
    %28 = arith.index_cast %25 : i32 to index
    %29 = memref.load %arg3[%28] : memref<34xi32, #tpu.memory_space<smem>>
    %30 = tpu.assume_multiple %27, 8 : i32
    %31 = tpu.assume_multiple %29, 8 : i32
    %c0_5 = arith.constant 0 : index
    %32 = arith.index_cast %30 : i32 to index
    %c0_6 = arith.constant 0 : index
    %33 = vector.load %arg6[%c0_5, %32, %c0_6] : memref<1x512x12xf32, #tpu.memory_space<vmem>>, vector<1x32x12xf32>
    %34 = vector.shape_cast %33 : vector<1x32x12xf32> to vector<32x12xf32>
    %c0_7 = arith.constant 0 : index
    %35 = arith.index_cast %31 : i32 to index
    %c0_8 = arith.constant 0 : index
    %36 = vector.load %arg6[%c0_7, %35, %c0_8] : memref<1x512x12xf32, #tpu.memory_space<vmem>>, vector<1x32x12xf32>
    %37 = vector.shape_cast %36 : vector<1x32x12xf32> to vector<32x12xf32>
    %38 = arith.index_cast %25 : i32 to index
    %39 = memref.load %arg4[%38] : memref<34xf32, #tpu.memory_space<smem>>
    %40 = vector.broadcast %39 : f32 to vector<32x12xf32>
    %41 = arith.mulf %40, %34 : vector<32x12xf32>
    %42 = arith.index_cast %25 : i32 to index
    %43 = memref.load %arg5[%42] : memref<34xf32, #tpu.memory_space<smem>>
    %44 = vector.broadcast %43 : f32 to vector<32x12xf32>
    %45 = arith.mulf %44, %37 : vector<32x12xf32>
    %46 = arith.addf %41, %45 : vector<32x12xf32>
    %c32 = arith.constant 32 : index
    %c0_9 = arith.constant 0 : index
    %47 = vector.load %arg10[%c32, %c0_9] : memref<576x12xf32, #tpu.memory_space<vmem>>, vector<32x12xf32>
    tpu.vector_store %arg10[%c32, %c0_9], %46 {strides = array<i32>} : memref<576x12xf32, #tpu.memory_space<vmem>>, vector<32x12xf32>,
    %c2_i32 = arith.constant 2 : i32
    %48 = arith.addi %1, %c2_i32 : i32
    %49 = arith.index_cast %48 : i32 to index
    %50 = memref.load %arg2[%49] : memref<34xi32, #tpu.memory_space<smem>>
    %51 = arith.index_cast %48 : i32 to index
    %52 = memref.load %arg3[%51] : memref<34xi32, #tpu.memory_space<smem>>
    %53 = tpu.assume_multiple %50, 8 : i32
    %54 = tpu.assume_multiple %52, 8 : i32
    %c0_10 = arith.constant 0 : index
    %55 = arith.index_cast %53 : i32 to index
    %c0_11 = arith.constant 0 : index
    %56 = vector.load %arg6[%c0_10, %55, %c0_11] : memref<1x512x12xf32, #tpu.memory_space<vmem>>, vector<1x32x12xf32>
    %57 = vector.shape_cast %56 : vector<1x32x12xf32> to vector<32x12xf32>
    %c0_12 = arith.constant 0 : index
    %58 = arith.index_cast %54 : i32 to index
    %c0_13 = arith.constant 0 : index
    %59 = vector.load %arg6[%c0_12, %58, %c0_13] : memref<1x512x12xf32, #tpu.memory_space<vmem>>, vector<1x32x12xf32>
    %60 = vector.shape_cast %59 : vector<1x32x12xf32> to vector<32x12xf32>
    %61 = arith.index_cast %48 : i32 to index
    %62 = memref.load %arg4[%61] : memref<34xf32, #tpu.memory_space<smem>>
    %63 = vector.broadcast %62 : f32 to vector<32x12xf32>
    %64 = arith.mulf %63, %57 : vector<32x12xf32>
    %65 = arith.index_cast %48 : i32 to index
    %66 = memref.load %arg5[%65] : memref<34xf32, #tpu.memory_space<smem>>
    %67 = vector.broadcast %66 : f32 to vector<32x12xf32>
    %68 = arith.mulf %67, %60 : vector<32x12xf32>
    %69 = arith.addf %64, %68 : vector<32x12xf32>
    %c64 = arith.constant 64 : index
    %c0_14 = arith.constant 0 : index
    %70 = vector.load %arg10[%c64, %c0_14] : memref<576x12xf32, #tpu.memory_space<vmem>>, vector<32x12xf32>
    tpu.vector_store %arg10[%c64, %c0_14], %69 {strides = array<i32>} : memref<576x12xf32, #tpu.memory_space<vmem>>, vector<32x12xf32>,
    %c3_i32 = arith.constant 3 : i32
    %71 = arith.addi %1, %c3_i32 : i32
    %72 = arith.index_cast %71 : i32 to index
    %73 = memref.load %arg2[%72] : memref<34xi32, #tpu.memory_space<smem>>
    %74 = arith.index_cast %71 : i32 to index
    %75 = memref.load %arg3[%74] : memref<34xi32, #tpu.memory_space<smem>>
    %76 = tpu.assume_multiple %73, 8 : i32
    %77 = tpu.assume_multiple %75, 8 : i32
    %c0_15 = arith.constant 0 : index
    %78 = arith.index_cast %76 : i32 to index
    %c0_16 = arith.constant 0 : index
    %79 = vector.load %arg6[%c0_15, %78, %c0_16] : memref<1x512x12xf32, #tpu.memory_space<vmem>>, vector<1x32x12xf32>
    %80 = vector.shape_cast %79 : vector<1x32x12xf32> to vector<32x12xf32>
    %c0_17 = arith.constant 0 : index
    %81 = arith.index_cast %77 : i32 to index
    %c0_18 = arith.constant 0 : index
    %82 = vector.load %arg6[%c0_17, %81, %c0_18] : memref<1x512x12xf32, #tpu.memory_space<vmem>>, vector<1x32x12xf32>
    %83 = vector.shape_cast %82 : vector<1x32x12xf32> to vector<32x12xf32>
    %84 = arith.index_cast %71 : i32 to index
    %85 = memref.load %arg4[%84] : memref<34xf32, #tpu.memory_space<smem>>
    %86 = vector.broadcast %85 : f32 to vector<32x12xf32>
    %87 = arith.mulf %86, %80 : vector<32x12xf32>
    %88 = arith.index_cast %71 : i32 to index
    %89 = memref.load %arg5[%88] : memref<34xf32, #tpu.memory_space<smem>>
    %90 = vector.broadcast %89 : f32 to vector<32x12xf32>
    %91 = arith.mulf %90, %83 : vector<32x12xf32>
    %92 = arith.addf %87, %91 : vector<32x12xf32>
    %c96 = arith.constant 96 : index
    %c0_19 = arith.constant 0 : index
    %93 = vector.load %arg10[%c96, %c0_19] : memref<576x12xf32, #tpu.memory_space<vmem>>, vector<32x12xf32>
    tpu.vector_store %arg10[%c96, %c0_19], %92 {strides = array<i32>} : memref<576x12xf32, #tpu.memory_space<vmem>>, vector<32x12xf32>,
    %c4_i32 = arith.constant 4 : i32
    %94 = arith.addi %1, %c4_i32 : i32
    %95 = arith.index_cast %94 : i32 to index
    %96 = memref.load %arg2[%95] : memref<34xi32, #tpu.memory_space<smem>>
    %97 = arith.index_cast %94 : i32 to index
    %98 = memref.load %arg3[%97] : memref<34xi32, #tpu.memory_space<smem>>
    %99 = tpu.assume_multiple %96, 8 : i32
    %100 = tpu.assume_multiple %98, 8 : i32
    %c0_20 = arith.constant 0 : index
    %101 = arith.index_cast %99 : i32 to index
    %c0_21 = arith.constant 0 : index
    %102 = vector.load %arg6[%c0_20, %101, %c0_21] : memref<1x512x12xf32, #tpu.memory_space<vmem>>, vector<1x32x12xf32>
    %103 = vector.shape_cast %102 : vector<1x32x12xf32> to vector<32x12xf32>
    %c0_22 = arith.constant 0 : index
    %104 = arith.index_cast %100 : i32 to index
    %c0_23 = arith.constant 0 : index
    %105 = vector.load %arg6[%c0_22, %104, %c0_23] : memref<1x512x12xf32, #tpu.memory_space<vmem>>, vector<1x32x12xf32>
    %106 = vector.shape_cast %105 : vector<1x32x12xf32> to vector<32x12xf32>
    %107 = arith.index_cast %94 : i32 to index
    %108 = memref.load %arg4[%107] : memref<34xf32, #tpu.memory_space<smem>>
    %109 = vector.broadcast %108 : f32 to vector<32x12xf32>
    %110 = arith.mulf %109, %103 : vector<32x12xf32>
    %111 = arith.index_cast %94 : i32 to index
    %112 = memref.load %arg5[%111] : memref<34xf32, #tpu.memory_space<smem>>
    %113 = vector.broadcast %112 : f32 to vector<32x12xf32>
    %114 = arith.mulf %113, %106 : vector<32x12xf32>
    %115 = arith.addf %110, %114 : vector<32x12xf32>
    %c128 = arith.constant 128 : index
    %c0_24 = arith.constant 0 : index
    %116 = vector.load %arg10[%c128, %c0_24] : memref<576x12xf32, #tpu.memory_space<vmem>>, vector<32x12xf32>
    tpu.vector_store %arg10[%c128, %c0_24], %115 {strides = array<i32>} : memref<576x12xf32, #tpu.memory_space<vmem>>, vector<32x12xf32>,
    %c5_i32 = arith.constant 5 : i32
    %117 = arith.addi %1, %c5_i32 : i32
    %118 = arith.index_cast %117 : i32 to index
    %119 = memref.load %arg2[%118] : memref<34xi32, #tpu.memory_space<smem>>
    %120 = arith.index_cast %117 : i32 to index
    %121 = memref.load %arg3[%120] : memref<34xi32, #tpu.memory_space<smem>>
    %122 = tpu.assume_multiple %119, 8 : i32
    %123 = tpu.assume_multiple %121, 8 : i32
    %c0_25 = arith.constant 0 : index
    %124 = arith.index_cast %122 : i32 to index
    %c0_26 = arith.constant 0 : index
    %125 = vector.load %arg6[%c0_25, %124, %c0_26] : memref<1x512x12xf32, #tpu.memory_space<vmem>>, vector<1x32x12xf32>
    %126 = vector.shape_cast %125 : vector<1x32x12xf32> to vector<32x12xf32>
    %c0_27 = arith.constant 0 : index
    %127 = arith.index_cast %123 : i32 to index
    %c0_28 = arith.constant 0 : index
    %128 = vector.load %arg6[%c0_27, %127, %c0_28] : memref<1x512x12xf32, #tpu.memory_space<vmem>>, vector<1x32x12xf32>
    %129 = vector.shape_cast %128 : vector<1x32x12xf32> to vector<32x12xf32>
    %130 = arith.index_cast %117 : i32 to index
    %131 = memref.load %arg4[%130] : memref<34xf32, #tpu.memory_space<smem>>
    %132 = vector.broadcast %131 : f32 to vector<32x12xf32>
    %133 = arith.mulf %132, %126 : vector<32x12xf32>
    %134 = arith.index_cast %117 : i32 to index
    %135 = memref.load %arg5[%134] : memref<34xf32, #tpu.memory_space<smem>>
    %136 = vector.broadcast %135 : f32 to vector<32x12xf32>
    %137 = arith.mulf %136, %129 : vector<32x12xf32>
    %138 = arith.addf %133, %137 : vector<32x12xf32>
    %c160 = arith.constant 160 : index
    %c0_29 = arith.constant 0 : index
    %139 = vector.load %arg10[%c160, %c0_29] : memref<576x12xf32, #tpu.memory_space<vmem>>, vector<32x12xf32>
    tpu.vector_store %arg10[%c160, %c0_29], %138 {strides = array<i32>} : memref<576x12xf32, #tpu.memory_space<vmem>>, vector<32x12xf32>,
    %c6_i32 = arith.constant 6 : i32
    %140 = arith.addi %1, %c6_i32 : i32
    %141 = arith.index_cast %140 : i32 to index
    %142 = memref.load %arg2[%141] : memref<34xi32, #tpu.memory_space<smem>>
    %143 = arith.index_cast %140 : i32 to index
    %144 = memref.load %arg3[%143] : memref<34xi32, #tpu.memory_space<smem>>
    %145 = tpu.assume_multiple %142, 8 : i32
    %146 = tpu.assume_multiple %144, 8 : i32
    %c0_30 = arith.constant 0 : index
    %147 = arith.index_cast %145 : i32 to index
    %c0_31 = arith.constant 0 : index
    %148 = vector.load %arg6[%c0_30, %147, %c0_31] : memref<1x512x12xf32, #tpu.memory_space<vmem>>, vector<1x32x12xf32>
    %149 = vector.shape_cast %148 : vector<1x32x12xf32> to vector<32x12xf32>
    %c0_32 = arith.constant 0 : index
    %150 = arith.index_cast %146 : i32 to index
    %c0_33 = arith.constant 0 : index
    %151 = vector.load %arg6[%c0_32, %150, %c0_33] : memref<1x512x12xf32, #tpu.memory_space<vmem>>, vector<1x32x12xf32>
    %152 = vector.shape_cast %151 : vector<1x32x12xf32> to vector<32x12xf32>
    %153 = arith.index_cast %140 : i32 to index
    %154 = memref.load %arg4[%153] : memref<34xf32, #tpu.memory_space<smem>>
    %155 = vector.broadcast %154 : f32 to vector<32x12xf32>
    %156 = arith.mulf %155, %149 : vector<32x12xf32>
    %157 = arith.index_cast %140 : i32 to index
    %158 = memref.load %arg5[%157] : memref<34xf32, #tpu.memory_space<smem>>
    %159 = vector.broadcast %158 : f32 to vector<32x12xf32>
    %160 = arith.mulf %159, %152 : vector<32x12xf32>
    %161 = arith.addf %156, %160 : vector<32x12xf32>
    %c192 = arith.constant 192 : index
    %c0_34 = arith.constant 0 : index
    %162 = vector.load %arg10[%c192, %c0_34] : memref<576x12xf32, #tpu.memory_space<vmem>>, vector<32x12xf32>
    tpu.vector_store %arg10[%c192, %c0_34], %161 {strides = array<i32>} : memref<576x12xf32, #tpu.memory_space<vmem>>, vector<32x12xf32>,
    %c7_i32 = arith.constant 7 : i32
    %163 = arith.addi %1, %c7_i32 : i32
    %164 = arith.index_cast %163 : i32 to index
    %165 = memref.load %arg2[%164] : memref<34xi32, #tpu.memory_space<smem>>
    %166 = arith.index_cast %163 : i32 to index
    %167 = memref.load %arg3[%166] : memref<34xi32, #tpu.memory_space<smem>>
    %168 = tpu.assume_multiple %165, 8 : i32
    %169 = tpu.assume_multiple %167, 8 : i32
    %c0_35 = arith.constant 0 : index
    %170 = arith.index_cast %168 : i32 to index
    %c0_36 = arith.constant 0 : index
    %171 = vector.load %arg6[%c0_35, %170, %c0_36] : memref<1x512x12xf32, #tpu.memory_space<vmem>>, vector<1x32x12xf32>
    %172 = vector.shape_cast %171 : vector<1x32x12xf32> to vector<32x12xf32>
    %c0_37 = arith.constant 0 : index
    %173 = arith.index_cast %169 : i32 to index
    %c0_38 = arith.constant 0 : index
    %174 = vector.load %arg6[%c0_37, %173, %c0_38] : memref<1x512x12xf32, #tpu.memory_space<vmem>>, vector<1x32x12xf32>
    %175 = vector.shape_cast %174 : vector<1x32x12xf32> to vector<32x12xf32>
    %176 = arith.index_cast %163 : i32 to index
    %177 = memref.load %arg4[%176] : memref<34xf32, #tpu.memory_space<smem>>
    %178 = vector.broadcast %177 : f32 to vector<32x12xf32>
    %179 = arith.mulf %178, %172 : vector<32x12xf32>
    %180 = arith.index_cast %163 : i32 to index
    %181 = memref.load %arg5[%180] : memref<34xf32, #tpu.memory_space<smem>>
    %182 = vector.broadcast %181 : f32 to vector<32x12xf32>
    %183 = arith.mulf %182, %175 : vector<32x12xf32>
    %184 = arith.addf %179, %183 : vector<32x12xf32>
    %c224 = arith.constant 224 : index
    %c0_39 = arith.constant 0 : index
    %185 = vector.load %arg10[%c224, %c0_39] : memref<576x12xf32, #tpu.memory_space<vmem>>, vector<32x12xf32>
    tpu.vector_store %arg10[%c224, %c0_39], %184 {strides = array<i32>} : memref<576x12xf32, #tpu.memory_space<vmem>>, vector<32x12xf32>,
    %c8_i32 = arith.constant 8 : i32
    %186 = arith.addi %1, %c8_i32 : i32
    %187 = arith.index_cast %186 : i32 to index
    %188 = memref.load %arg2[%187] : memref<34xi32, #tpu.memory_space<smem>>
    %189 = arith.index_cast %186 : i32 to index
    %190 = memref.load %arg3[%189] : memref<34xi32, #tpu.memory_space<smem>>
    %191 = tpu.assume_multiple %188, 8 : i32
    %192 = tpu.assume_multiple %190, 8 : i32
    %c0_40 = arith.constant 0 : index
    %193 = arith.index_cast %191 : i32 to index
    %c0_41 = arith.constant 0 : index
    %194 = vector.load %arg6[%c0_40, %193, %c0_41] : memref<1x512x12xf32, #tpu.memory_space<vmem>>, vector<1x32x12xf32>
    %195 = vector.shape_cast %194 : vector<1x32x12xf32> to vector<32x12xf32>
    %c0_42 = arith.constant 0 : index
    %196 = arith.index_cast %192 : i32 to index
    %c0_43 = arith.constant 0 : index
    %197 = vector.load %arg6[%c0_42, %196, %c0_43] : memref<1x512x12xf32, #tpu.memory_space<vmem>>, vector<1x32x12xf32>
    %198 = vector.shape_cast %197 : vector<1x32x12xf32> to vector<32x12xf32>
    %199 = arith.index_cast %186 : i32 to index
    %200 = memref.load %arg4[%199] : memref<34xf32, #tpu.memory_space<smem>>
    %201 = vector.broadcast %200 : f32 to vector<32x12xf32>
    %202 = arith.mulf %201, %195 : vector<32x12xf32>
    %203 = arith.index_cast %186 : i32 to index
    %204 = memref.load %arg5[%203] : memref<34xf32, #tpu.memory_space<smem>>
    %205 = vector.broadcast %204 : f32 to vector<32x12xf32>
    %206 = arith.mulf %205, %198 : vector<32x12xf32>
    %207 = arith.addf %202, %206 : vector<32x12xf32>
    %c256 = arith.constant 256 : index
    %c0_44 = arith.constant 0 : index
    %208 = vector.load %arg10[%c256, %c0_44] : memref<576x12xf32, #tpu.memory_space<vmem>>, vector<32x12xf32>
    tpu.vector_store %arg10[%c256, %c0_44], %207 {strides = array<i32>} : memref<576x12xf32, #tpu.memory_space<vmem>>, vector<32x12xf32>,
    %c9_i32 = arith.constant 9 : i32
    %209 = arith.addi %1, %c9_i32 : i32
    %210 = arith.index_cast %209 : i32 to index
    %211 = memref.load %arg2[%210] : memref<34xi32, #tpu.memory_space<smem>>
    %212 = arith.index_cast %209 : i32 to index
    %213 = memref.load %arg3[%212] : memref<34xi32, #tpu.memory_space<smem>>
    %214 = tpu.assume_multiple %211, 8 : i32
    %215 = tpu.assume_multiple %213, 8 : i32
    %c0_45 = arith.constant 0 : index
    %216 = arith.index_cast %214 : i32 to index
    %c0_46 = arith.constant 0 : index
    %217 = vector.load %arg6[%c0_45, %216, %c0_46] : memref<1x512x12xf32, #tpu.memory_space<vmem>>, vector<1x32x12xf32>
    %218 = vector.shape_cast %217 : vector<1x32x12xf32> to vector<32x12xf32>
    %c0_47 = arith.constant 0 : index
    %219 = arith.index_cast %215 : i32 to index
    %c0_48 = arith.constant 0 : index
    %220 = vector.load %arg6[%c0_47, %219, %c0_48] : memref<1x512x12xf32, #tpu.memory_space<vmem>>, vector<1x32x12xf32>
    %221 = vector.shape_cast %220 : vector<1x32x12xf32> to vector<32x12xf32>
    %222 = arith.index_cast %209 : i32 to index
    %223 = memref.load %arg4[%222] : memref<34xf32, #tpu.memory_space<smem>>
    %224 = vector.broadcast %223 : f32 to vector<32x12xf32>
    %225 = arith.mulf %224, %218 : vector<32x12xf32>
    %226 = arith.index_cast %209 : i32 to index
    %227 = memref.load %arg5[%226] : memref<34xf32, #tpu.memory_space<smem>>
    %228 = vector.broadcast %227 : f32 to vector<32x12xf32>
    %229 = arith.mulf %228, %221 : vector<32x12xf32>
    %230 = arith.addf %225, %229 : vector<32x12xf32>
    %c288 = arith.constant 288 : index
    %c0_49 = arith.constant 0 : index
    %231 = vector.load %arg10[%c288, %c0_49] : memref<576x12xf32, #tpu.memory_space<vmem>>, vector<32x12xf32>
    tpu.vector_store %arg10[%c288, %c0_49], %230 {strides = array<i32>} : memref<576x12xf32, #tpu.memory_space<vmem>>, vector<32x12xf32>,
    %c10_i32 = arith.constant 10 : i32
    %232 = arith.addi %1, %c10_i32 : i32
    %233 = arith.index_cast %232 : i32 to index
    %234 = memref.load %arg2[%233] : memref<34xi32, #tpu.memory_space<smem>>
    %235 = arith.index_cast %232 : i32 to index
    %236 = memref.load %arg3[%235] : memref<34xi32, #tpu.memory_space<smem>>
    %237 = tpu.assume_multiple %234, 8 : i32
    %238 = tpu.assume_multiple %236, 8 : i32
    %c0_50 = arith.constant 0 : index
    %239 = arith.index_cast %237 : i32 to index
    %c0_51 = arith.constant 0 : index
    %240 = vector.load %arg6[%c0_50, %239, %c0_51] : memref<1x512x12xf32, #tpu.memory_space<vmem>>, vector<1x32x12xf32>
    %241 = vector.shape_cast %240 : vector<1x32x12xf32> to vector<32x12xf32>
    %c0_52 = arith.constant 0 : index
    %242 = arith.index_cast %238 : i32 to index
    %c0_53 = arith.constant 0 : index
    %243 = vector.load %arg6[%c0_52, %242, %c0_53] : memref<1x512x12xf32, #tpu.memory_space<vmem>>, vector<1x32x12xf32>
    %244 = vector.shape_cast %243 : vector<1x32x12xf32> to vector<32x12xf32>
    %245 = arith.index_cast %232 : i32 to index
    %246 = memref.load %arg4[%245] : memref<34xf32, #tpu.memory_space<smem>>
    %247 = vector.broadcast %246 : f32 to vector<32x12xf32>
    %248 = arith.mulf %247, %241 : vector<32x12xf32>
    %249 = arith.index_cast %232 : i32 to index
    %250 = memref.load %arg5[%249] : memref<34xf32, #tpu.memory_space<smem>>
    %251 = vector.broadcast %250 : f32 to vector<32x12xf32>
    %252 = arith.mulf %251, %244 : vector<32x12xf32>
    %253 = arith.addf %248, %252 : vector<32x12xf32>
    %c320 = arith.constant 320 : index
    %c0_54 = arith.constant 0 : index
    %254 = vector.load %arg10[%c320, %c0_54] : memref<576x12xf32, #tpu.memory_space<vmem>>, vector<32x12xf32>
    tpu.vector_store %arg10[%c320, %c0_54], %253 {strides = array<i32>} : memref<576x12xf32, #tpu.memory_space<vmem>>, vector<32x12xf32>,
    %c11_i32 = arith.constant 11 : i32
    %255 = arith.addi %1, %c11_i32 : i32
    %256 = arith.index_cast %255 : i32 to index
    %257 = memref.load %arg2[%256] : memref<34xi32, #tpu.memory_space<smem>>
    %258 = arith.index_cast %255 : i32 to index
    %259 = memref.load %arg3[%258] : memref<34xi32, #tpu.memory_space<smem>>
    %260 = tpu.assume_multiple %257, 8 : i32
    %261 = tpu.assume_multiple %259, 8 : i32
    %c0_55 = arith.constant 0 : index
    %262 = arith.index_cast %260 : i32 to index
    %c0_56 = arith.constant 0 : index
    %263 = vector.load %arg6[%c0_55, %262, %c0_56] : memref<1x512x12xf32, #tpu.memory_space<vmem>>, vector<1x32x12xf32>
    %264 = vector.shape_cast %263 : vector<1x32x12xf32> to vector<32x12xf32>
    %c0_57 = arith.constant 0 : index
    %265 = arith.index_cast %261 : i32 to index
    %c0_58 = arith.constant 0 : index
    %266 = vector.load %arg6[%c0_57, %265, %c0_58] : memref<1x512x12xf32, #tpu.memory_space<vmem>>, vector<1x32x12xf32>
    %267 = vector.shape_cast %266 : vector<1x32x12xf32> to vector<32x12xf32>
    %268 = arith.index_cast %255 : i32 to index
    %269 = memref.load %arg4[%268] : memref<34xf32, #tpu.memory_space<smem>>
    %270 = vector.broadcast %269 : f32 to vector<32x12xf32>
    %271 = arith.mulf %270, %264 : vector<32x12xf32>
    %272 = arith.index_cast %255 : i32 to index
    %273 = memref.load %arg5[%272] : memref<34xf32, #tpu.memory_space<smem>>
    %274 = vector.broadcast %273 : f32 to vector<32x12xf32>
    %275 = arith.mulf %274, %267 : vector<32x12xf32>
    %276 = arith.addf %271, %275 : vector<32x12xf32>
    %c352 = arith.constant 352 : index
    %c0_59 = arith.constant 0 : index
    %277 = vector.load %arg10[%c352, %c0_59] : memref<576x12xf32, #tpu.memory_space<vmem>>, vector<32x12xf32>
    tpu.vector_store %arg10[%c352, %c0_59], %276 {strides = array<i32>} : memref<576x12xf32, #tpu.memory_space<vmem>>, vector<32x12xf32>,
    %c12_i32 = arith.constant 12 : i32
    %278 = arith.addi %1, %c12_i32 : i32
    %279 = arith.index_cast %278 : i32 to index
    %280 = memref.load %arg2[%279] : memref<34xi32, #tpu.memory_space<smem>>
    %281 = arith.index_cast %278 : i32 to index
    %282 = memref.load %arg3[%281] : memref<34xi32, #tpu.memory_space<smem>>
    %283 = tpu.assume_multiple %280, 8 : i32
    %284 = tpu.assume_multiple %282, 8 : i32
    %c0_60 = arith.constant 0 : index
    %285 = arith.index_cast %283 : i32 to index
    %c0_61 = arith.constant 0 : index
    %286 = vector.load %arg6[%c0_60, %285, %c0_61] : memref<1x512x12xf32, #tpu.memory_space<vmem>>, vector<1x32x12xf32>
    %287 = vector.shape_cast %286 : vector<1x32x12xf32> to vector<32x12xf32>
    %c0_62 = arith.constant 0 : index
    %288 = arith.index_cast %284 : i32 to index
    %c0_63 = arith.constant 0 : index
    %289 = vector.load %arg6[%c0_62, %288, %c0_63] : memref<1x512x12xf32, #tpu.memory_space<vmem>>, vector<1x32x12xf32>
    %290 = vector.shape_cast %289 : vector<1x32x12xf32> to vector<32x12xf32>
    %291 = arith.index_cast %278 : i32 to index
    %292 = memref.load %arg4[%291] : memref<34xf32, #tpu.memory_space<smem>>
    %293 = vector.broadcast %292 : f32 to vector<32x12xf32>
    %294 = arith.mulf %293, %287 : vector<32x12xf32>
    %295 = arith.index_cast %278 : i32 to index
    %296 = memref.load %arg5[%295] : memref<34xf32, #tpu.memory_space<smem>>
    %297 = vector.broadcast %296 : f32 to vector<32x12xf32>
    %298 = arith.mulf %297, %290 : vector<32x12xf32>
    %299 = arith.addf %294, %298 : vector<32x12xf32>
    %c384 = arith.constant 384 : index
    %c0_64 = arith.constant 0 : index
    %300 = vector.load %arg10[%c384, %c0_64] : memref<576x12xf32, #tpu.memory_space<vmem>>, vector<32x12xf32>
    tpu.vector_store %arg10[%c384, %c0_64], %299 {strides = array<i32>} : memref<576x12xf32, #tpu.memory_space<vmem>>, vector<32x12xf32>,
    %c13_i32 = arith.constant 13 : i32
    %301 = arith.addi %1, %c13_i32 : i32
    %302 = arith.index_cast %301 : i32 to index
    %303 = memref.load %arg2[%302] : memref<34xi32, #tpu.memory_space<smem>>
    %304 = arith.index_cast %301 : i32 to index
    %305 = memref.load %arg3[%304] : memref<34xi32, #tpu.memory_space<smem>>
    %306 = tpu.assume_multiple %303, 8 : i32
    %307 = tpu.assume_multiple %305, 8 : i32
    %c0_65 = arith.constant 0 : index
    %308 = arith.index_cast %306 : i32 to index
    %c0_66 = arith.constant 0 : index
    %309 = vector.load %arg6[%c0_65, %308, %c0_66] : memref<1x512x12xf32, #tpu.memory_space<vmem>>, vector<1x32x12xf32>
    %310 = vector.shape_cast %309 : vector<1x32x12xf32> to vector<32x12xf32>
    %c0_67 = arith.constant 0 : index
    %311 = arith.index_cast %307 : i32 to index
    %c0_68 = arith.constant 0 : index
    %312 = vector.load %arg6[%c0_67, %311, %c0_68] : memref<1x512x12xf32, #tpu.memory_space<vmem>>, vector<1x32x12xf32>
    %313 = vector.shape_cast %312 : vector<1x32x12xf32> to vector<32x12xf32>
    %314 = arith.index_cast %301 : i32 to index
    %315 = memref.load %arg4[%314] : memref<34xf32, #tpu.memory_space<smem>>
    %316 = vector.broadcast %315 : f32 to vector<32x12xf32>
    %317 = arith.mulf %316, %310 : vector<32x12xf32>
    %318 = arith.index_cast %301 : i32 to index
    %319 = memref.load %arg5[%318] : memref<34xf32, #tpu.memory_space<smem>>
    %320 = vector.broadcast %319 : f32 to vector<32x12xf32>
    %321 = arith.mulf %320, %313 : vector<32x12xf32>
    %322 = arith.addf %317, %321 : vector<32x12xf32>
    %c416 = arith.constant 416 : index
    %c0_69 = arith.constant 0 : index
    %323 = vector.load %arg10[%c416, %c0_69] : memref<576x12xf32, #tpu.memory_space<vmem>>, vector<32x12xf32>
    tpu.vector_store %arg10[%c416, %c0_69], %322 {strides = array<i32>} : memref<576x12xf32, #tpu.memory_space<vmem>>, vector<32x12xf32>,
    %c14_i32 = arith.constant 14 : i32
    %324 = arith.addi %1, %c14_i32 : i32
    %325 = arith.index_cast %324 : i32 to index
    %326 = memref.load %arg2[%325] : memref<34xi32, #tpu.memory_space<smem>>
    %327 = arith.index_cast %324 : i32 to index
    %328 = memref.load %arg3[%327] : memref<34xi32, #tpu.memory_space<smem>>
    %329 = tpu.assume_multiple %326, 8 : i32
    %330 = tpu.assume_multiple %328, 8 : i32
    %c0_70 = arith.constant 0 : index
    %331 = arith.index_cast %329 : i32 to index
    %c0_71 = arith.constant 0 : index
    %332 = vector.load %arg6[%c0_70, %331, %c0_71] : memref<1x512x12xf32, #tpu.memory_space<vmem>>, vector<1x32x12xf32>
    %333 = vector.shape_cast %332 : vector<1x32x12xf32> to vector<32x12xf32>
    %c0_72 = arith.constant 0 : index
    %334 = arith.index_cast %330 : i32 to index
    %c0_73 = arith.constant 0 : index
    %335 = vector.load %arg6[%c0_72, %334, %c0_73] : memref<1x512x12xf32, #tpu.memory_space<vmem>>, vector<1x32x12xf32>
    %336 = vector.shape_cast %335 : vector<1x32x12xf32> to vector<32x12xf32>
    %337 = arith.index_cast %324 : i32 to index
    %338 = memref.load %arg4[%337] : memref<34xf32, #tpu.memory_space<smem>>
    %339 = vector.broadcast %338 : f32 to vector<32x12xf32>
    %340 = arith.mulf %339, %333 : vector<32x12xf32>
    %341 = arith.index_cast %324 : i32 to index
    %342 = memref.load %arg5[%341] : memref<34xf32, #tpu.memory_space<smem>>
    %343 = vector.broadcast %342 : f32 to vector<32x12xf32>
    %344 = arith.mulf %343, %336 : vector<32x12xf32>
    %345 = arith.addf %340, %344 : vector<32x12xf32>
    %c448 = arith.constant 448 : index
    %c0_74 = arith.constant 0 : index
    %346 = vector.load %arg10[%c448, %c0_74] : memref<576x12xf32, #tpu.memory_space<vmem>>, vector<32x12xf32>
    tpu.vector_store %arg10[%c448, %c0_74], %345 {strides = array<i32>} : memref<576x12xf32, #tpu.memory_space<vmem>>, vector<32x12xf32>,
    %c15_i32 = arith.constant 15 : i32
    %347 = arith.addi %1, %c15_i32 : i32
    %348 = arith.index_cast %347 : i32 to index
    %349 = memref.load %arg2[%348] : memref<34xi32, #tpu.memory_space<smem>>
    %350 = arith.index_cast %347 : i32 to index
    %351 = memref.load %arg3[%350] : memref<34xi32, #tpu.memory_space<smem>>
    %352 = tpu.assume_multiple %349, 8 : i32
    %353 = tpu.assume_multiple %351, 8 : i32
    %c0_75 = arith.constant 0 : index
    %354 = arith.index_cast %352 : i32 to index
    %c0_76 = arith.constant 0 : index
    %355 = vector.load %arg6[%c0_75, %354, %c0_76] : memref<1x512x12xf32, #tpu.memory_space<vmem>>, vector<1x32x12xf32>
    %356 = vector.shape_cast %355 : vector<1x32x12xf32> to vector<32x12xf32>
    %c0_77 = arith.constant 0 : index
    %357 = arith.index_cast %353 : i32 to index
    %c0_78 = arith.constant 0 : index
    %358 = vector.load %arg6[%c0_77, %357, %c0_78] : memref<1x512x12xf32, #tpu.memory_space<vmem>>, vector<1x32x12xf32>
    %359 = vector.shape_cast %358 : vector<1x32x12xf32> to vector<32x12xf32>
    %360 = arith.index_cast %347 : i32 to index
    %361 = memref.load %arg4[%360] : memref<34xf32, #tpu.memory_space<smem>>
    %362 = vector.broadcast %361 : f32 to vector<32x12xf32>
    %363 = arith.mulf %362, %356 : vector<32x12xf32>
    %364 = arith.index_cast %347 : i32 to index
    %365 = memref.load %arg5[%364] : memref<34xf32, #tpu.memory_space<smem>>
    %366 = vector.broadcast %365 : f32 to vector<32x12xf32>
    %367 = arith.mulf %366, %359 : vector<32x12xf32>
    %368 = arith.addf %363, %367 : vector<32x12xf32>
    %c480 = arith.constant 480 : index
    %c0_79 = arith.constant 0 : index
    %369 = vector.load %arg10[%c480, %c0_79] : memref<576x12xf32, #tpu.memory_space<vmem>>, vector<32x12xf32>
    tpu.vector_store %arg10[%c480, %c0_79], %368 {strides = array<i32>} : memref<576x12xf32, #tpu.memory_space<vmem>>, vector<32x12xf32>,
    %c16_i32_80 = arith.constant 16 : i32
    %370 = arith.addi %1, %c16_i32_80 : i32
    %371 = arith.index_cast %370 : i32 to index
    %372 = memref.load %arg2[%371] : memref<34xi32, #tpu.memory_space<smem>>
    %373 = arith.index_cast %370 : i32 to index
    %374 = memref.load %arg3[%373] : memref<34xi32, #tpu.memory_space<smem>>
    %375 = tpu.assume_multiple %372, 8 : i32
    %376 = tpu.assume_multiple %374, 8 : i32
    %c0_81 = arith.constant 0 : index
    %377 = arith.index_cast %375 : i32 to index
    %c0_82 = arith.constant 0 : index
    %378 = vector.load %arg6[%c0_81, %377, %c0_82] : memref<1x512x12xf32, #tpu.memory_space<vmem>>, vector<1x32x12xf32>
    %379 = vector.shape_cast %378 : vector<1x32x12xf32> to vector<32x12xf32>
    %c0_83 = arith.constant 0 : index
    %380 = arith.index_cast %376 : i32 to index
    %c0_84 = arith.constant 0 : index
    %381 = vector.load %arg6[%c0_83, %380, %c0_84] : memref<1x512x12xf32, #tpu.memory_space<vmem>>, vector<1x32x12xf32>
    %382 = vector.shape_cast %381 : vector<1x32x12xf32> to vector<32x12xf32>
    %383 = arith.index_cast %370 : i32 to index
    %384 = memref.load %arg4[%383] : memref<34xf32, #tpu.memory_space<smem>>
    %385 = vector.broadcast %384 : f32 to vector<32x12xf32>
    %386 = arith.mulf %385, %379 : vector<32x12xf32>
    %387 = arith.index_cast %370 : i32 to index
    %388 = memref.load %arg5[%387] : memref<34xf32, #tpu.memory_space<smem>>
    %389 = vector.broadcast %388 : f32 to vector<32x12xf32>
    %390 = arith.mulf %389, %382 : vector<32x12xf32>
    %391 = arith.addf %386, %390 : vector<32x12xf32>
    %c512 = arith.constant 512 : index
    %c0_85 = arith.constant 0 : index
    %392 = vector.load %arg10[%c512, %c0_85] : memref<576x12xf32, #tpu.memory_space<vmem>>, vector<32x12xf32>
    tpu.vector_store %arg10[%c512, %c0_85], %391 {strides = array<i32>} : memref<576x12xf32, #tpu.memory_space<vmem>>, vector<32x12xf32>,
    %c17_i32 = arith.constant 17 : i32
    %393 = arith.addi %1, %c17_i32 : i32
    %394 = arith.index_cast %393 : i32 to index
    %395 = memref.load %arg2[%394] : memref<34xi32, #tpu.memory_space<smem>>
    %396 = arith.index_cast %393 : i32 to index
    %397 = memref.load %arg3[%396] : memref<34xi32, #tpu.memory_space<smem>>
    %398 = tpu.assume_multiple %395, 8 : i32
    %399 = tpu.assume_multiple %397, 8 : i32
    %c0_86 = arith.constant 0 : index
    %400 = arith.index_cast %398 : i32 to index
    %c0_87 = arith.constant 0 : index
    %401 = vector.load %arg6[%c0_86, %400, %c0_87] : memref<1x512x12xf32, #tpu.memory_space<vmem>>, vector<1x32x12xf32>
    %402 = vector.shape_cast %401 : vector<1x32x12xf32> to vector<32x12xf32>
    %c0_88 = arith.constant 0 : index
    %403 = arith.index_cast %399 : i32 to index
    %c0_89 = arith.constant 0 : index
    %404 = vector.load %arg6[%c0_88, %403, %c0_89] : memref<1x512x12xf32, #tpu.memory_space<vmem>>, vector<1x32x12xf32>
    %405 = vector.shape_cast %404 : vector<1x32x12xf32> to vector<32x12xf32>
    %406 = arith.index_cast %393 : i32 to index
    %407 = memref.load %arg4[%406] : memref<34xf32, #tpu.memory_space<smem>>
    %408 = vector.broadcast %407 : f32 to vector<32x12xf32>
    %409 = arith.mulf %408, %402 : vector<32x12xf32>
    %410 = arith.index_cast %393 : i32 to index
    %411 = memref.load %arg5[%410] : memref<34xf32, #tpu.memory_space<smem>>
    %412 = vector.broadcast %411 : f32 to vector<32x12xf32>
    %413 = arith.mulf %412, %405 : vector<32x12xf32>
    %414 = arith.addf %409, %413 : vector<32x12xf32>
    %c544 = arith.constant 544 : index
    %c0_90 = arith.constant 0 : index
    %415 = vector.load %arg10[%c544, %c0_90] : memref<576x12xf32, #tpu.memory_space<vmem>>, vector<32x12xf32>
    tpu.vector_store %arg10[%c544, %c0_90], %414 {strides = array<i32>} : memref<576x12xf32, #tpu.memory_space<vmem>>, vector<32x12xf32>,
    %c0_91 = arith.constant 0 : index
    %c0_92 = arith.constant 0 : index
    %416 = vector.load %arg10[%c0_91, %c0_92] : memref<576x12xf32, #tpu.memory_space<vmem>>, vector<512x12xf32>
    %c0_93 = arith.constant 0 : index
    %c0_94 = arith.constant 0 : index
    %c0_95 = arith.constant 0 : index
    %417 = vector.load %arg7[%c0_93, %c0_94, %c0_95] : memref<3x12x8xf32, #tpu.memory_space<vmem>>, vector<1x12x8xf32>
    %418 = vector.shape_cast %417 : vector<1x12x8xf32> to vector<12x8xf32>
    %cst = arith.constant dense<0.000000e+00> : vector<512x8xf32>
    %419 = tpu.matmul %416, %418, %cst {dimension_numbers = #tpu.dot_dimension_numbers<[1], [0], [0], [1], [0, 0, 1, 1], [], []>} : vector<512x12xf32>, vector<12x8xf32>, vector<512x8xf32> -> vector<512x8xf32>
    %c32_96 = arith.constant 32 : index
    %c0_97 = arith.constant 0 : index
    %420 = vector.load %arg10[%c32_96, %c0_97] : memref<576x12xf32, #tpu.memory_space<vmem>>, vector<512x12xf32>
    %c1 = arith.constant 1 : index
    %c0_98 = arith.constant 0 : index
    %c0_99 = arith.constant 0 : index
    %421 = vector.load %arg7[%c1, %c0_98, %c0_99] : memref<3x12x8xf32, #tpu.memory_space<vmem>>, vector<1x12x8xf32>
    %422 = vector.shape_cast %421 : vector<1x12x8xf32> to vector<12x8xf32>
    %cst_100 = arith.constant dense<0.000000e+00> : vector<512x8xf32>
    %423 = tpu.matmul %420, %422, %cst_100 {dimension_numbers = #tpu.dot_dimension_numbers<[1], [0], [0], [1], [0, 0, 1, 1], [], []>} : vector<512x12xf32>, vector<12x8xf32>, vector<512x8xf32> -> vector<512x8xf32>
    %424 = arith.addf %419, %423 : vector<512x8xf32>
    %c64_101 = arith.constant 64 : index
    %c0_102 = arith.constant 0 : index
    %425 = vector.load %arg10[%c64_101, %c0_102] : memref<576x12xf32, #tpu.memory_space<vmem>>, vector<512x12xf32>
    %c2 = arith.constant 2 : index
    %c0_103 = arith.constant 0 : index
    %c0_104 = arith.constant 0 : index
    %426 = vector.load %arg7[%c2, %c0_103, %c0_104] : memref<3x12x8xf32, #tpu.memory_space<vmem>>, vector<1x12x8xf32>
    %427 = vector.shape_cast %426 : vector<1x12x8xf32> to vector<12x8xf32>
    %cst_105 = arith.constant dense<0.000000e+00> : vector<512x8xf32>
    %428 = tpu.matmul %425, %427, %cst_105 {dimension_numbers = #tpu.dot_dimension_numbers<[1], [0], [0], [1], [0, 0, 1, 1], [], []>} : vector<512x12xf32>, vector<12x8xf32>, vector<512x8xf32> -> vector<512x8xf32>
    %429 = arith.addf %424, %428 : vector<512x8xf32>
    %c0_106 = arith.constant 0 : index
    %c0_107 = arith.constant 0 : index
    %430 = vector.load %arg8[%c0_106, %c0_107] : memref<1x8xf32, #tpu.memory_space<vmem>>, vector<1x8xf32>
    %431 = vector.broadcast %430 : vector<1x8xf32> to vector<512x8xf32>
    %432 = arith.addf %429, %431 : vector<512x8xf32>
    %c0_108 = arith.constant 0 : index
    %c0_109 = arith.constant 0 : index
    %c0_110 = arith.constant 0 : index
    %433 = vector.load %arg9[%c0_108, %c0_109, %c0_110] : memref<1x512x8xf32, #tpu.memory_space<vmem>>, vector<1x512x8xf32>
    %434 = vector.shape_cast %433 : vector<1x512x8xf32> to vector<512x8xf32>
    %435 = vector.shape_cast %432 : vector<512x8xf32> to vector<1x512x8xf32>
    tpu.vector_store %arg9[%c0_108, %c0_109, %c0_110], %435 {strides = array<i32>} : memref<1x512x8xf32, #tpu.memory_space<vmem>>, vector<1x512x8xf32>,
    return
  }
  func.func @transform_0(%arg0: i32, %arg1: i32) -> i32 {
    %c0_i32 = arith.constant 0 : i32
    %c0_i32_0 = arith.constant 0 : i32
    return %c0_i32 : i32
  }
  func.func @transform_1(%arg0: i32, %arg1: i32) -> i32 {
    %c0_i32 = arith.constant 0 : i32
    %c0_i32_0 = arith.constant 0 : i32
    return %c0_i32 : i32
  }
  func.func @transform_2(%arg0: i32, %arg1: i32) -> i32 {
    %c0_i32 = arith.constant 0 : i32
    %c0_i32_0 = arith.constant 0 : i32
    return %c0_i32 : i32
  }
  func.func @transform_3(%arg0: i32, %arg1: i32) -> i32 {
    %c0_i32 = arith.constant 0 : i32
    %c0_i32_0 = arith.constant 0 : i32
    return %c0_i32 : i32
  }
  func.func @transform_4(%arg0: i32, %arg1: i32) -> (i32, i32, i32) {
    %c0_i32 = arith.constant 0 : i32
    %c0_i32_0 = arith.constant 0 : i32
    %c0_i32_1 = arith.constant 0 : i32
    return %arg0, %c0_i32, %c0_i32_0 : i32, i32, i32
  }
  func.func @transform_5(%arg0: i32, %arg1: i32) -> (i32, i32, i32) {
    %c0_i32 = arith.constant 0 : i32
    %c0_i32_0 = arith.constant 0 : i32
    %c0_i32_1 = arith.constant 0 : i32
    %c0_i32_2 = arith.constant 0 : i32
    return %c0_i32, %c0_i32_0, %c0_i32_1 : i32, i32, i32
  }
  func.func @transform_6(%arg0: i32, %arg1: i32) -> (i32, i32) {
    %c0_i32 = arith.constant 0 : i32
    %c0_i32_0 = arith.constant 0 : i32
    %c0_i32_1 = arith.constant 0 : i32
    return %c0_i32, %c0_i32_0 : i32, i32
  }
  func.func @transform_7(%arg0: i32, %arg1: i32) -> (i32, i32, i32) {
    %c0_i32 = arith.constant 0 : i32
    %c0_i32_0 = arith.constant 0 : i32
    return %arg0, %arg1, %c0_i32 : i32, i32, i32
  }
}

</mosaic_0001>

<bundles_post_ra>
// kernel: upsample2d_forward.1
= control target key start
LH: loop header
LB: loop body
LE: loop exit
PB: predicated region body
PF: predicated region fallthrough
CT: control target
= control target key end

     0   :  { %s4420_s0 = inlined_call_operand.vmem [shape: s32[34], index: 0, kind: input, shape index: {}]   ;;  %s4421_s1 = inlined_call_operand.vmem [shape: s32[34], index: 1, kind: input, shape index: {}]   ;;  %s4422_s2 = inlined_call_operand.vmem [shape: f32[34], index: 2, kind: input, shape index: {}]   ;;  %s4423_s3 = inlined_call_operand.vmem [shape: f32[34], index: 3, kind: input, shape index: {}]   ;;  %s4424_s4 = inlined_call_operand.vmem [shape: f32[2,512,12], index: 4, kind: input, shape index: {}]   ;;  %s4425_s5 = inlined_call_operand.vmem [shape: f32[3,12,8], index: 5, kind: input, shape index: {}]   ;;  %s4426_s6 = inlined_call_operand.vmem [shape: f32[1,8], index: 6, kind: input, shape index: {}]   ;;  %s4427_s7 = inlined_call_operand.vmem [shape: f32[2,1024,8], index: 7, kind: output, shape index: {}]  }
   0x1   :  { %4428 = sst [smem:[#allocation13_spill]] %s4420_s0 }
   0x2   :  { %4429 = sst [smem:[#allocation14_spill]] %s4421_s1 }
   0x3   :  { %12 = vsyncpa [#allocation4], 0 }
   0x4   :  { %13 = vsyncpa [#allocation6], 0 }
   0x5   :  { %14 = vsyncpa [#allocation9], 0  ;;  %s2950_s24 = smov 0   ;;  %s2952_s25 = smov 0  }
   0x6   :  { %s2954_s26 = smov 0   ;;  %s2956_s27 = smov 0  }
   0x7   :  { %s2958_s28 = smov 0  }
   0x8 LB: > { %s4430_s1 = sld [smem:[#allocation14_spill]]  ;;  %s2480_s9 = sadd.s32 4294967295, %s2904_s28   ;;  %s2904_s28 = sphi %s2958_s28, %s20_s28   ;;  %s2900_s27 = sphi %s2956_s27, %s4438_s27   ;;  %s2896_s26 = sphi %s2954_s26, %s4437_s26   ;;  %s2892_s25 = sphi %s2952_s25, %s4436_s25   ;;  %s2888_s24 = sphi %s2950_s24, %s4435_s24  }
   0x9   : > { %p2482_p0 = scmp.ge.s32.totalorder %s2904_s28, 1  ;;  %p217_p1 = scmp.lt.s32.totalorder %s2904_s28, 5 }
   0xa   : > { %p2981_p2 = scmp.eq.s32.totalorder %s2480_s9, 0  ;;  %s29_s13 = sadd.s32 1, %s2896_s26 }
   0xb   : > { %p2985_p3 = pnand %p2482_p0, %p217_p1  ;;  %p30_p6 = scmp.ge.s32.totalorder %s29_s13, 2 }
   0xc   : > { %s2906_s14 = smov [#allocation5]   ;;  %s32_s15 = sadd.s32 1, %s2900_s27 }
   0xd   : > { %p2723_p4 = pneg %p2985_p3  ;;  %s4440_s13 = smov (%p30_p6, %s29_s13), 0 }
   0xe   : > { %s239_s8 = sshll.u32 %s4430_s1, 4  ;;  %s4434_s0 = sld [smem:[#allocation13_spill]]  ;;  %s240_s8 = int_to_ptr.vmem [resolvable:$true] %s239_s8 }
   0xf   : > { %p2993_p5 = pnand %p2981_p2, %p2723_p4  ;;  %s4442_s15 = smov (!%p30_p6, %s32_s15), %s2900_s27 }
  0x10   : > { %p34_p7 = scmp.ge.s32.totalorder %s4442_s15, 2  ;;  %s249_s21 = sshll.u32 %s4422_s2, 4  ;;  %s250_s21 = int_to_ptr.vmem [resolvable:$true] %s249_s21 }
  0x11   : > { %2729 = dma.vmem_to_smem (!%p2993_p5), %s240_s8, 16, %s2906_s14, [#allocation6]  }
  0x12   : > { %s2907_s22 = smov [#allocation3]   ;;  %s4444_s15 = smov (%p34_p7, %s4442_s15), 0 }
  0x13   : > { %s2908_s23 = smov [#allocation7]   ;;  %s259_s8 = sshll.u32 %s4423_s3, 4  ;;  %s260_s8 = int_to_ptr.vmem [resolvable:$true] %s259_s8 }
  0x14   : > { %s229_s18 = sshll.u32 %s4434_s0, 4  ;;  %s2909_s9 = smov [#allocation8]   ;;  %s230_s18 = int_to_ptr.vmem [resolvable:$true] %s229_s18 }
  0x15   : > { %2726 = dma.vmem_to_smem (!%p2993_p5), %s230_s18, 16, %s2907_s22, [#allocation4]  }
  0x16   : > { %2732 = dma.vmem_to_smem (!%p2993_p5), %s250_s21, 16, %s2908_s23, [#allocation6]  }
  0x17   : > { %2735 = dma.vmem_to_smem (!%p2993_p5), %s260_s8, 16, %s2909_s9, [#allocation9]  }
  0x18   : > { %286 = sbr.rel (%p2985_p3) target bundleno = 582 (0x246), region = 48 }
  0x1d   : > { %2875 = dma.done.wait (%p2981_p2), [#allocation4], 16  }
  0x1e   : > { %2877 = vsyncadd (%p2981_p2), [#allocation4], 4294967280 }
  0x1f   : > { %2879 = dma.done.wait (%p2981_p2), [#allocation6], 32  }
  0x20   : > { %2881 = vsyncadd (%p2981_p2), [#allocation6], 4294967264 }
  0x21   : > { %2883 = dma.done.wait (%p2981_p2), [#allocation9], 16  }
  0x22   : > { %2885 = vsyncadd (%p2981_p2), [#allocation9], 4294967280 }
  0x23   : > { %308 = sfence }
  0x24   : > { %v2500_v0 = vld [vmem:[%s4425_s5 + $0x18] sm:$0xf]  ;;  %vm1214_vm0 = vcmask 1043456   ;;  %v3041_v1 = vld [vmem:[%s4425_s5 + $0x28] sm:$0xf]  ;;  %v2499_v2 = vld [vmem:[%s4425_s5 + $0x10] sm:$0xff] }
  0x25   : > { %2701 = vmatpush.msk.msra.mxu3 %vm1214_vm0, %v2500_v0  ;;  %2633 = vmatpush.msk.msra.mxu2 %vm1214_vm0, %v3041_v1  ;;  %v3052_v3 = vld [vmem:[%s4425_s5 + $0x20] sm:$0xff]  ;;  %p339_p8 = scmp.lt.s32.totalorder %s2892_s25, 1  ;;  %v1014_v4 = vld [vmem:[%s4425_s5 + $0x8] sm:$0xf]  ;;  %s3065_s29 = sshll.u32 %s2888_s24, 4  ;;  %vm383_vm1 = vcmask 97280  }
  0x26   : > { %2501 = vmatpush.msk.msra.mxu0 %vm1214_vm0, %v2500_v0  ;;  %2566 = vmatpush.msk.msra.mxu1 %vm1214_vm0, %v1014_v4  ;;  %v1013_v5 = vld [vmem:[%s4425_s5] sm:$0xff]  ;;  %s784_s30 = sadd.s32 13, %s3065_s29  ;;  %s421_s12 = sadd.s32 2, %s3065_s29  ;;  %vm2254_vm2 = vcmask 64512  }
  0x27   : > { %2702 = vmatpush.msra.mxu3 %v2499_v2  ;;  %1928 = vmatpush.msra.mxu2 %v3052_v3  ;;  %s4446_s25 = smov (!%p339_p8, %s2892_s25), 1  ;;  %s785_s9 = sld [smem:[#allocation3 + %s784_s30]] }
  0x28   : > { %1233 = vmatpush.msra.mxu0 %v2499_v2  ;;  %1457 = vmatpush.msra.mxu1 %v1013_v5  ;;  %s2700_s8 = sshll.u32 %s4446_s25, 9  ;;  %s786_s11 = sld [smem:[#allocation5 + %s784_s30]] }
  0x29   : > { %2703 = vmatpush.msk.msrb.mxu3 %vm1214_vm0, %v1014_v4  ;;  %s797_s14 = sld [smem:[#allocation7 + %s784_s30]]  ;;  %s3077_s18 = scalar_lea.vmem %s4424_s4, %s2700_s8 }
  0x2a   : > { %s803_s10 = sld [smem:[#allocation8 + %s784_s30]]  ;;  %s3082_s21 = sadd.s32 1, %s3065_s29 }
  0x2b   : > { %2704 = vmatpush.msrb.mxu3 %v1013_v5  ;;  %s422_s19 = sld [smem:[#allocation3 + %s421_s12]]  ;;  %s3114_s17 = sadd.s32 14, %s3065_s29 }
  0x2c   : > { %s3079_s20 = sld [smem:[#allocation5 + %s421_s12]] }
  0x2d   : > { %s787_s22 = scalar_lea.vmem %s3077_s18, %s785_s9  ;;  %s3085_s23 = sld [smem:[#allocation7 + %s421_s12]] }
  0x2e   : > { %v788_v6 = vld [vmem:[%s787_s22] sm:$0xff]  ;;  %s792_s0 = scalar_lea.vmem %s3077_s18, %s786_s11  ;;  %s3088_s1 = sld [smem:[#allocation8 + %s421_s12]]  ;;  %v789_v7 = vld [vmem:[%s787_s22 + $0x8] sm:$0xff]  ;;  %v790_v8 = vld [vmem:[%s787_s22 + $0x10] sm:$0xff] }
  0x2f   : > { %v793_v9 = vld [vmem:[%s792_s0] sm:$0xff]  ;;  %v798_v10 = vstv %s797_s14  ;;  %s3091_s30 = sld [smem:[#allocation3 + %s3082_s21]]  ;;  %v794_v11 = vld [vmem:[%s792_s0 + $0x8] sm:$0xff]  ;;  %v795_v12 = vld [vmem:[%s792_s0 + $0x10] sm:$0xff] }
  0x30   : > { %v799_v13 = vmul.f32 %v798_v10, %v788_v6  ;;  %v804_v14 = vstv %s803_s10  ;;  %s3094_s8 = sld [smem:[#allocation5 + %s3082_s21]]  ;;  %v800_v15 = vmul.f32 %v798_v10, %v789_v7  ;;  %v801_v16 = vmul.f32 %v798_v10, %v790_v8  ;;  %v791_v17 = vld [vmem:[%s787_s22 + $0x18] sm:$0xff] }
  0x31   : > { %v796_v18 = vld [vmem:[%s792_s0 + $0x18] sm:$0xff]  ;;  %v805_v19 = vmul.f32 %v804_v14, %v793_v9  ;;  %s424_s9 = scalar_lea.vmem %s3077_s18, %s422_s19  ;;  %s3098_s11 = sld [smem:[#allocation7 + %s3082_s21]]  ;;  %v806_v20 = vmul.f32 %v804_v14, %v794_v11  ;;  %v807_v21 = vmul.f32 %v804_v14, %v795_v12  ;;  %v802_v22 = vmul.f32 %v798_v10, %v791_v17 }
  0x32   : > { %v425_v23 = vld [vmem:[%s424_s9] sm:$0xff]  ;;  %s429_s12 = scalar_lea.vmem %s3077_s18, %s3079_s20  ;;  %s3103_s14 = sld [smem:[#allocation8 + %s3082_s21]]  ;;  %v426_v24 = vld [vmem:[%s424_s9 + $0x8] sm:$0xff]  ;;  %v427_v25 = vld [vmem:[%s424_s9 + $0x10] sm:$0xff]  ;;  %v808_v26 = vmul.f32 %v804_v14, %v796_v18 }
  0x33   : > { %v809_v27 = vadd.f32 %v805_v19, %v799_v13  ;;  %v430_v28 = vld [vmem:[%s429_s12] sm:$0xff]  ;;  %v435_v29 = vstv %s3085_s23  ;;  %s3107_s0 = sld [smem:[#allocation3 + %s3065_s29]]  ;;  %v810_v30 = vadd.f32 %v806_v20, %v800_v15  ;;  %v431_v31 = vld [vmem:[%s429_s12 + $0x8] sm:$0xff]  ;;  %v811_v32 = vadd.f32 %v807_v21, %v801_v16  ;;  %v432_v33 = vld [vmem:[%s429_s12 + $0x10] sm:$0xff]  ;;  %s3139_s23 = sadd.s32 3, %s3065_s29 }
  0x34   : > { %v436_v34 = vmul.f32 %v435_v29, %v425_v23  ;;  %v441_v35 = vstv %s3088_s1  ;;  %s3111_s16 = sld [smem:[#allocation5 + %s3065_s29]]  ;;  %v437_v36 = vmul.f32 %v435_v29, %v426_v24  ;;  %v438_v37 = vmul.f32 %v435_v29, %v427_v25  ;;  %v428_v38 = vld [vmem:[%s424_s9 + $0x18] sm:$0xff] }
  0x35   : > { %v433_v39 = vld [vmem:[%s429_s12 + $0x18] sm:$0xff]  ;;  %813 = vst.msk [vmem:[#allocation2 + $0x1a0] sm:$0xff] %vm383_vm1, %v809_v27  ;;  %v442_v40 = vmul.f32 %v441_v35, %v430_v28  ;;  %s391_s10 = scalar_lea.vmem %s3077_s18, %s3091_s30  ;;  %s3120_s19 = sld [smem:[#allocation7 + %s3065_s29]]  ;;  %v443_v41 = vmul.f32 %v441_v35, %v431_v31  ;;  %v444_v42 = vmul.f32 %v441_v35, %v432_v33  ;;  %v812_v43 = vadd.f32 %v808_v26, %v802_v22 }
  0x36   : > { %v392_v44 = vld [vmem:[%s391_s10] sm:$0xff]  ;;  %s396_s1 = scalar_lea.vmem %s3077_s18, %s3094_s8  ;;  %s3125_s20 = sld [smem:[#allocation8 + %s3065_s29]]  ;;  %814 = vst.msk [vmem:[#allocation2 + $0x1a8] sm:$0xff] %vm383_vm1, %v810_v30  ;;  %v393_v45 = vld [vmem:[%s391_s10 + $0x8] sm:$0xff]  ;;  %v394_v46 = vld [vmem:[%s391_s10 + $0x10] sm:$0xff]  ;;  %v439_v47 = vmul.f32 %v435_v29, %v428_v38  ;;  %v445_v48 = vmul.f32 %v441_v35, %v433_v39 }
  0x37   : > { %v446_v49 = vadd.f32 %v442_v40, %v436_v34  ;;  %v397_v50 = vld [vmem:[%s396_s1] sm:$0xff]  ;;  %v402_v51 = vstv %s3098_s11  ;;  %v447_v52 = vadd.f32 %v443_v41, %v437_v36  ;;  %v398_v53 = vld [vmem:[%s396_s1 + $0x8] sm:$0xff]  ;;  %815 = vst.msk [vmem:[#allocation2 + $0x1b0] sm:$0xff] %vm383_vm1, %v811_v32  ;;  %v448_v54 = vadd.f32 %v444_v42, %v438_v37  ;;  %v399_v55 = vld [vmem:[%s396_s1 + $0x10] sm:$0xff]  ;;  %s3131_s21 = sld [smem:[#allocation3 + %s3114_s17]] }
  0x38   : > { %v403_v56 = vmul.f32 %v402_v51, %v392_v44  ;;  %v408_v57 = vstv %s3103_s14  ;;  %v404_v58 = vmul.f32 %v402_v51, %v393_v45  ;;  %v405_v59 = vmul.f32 %v402_v51, %v394_v46  ;;  %816 = vst.msk [vmem:[#allocation2 + $0x1b8] sm:$0xff] %vm383_vm1, %v812_v43  ;;  %v395_v60 = vld [vmem:[%s391_s10 + $0x18] sm:$0xff]  ;;  %s3136_s22 = sld [smem:[#allocation5 + %s3114_s17]] }
  0x39   : > { %v400_v61 = vld [vmem:[%s396_s1 + $0x18] sm:$0xff]  ;;  %450 = vst.msk [vmem:[#allocation2 + $0x40] sm:$0xff] %vm383_vm1, %v446_v49  ;;  %v409_v62 = vmul.f32 %v408_v57, %v397_v50  ;;  %s357_s30 = scalar_lea.vmem %s3077_s18, %s3107_s0  ;;  %v410_v63 = vmul.f32 %v408_v57, %v398_v53  ;;  %v411_v0 = vmul.f32 %v408_v57, %v399_v55  ;;  %v449_v2 = vadd.f32 %v445_v48, %v439_v47  ;;  %s3145_s8 = sld [smem:[#allocation7 + %s3114_s17]] }
  0x3a   : > { %v358_v4 = vld [vmem:[%s357_s30] sm:$0xff]  ;;  %s362_s9 = scalar_lea.vmem %s3077_s18, %s3111_s16  ;;  %451 = vst.msk [vmem:[#allocation2 + $0x48] sm:$0xff] %vm383_vm1, %v447_v52  ;;  %v359_v5 = vld [vmem:[%s357_s30 + $0x8] sm:$0xff]  ;;  %v360_v6 = vld [vmem:[%s357_s30 + $0x10] sm:$0xff]  ;;  %v406_v7 = vmul.f32 %v402_v51, %v395_v60  ;;  %v412_v8 = vmul.f32 %v408_v57, %v400_v61  ;;  %s3151_s11 = sld [smem:[#allocation8 + %s3114_s17]] }
  0x3b   : > { %v413_v9 = vadd.f32 %v409_v62, %v403_v56  ;;  %v363_v10 = vld [vmem:[%s362_s9] sm:$0xff]  ;;  %v368_v11 = vstv %s3120_s19  ;;  %v414_v12 = vadd.f32 %v410_v63, %v404_v58  ;;  %v364_v13 = vld [vmem:[%s362_s9 + $0x8] sm:$0xff]  ;;  %452 = vst.msk [vmem:[#allocation2 + $0x50] sm:$0xff] %vm383_vm1, %v448_v54  ;;  %v415_v14 = vadd.f32 %v411_v0, %v405_v59  ;;  %v365_v15 = vld [vmem:[%s362_s9 + $0x10] sm:$0xff]  ;;  %s3156_s12 = sld [smem:[#allocation3 + %s3139_s23]] }
  0x3c   : > { %v3158_v16 = vld [vmem:[#allocation2 + $0x1a0] sm:$0xff]  ;;  %v369_v17 = vmul.f32 %v368_v11, %v358_v4  ;;  %v374_v18 = vstv %s3125_s20  ;;  %v370_v19 = vmul.f32 %v368_v11, %v359_v5  ;;  %v371_v20 = vmul.f32 %v368_v11, %v360_v6  ;;  %453 = vst.msk [vmem:[#allocation2 + $0x58] sm:$0xff] %vm383_vm1, %v449_v2  ;;  %v361_v21 = vld [vmem:[%s357_s30 + $0x18] sm:$0xff]  ;;  %s3163_s14 = sld [smem:[#allocation5 + %s3139_s23]]  ;;  %s3237_s20 = sadd.s32 15, %s3065_s29 }
  0x3d   : > { %v366_v22 = vld [vmem:[%s362_s9 + $0x18] sm:$0xff]  ;;  %2550 = vmatmul.msk.f32.vlgmr.msra.gmra.mxu3 %vm383_vm1, %v3158_v16  ;;  %417 = vst.msk [vmem:[#allocation2 + $0x20] sm:$0xff] %vm383_vm1, %v413_v9  ;;  %v375_v23 = vmul.f32 %v374_v18, %v363_v10  ;;  %v376_v24 = vmul.f32 %v374_v18, %v364_v13  ;;  %v377_v25 = vmul.f32 %v374_v18, %v365_v15  ;;  %s3170_s0 = scalar_lea.vmem %s3077_s18, %s3131_s21  ;;  %s3173_s16 = sld [smem:[#allocation7 + %s3139_s23]]  ;;  %v3211_v43 = vld [vmem:[#allocation2 + $0x1a8] sm:$0xff] }
  0x3e   : > { %418 = vst.msk [vmem:[#allocation2 + $0x28] sm:$0xff] %vm383_vm1, %v414_v12  ;;  %v416_v26 = vadd.f32 %v412_v8, %v406_v7  ;;  %v372_v27 = vmul.f32 %v368_v11, %v361_v21  ;;  %v378_v28 = vmul.f32 %v374_v18, %v366_v22  ;;  %v821_v29 = vld [vmem:[%s3170_s0] sm:$0xff]  ;;  %s3179_s17 = scalar_lea.vmem %s3077_s18, %s3136_s22  ;;  %s3182_s10 = sld [smem:[#allocation8 + %s3139_s23]]  ;;  %2705 = vmatpush.msk.msra.mxu3 %vm1214_vm0, %v3041_v1  ;;  %v822_v38 = vld [vmem:[%s3170_s0 + $0x8] sm:$0xff]  ;;  %v823_v60 = vld [vmem:[%s3170_s0 + $0x10] sm:$0xff] }
  0x3f   : > { %v379_v30 = vadd.f32 %v375_v23, %v369_v17  ;;  %v380_v31 = vadd.f32 %v376_v24, %v370_v19  ;;  %419 = vst.msk [vmem:[#allocation2 + $0x30] sm:$0xff] %vm383_vm1, %v415_v14  ;;  %v381_v32 = vadd.f32 %v377_v25, %v371_v20  ;;  %v826_v33 = vld [vmem:[%s3179_s17] sm:$0xff]  ;;  %v3189_v34 = vstv %s3145_s8  ;;  %v827_v39 = vld [vmem:[%s3179_s17 + $0x8] sm:$0xff]  ;;  %v828_v61 = vld [vmem:[%s3179_s17 + $0x10] sm:$0xff]  ;;  %s3255_s21 = sld [smem:[#allocation3 + %s3237_s20]]  ;;  %s487_s22 = sadd.s32 4, %s3065_s29 }
  0x40   : > { %v3191_v35 = vld [vmem:[#allocation2 + $0x40] sm:$0xff]  ;;  %420 = vst.msk [vmem:[#allocation2 + $0x38] sm:$0xff] %vm383_vm1, %v416_v26  ;;  %v382_v36 = vadd.f32 %v378_v28, %v372_v27  ;;  %v832_v37 = vmul.f32 %v3189_v34, %v821_v29  ;;  %v3196_v1 = vstv %s3151_s11  ;;  %2706 = vmatpush.msra.mxu3 %v3052_v3  ;;  %v833_v41 = vmul.f32 %v3189_v34, %v822_v38  ;;  %v3251_v5 = vld [vmem:[#allocation2 + $0x1b0] sm:$0xff]  ;;  %s3259_s23 = sld [smem:[#allocation5 + %s3237_s20]]  ;;  %v824_v12 = vld [vmem:[%s3170_s0 + $0x18] sm:$0xff] }
  0x41   : > { %2634 = vmatmul.msk.f32.vlgmr.msra.gmra.mxu2 %vm383_vm1, %v3191_v35  ;;  %384 = vst.msk [vmem:[#allocation2] sm:$0xff] %vm383_vm1, %v379_v30  ;;  %v838_v40 = vmul.f32 %v3196_v1, %v826_v33  ;;  %s3207_s19 = scalar_lea.vmem %s3077_s18, %s3156_s12  ;;  %v839_v42 = vmul.f32 %v3196_v1, %v827_v39  ;;  %v3233_v56 = vld [vmem:[#allocation2 + $0x48] sm:$0xff]  ;;  %v834_v62 = vmul.f32 %v3189_v34, %v823_v60  ;;  %s3262_s30 = sld [smem:[#allocation7 + %s3237_s20]]  ;;  %v829_v13 = vld [vmem:[%s3179_s17 + $0x18] sm:$0xff] }
  0x42   : > { %385 = vst.msk [vmem:[#allocation2 + $0x8] sm:$0xff] %vm383_vm1, %v380_v31  ;;  %v458_v3 = vld [vmem:[%s3207_s19] sm:$0xff]  ;;  %s3217_s1 = scalar_lea.vmem %s3077_s18, %s3163_s14  ;;  %v459_v44 = vld [vmem:[%s3207_s19 + $0x8] sm:$0xff]  ;;  %v840_v63 = vmul.f32 %v3196_v1, %v828_v61  ;;  %v460_v0 = vld [vmem:[%s3207_s19 + $0x10] sm:$0xff]  ;;  %s3269_s8 = sld [smem:[#allocation3 + %s487_s22]]  ;;  %v835_v14 = vmul.f32 %v3189_v34, %v824_v12  ;;  %v841_v15 = vmul.f32 %v3196_v1, %v829_v13 }
  0x43   : > { %386 = vst.msk [vmem:[#allocation2 + $0x10] sm:$0xff] %vm383_vm1, %v381_v32  ;;  %v842_v45 = vadd.f32 %v838_v40, %v832_v37  ;;  %v463_v46 = vld [vmem:[%s3217_s1] sm:$0xff]  ;;  %v468_v47 = vstv %s3173_s16  ;;  %v843_v48 = vadd.f32 %v839_v42, %v833_v41  ;;  %v464_v49 = vld [vmem:[%s3217_s1 + $0x8] sm:$0xff]  ;;  %v465_v2 = vld [vmem:[%s3217_s1 + $0x10] sm:$0xff]  ;;  %s489_s9 = sld [smem:[#allocation5 + %s487_s22]] }
  0x44   : > { %v3224_v50 = vld [vmem:[#allocation2 + $0x20] sm:$0xff]  ;;  %387 = vst.msk [vmem:[#allocation2 + $0x18] sm:$0xff] %vm383_vm1, %v382_v36  ;;  %v469_v51 = vmul.f32 %v468_v47, %v458_v3  ;;  %v474_v52 = vstv %s3182_s10  ;;  %v470_v53 = vmul.f32 %v468_v47, %v459_v44  ;;  %v471_v6 = vmul.f32 %v468_v47, %v460_v0  ;;  %v3271_v11 = vld [vmem:[#allocation2 + $0x50] sm:$0xff]  ;;  %s3275_s11 = sld [smem:[#allocation8 + %s3237_s20]]  ;;  %v461_v17 = vld [vmem:[%s3207_s19 + $0x18] sm:$0xff]  ;;  %s883_s19 = sadd.s32 16, %s3065_s29 }
  0x45   : > { %2502 = vmatmul.msk.f32.vlgmr.msra.gmra.mxu0 %vm383_vm1, %v3224_v50  ;;  %2551 = vmatmul.msk.f32.gmra.mxu3 %vm383_vm1, %v3211_v43  ;;  %846 = vst.msk [vmem:[#allocation2 + $0x1c0] sm:$0xff] %vm383_vm1, %v842_v45  ;;  %v475_v54 = vmul.f32 %v474_v52, %v463_v46  ;;  %v476_v55 = vmul.f32 %v474_v52, %v464_v49  ;;  %v3249_v4 = vld [vmem:[#allocation2 + $0x28] sm:$0xff]  ;;  %s3279_s12 = sld [smem:[#allocation7 + %s487_s22]]  ;;  %v466_v18 = vld [vmem:[%s3217_s1 + $0x18] sm:$0xff]  ;;  %s3299_s0 = scalar_lea.vmem %s3077_s18, %s3255_s21 }
  0x46   : > { %847 = vst.msk [vmem:[#allocation2 + $0x1c8] sm:$0xff] %vm383_vm1, %v843_v48  ;;  %v477_v7 = vmul.f32 %v474_v52, %v465_v2  ;;  %v844_v8 = vadd.f32 %v840_v63, %v834_v62  ;;  %s506_s14 = sld [smem:[#allocation8 + %s487_s22]]  ;;  %v3288_v19 = vld [vmem:[#allocation2 + $0x30] sm:$0xff]  ;;  %v3290_v20 = vld [vmem:[#allocation2 + $0x1b8] sm:$0xff]  ;;  %v472_v21 = vmul.f32 %v468_v47, %v461_v17  ;;  %v478_v22 = vmul.f32 %v474_v52, %v466_v18  ;;  %s3303_s16 = scalar_lea.vmem %s3077_s18, %s3259_s23  ;;  %v854_v27 = vld [vmem:[%s3299_s0] sm:$0xff] }
  0x47   : > { %v479_v57 = vadd.f32 %v475_v54, %v469_v51  ;;  %v480_v58 = vadd.f32 %v476_v55, %v470_v53  ;;  %v845_v23 = vadd.f32 %v841_v15, %v835_v14  ;;  %v3305_v26 = vld [vmem:[#allocation2 + $0x58] sm:$0xff]  ;;  %v859_v28 = vld [vmem:[%s3303_s16] sm:$0xff]  ;;  %v3318_v29 = vstv %s3262_s30  ;;  %v855_v45 = vld [vmem:[%s3299_s0 + $0x8] sm:$0xff]  ;;  %s3385_s1 = sld [smem:[#allocation3 + %s883_s19]]  ;;  %s520_s20 = sadd.s32 5, %s3065_s29 }
  0x48   : > { %v949_v59 = vld [vmem:[#allocation2] sm:$0xff]  ;;  %v481_v9 = vadd.f32 %v477_v7, %v471_v6  ;;  %848 = vst.msk [vmem:[#allocation2 + $0x1d0] sm:$0xff] %vm383_vm1, %v844_v8  ;;  %v482_v24 = vadd.f32 %v478_v22, %v472_v21  ;;  %s3310_s17 = scalar_lea.vmem %s3077_s18, %s3269_s8  ;;  %v865_v31 = vmul.f32 %v3318_v29, %v854_v27  ;;  %v3335_v1 = vld [vmem:[#allocation2 + $0x38] sm:$0xff]  ;;  %v860_v46 = vld [vmem:[%s3303_s16 + $0x8] sm:$0xff]  ;;  %v866_v48 = vmul.f32 %v3318_v29, %v855_v45  ;;  %s3388_s21 = sld [smem:[#allocation5 + %s883_s19]] }
  0x49   : > { %2567 = vmatmul.msk.f32.vlgmr.msra.gmra.mxu1 %vm383_vm1, %v949_v59  ;;  %2635 = vmatmul.msk.f32.gmra.mxu2 %vm383_vm1, %v3233_v56  ;;  %483 = vst.msk [vmem:[#allocation2 + $0x60] sm:$0xff] %vm383_vm1, %v479_v57  ;;  %v950_v10 = vld [vmem:[#allocation2 + $0x8] sm:$0xff]  ;;  %s3313_s10 = scalar_lea.vmem %s3077_s18, %s489_s9  ;;  %v491_v33 = vld [vmem:[%s3310_s17] sm:$0xff]  ;;  %v856_v59 = vld [vmem:[%s3299_s0 + $0x10] sm:$0xff]  ;;  %s3390_s22 = sld [smem:[#allocation7 + %s883_s19]] }
  0x4a   : > { %484 = vst.msk [vmem:[#allocation2 + $0x68] sm:$0xff] %vm383_vm1, %v480_v58  ;;  %v951_v25 = vld [vmem:[#allocation2 + $0x10] sm:$0xff]  ;;  %v3321_v30 = vstv %s3275_s11  ;;  %v496_v34 = vld [vmem:[%s3313_s10] sm:$0xff]  ;;  %v492_v47 = vld [vmem:[%s3310_s17 + $0x8] sm:$0xff]  ;;  %v867_v62 = vmul.f32 %v3318_v29, %v856_v59  ;;  %s521_s23 = sld [smem:[#allocation3 + %s520_s20]] }
  0x4b   : > { %485 = vst.msk [vmem:[#allocation2 + $0x70] sm:$0xff] %vm383_vm1, %v481_v9  ;;  %v871_v32 = vmul.f32 %v3321_v30, %v859_v28  ;;  %v3331_v36 = vstv %s3279_s12  ;;  %v952_v3 = vld [vmem:[#allocation2 + $0x18] sm:$0xff]  ;;  %v872_v49 = vmul.f32 %v3321_v30, %v860_v46  ;;  %v497_v51 = vld [vmem:[%s3313_s10 + $0x8] sm:$0xff]  ;;  %v861_v60 = vld [vmem:[%s3303_s16 + $0x10] sm:$0xff]  ;;  %s522_s30 = sld [smem:[#allocation5 + %s520_s20]] }
  0x4c   : > { %849 = vst.msk [vmem:[#allocation2 + $0x1d8] sm:$0xff] %vm383_vm1, %v845_v23  ;;  %v3333_v37 = vstv %s506_s14  ;;  %v3337_v38 = vld [vmem:[#allocation2 + $0x1c0] sm:$0xff]  ;;  %v502_v39 = vmul.f32 %v3331_v36, %v491_v33  ;;  %v503_v52 = vmul.f32 %v3331_v36, %v492_v47  ;;  %v493_v61 = vld [vmem:[%s3310_s17 + $0x10] sm:$0xff]  ;;  %v873_v63 = vmul.f32 %v3321_v30, %v861_v60  ;;  %s902_s8 = sld [smem:[#allocation8 + %s883_s19]]  ;;  %v862_v12 = vld [vmem:[%s3303_s16 + $0x18] sm:$0xff]  ;;  %s553_s19 = sadd.s32 6, %s3065_s29 }
  0x4d   : > { %2503 = vmatmul.msk.f32.gmra.mxu0 %vm383_vm1, %v3249_v4  ;;  %2552 = vmatmul.msk.f32.gmra.mxu3 %vm383_vm1, %v3251_v5  ;;  %486 = vst.msk [vmem:[#allocation2 + $0x78] sm:$0xff] %vm383_vm1, %v482_v24  ;;  %v508_v40 = vmul.f32 %v3333_v37, %v496_v34  ;;  %v875_v41 = vadd.f32 %v871_v32, %v865_v31  ;;  %v3359_v53 = vld [vmem:[#allocation2 + $0x1c8] sm:$0xff]  ;;  %v498_v0 = vld [vmem:[%s3313_s10 + $0x10] sm:$0xff]  ;;  %v494_v13 = vld [vmem:[%s3310_s17 + $0x18] sm:$0xff]  ;;  %s3403_s9 = sld [smem:[#allocation7 + %s520_s20]]  ;;  %s3423_s12 = scalar_lea.vmem %s3077_s18, %s3385_s1 }
  0x4e   : > { %v509_v54 = vmul.f32 %v3333_v37, %v497_v51  ;;  %v876_v55 = vadd.f32 %v872_v49, %v866_v48  ;;  %v504_v2 = vmul.f32 %v3331_v36, %v493_v61  ;;  %v510_v7 = vmul.f32 %v3333_v37, %v498_v0  ;;  %v499_v17 = vld [vmem:[%s3313_s10 + $0x18] sm:$0xff]  ;;  %s539_s11 = sld [smem:[#allocation8 + %s520_s20]]  ;;  %s3427_s14 = scalar_lea.vmem %s3077_s18, %s3388_s21  ;;  %v889_v59 = vld [vmem:[%s3423_s12 + $0x10] sm:$0xff] }
  0x4f   : > { %v512_v42 = vadd.f32 %v508_v40, %v502_v39  ;;  %879 = vst.msk [vmem:[#allocation2 + $0x1e0] sm:$0xff] %vm383_vm1, %v875_v41  ;;  %v3382_v6 = vld [vmem:[#allocation2 + $0x1d0] sm:$0xff]  ;;  %v874_v15 = vmul.f32 %v3321_v30, %v862_v12  ;;  %v505_v18 = vmul.f32 %v3331_v36, %v494_v13  ;;  %v511_v22 = vmul.f32 %v3333_v37, %v499_v17  ;;  %v892_v27 = vld [vmem:[%s3427_s14] sm:$0xff]  ;;  %v893_v45 = vld [vmem:[%s3427_s14 + $0x8] sm:$0xff]  ;;  %s751_s17 = sadd.s32 12, %s3065_s29  ;;  %s554_s21 = sld [smem:[#allocation3 + %s553_s19]] }
  0x50   : > { %v3346_v44 = vld [vmem:[#allocation2 + $0x60] sm:$0xff]  ;;  %v513_v57 = vadd.f32 %v509_v54, %v503_v52  ;;  %880 = vst.msk [vmem:[#allocation2 + $0x1e8] sm:$0xff] %vm383_vm1, %v876_v55  ;;  %v514_v8 = vadd.f32 %v510_v7, %v504_v2  ;;  %v3441_v28 = vstv %s3390_s22  ;;  %v894_v60 = vld [vmem:[%s3427_s14 + $0x10] sm:$0xff]  ;;  %s3507_s10 = sld [smem:[#allocation3 + %s751_s17]]  ;;  %v890_v12 = vld [vmem:[%s3423_s12 + $0x18] sm:$0xff] }
  0x51   : > { %2568 = vmatmul.msk.f32.gmra.mxu1 %vm383_vm1, %v950_v10  ;;  %2636 = vmatmul.msk.f32.gmra.mxu2 %vm383_vm1, %v3271_v11  ;;  %516 = vst.msk [vmem:[#allocation2 + $0x80] sm:$0xff] %vm383_vm1, %v512_v42  ;;  %v3367_v58 = vld [vmem:[#allocation2 + $0x68] sm:$0xff]  ;;  %v857_v10 = vld [vmem:[%s3299_s0 + $0x18] sm:$0xff]  ;;  %s3433_s0 = scalar_lea.vmem %s3077_s18, %s521_s23  ;;  %s3436_s16 = scalar_lea.vmem %s3077_s18, %s522_s30 }
  0x52   : > { %517 = vst.msk [vmem:[#allocation2 + $0x88] sm:$0xff] %vm383_vm1, %v513_v57  ;;  %v3397_v9 = vld [vmem:[#allocation2 + $0x70] sm:$0xff]  ;;  %v868_v14 = vmul.f32 %v3318_v29, %v857_v10  ;;  %v3443_v29 = vstv %s902_s8  ;;  %v524_v32 = vld [vmem:[%s3433_s0] sm:$0xff]  ;;  %v525_v46 = vld [vmem:[%s3433_s0 + $0x8] sm:$0xff]  ;;  %s3510_s1 = sld [smem:[#allocation5 + %s751_s17]] }
  0x53   : > { %518 = vst.msk [vmem:[#allocation2 + $0x90] sm:$0xff] %vm383_vm1, %v514_v8  ;;  %v3413_v21 = vld [vmem:[#allocation2 + $0x1d8] sm:$0xff]  ;;  %v904_v31 = vmul.f32 %v3443_v29, %v892_v27  ;;  %v529_v33 = vld [vmem:[%s3436_s16] sm:$0xff]  ;;  %v3454_v34 = vstv %s3403_s9  ;;  %v905_v48 = vmul.f32 %v3443_v29, %v893_v45  ;;  %v530_v49 = vld [vmem:[%s3436_s16 + $0x8] sm:$0xff]  ;;  %s3512_s20 = sld [smem:[#allocation7 + %s751_s17]] }
  0x54   : > { %v878_v23 = vadd.f32 %v874_v15, %v868_v14  ;;  %v3429_v24 = vld [vmem:[#allocation2 + $0x78] sm:$0xff]  ;;  %v3456_v36 = vstv %s539_s11  ;;  %v536_v51 = vmul.f32 %v3454_v34, %v525_v46  ;;  %v526_v61 = vld [vmem:[%s3433_s0 + $0x10] sm:$0xff]  ;;  %s555_s22 = sld [smem:[#allocation5 + %s553_s19]]  ;;  %v901_v15 = vmul.f32 %v3441_v28, %v890_v12 }
  0x55   : > { %2504 = vmatmul.msk.f32.gmra.mxu0 %vm383_vm1, %v3288_v19  ;;  %2553 = vmatmul.msk.f32.gmra.mxu3 %vm383_vm1, %v3290_v20  ;;  %v541_v39 = vmul.f32 %v3456_v36, %v529_v33  ;;  %v542_v54 = vmul.f32 %v3456_v36, %v530_v49  ;;  %v531_v0 = vld [vmem:[%s3436_s16 + $0x10] sm:$0xff]  ;;  %v537_v2 = vmul.f32 %v3454_v34, %v526_v61  ;;  %s770_s23 = sld [smem:[#allocation8 + %s751_s17]]  ;;  %v895_v13 = vld [vmem:[%s3427_s14 + $0x18] sm:$0xff] }
  0x56   : > { %882 = vst.msk [vmem:[#allocation2 + $0x1f8] sm:$0xff] %vm383_vm1, %v878_v23  ;;  %v3458_v37 = vld [vmem:[#allocation2 + $0x1e0] sm:$0xff]  ;;  %v527_v14 = vld [vmem:[%s3433_s0 + $0x18] sm:$0xff]  ;;  %s3525_s30 = sld [smem:[#allocation7 + %s553_s19]]  ;;  %v907_v17 = vmul.f32 %v3443_v29, %v895_v13  ;;  %s3545_s9 = scalar_lea.vmem %s3077_s18, %s3507_s10 }
  0x57   : > { %v3481_v52 = vld [vmem:[#allocation2 + $0x1e8] sm:$0xff]  ;;  %s572_s8 = sld [smem:[#allocation8 + %s553_s19]]  ;;  %s586_s0 = sadd.s32 7, %s3065_s29 }
  0x58   : > { %v3467_v42 = vld [vmem:[#allocation2 + $0x80] sm:$0xff]  ;;  %s3549_s11 = scalar_lea.vmem %s3077_s18, %s3510_s1  ;;  %s588_s17 = sld [smem:[#allocation5 + %s586_s0]] }
  0x59   : > { %2569 = vmatmul.msk.f32.gmra.mxu1 %vm383_vm1, %v951_v25  ;;  %2637 = vmatmul.msk.f32.gmra.mxu2 %vm383_vm1, %v3305_v26  ;;  %v887_v25 = vld [vmem:[%s3423_s12] sm:$0xff]  ;;  %v3489_v57 = vld [vmem:[#allocation2 + $0x88] sm:$0xff]  ;;  %s599_s10 = sld [smem:[#allocation7 + %s586_s0]] }
  0x5a   : > { %v898_v30 = vmul.f32 %v3441_v28, %v887_v25  ;;  %v3519_v10 = vld [vmem:[#allocation2 + $0x90] sm:$0xff]  ;;  %v911_v25 = vadd.f32 %v907_v17, %v901_v15  ;;  %s3558_s14 = scalar_lea.vmem %s3077_s18, %s555_s22  ;;  %s605_s19 = sld [smem:[#allocation8 + %s586_s0]] }
  0x5c   : > { %v908_v40 = vadd.f32 %v904_v31, %v898_v30  ;;  %915 = vst.msk [vmem:[#allocation2 + $0x218] sm:$0xff] %vm383_vm1, %v911_v25  ;;  %v3563_v30 = vstv %s3512_s20  ;;  %v3565_v31 = vstv %s770_s23 }
  0x5d   : > { %2505 = vmatmul.msk.f32.gmra.mxu0 %vm383_vm1, %v3335_v1  ;;  %2554 = vmatmul.msk.f32.gmra.mxu3 %vm383_vm1, %v3337_v38  ;;  %v3535_v23 = vld [vmem:[#allocation2 + $0x1f8] sm:$0xff] }
  0x5e   : > { %912 = vst.msk [vmem:[#allocation2 + $0x200] sm:$0xff] %vm383_vm1, %v908_v40  ;;  %s3636_s20 = scalar_lea.vmem %s3077_s18, %s588_s17 }
  0x61   : > { %2570 = vmatmul.msk.f32.gmra.mxu1 %vm383_vm1, %v952_v3  ;;  %2638 = vmatmul.msk.f32.gmra.mxu2 %vm383_vm1, %v3346_v44  ;;  %v888_v3 = vld [vmem:[%s3423_s12 + $0x8] sm:$0xff]  ;;  %s3555_s12 = scalar_lea.vmem %s3077_s18, %s554_s21  ;;  %s2495_s21 = sshll.u32 %s2888_s24, 6 }
  0x62   : > { %v899_v47 = vmul.f32 %v3441_v28, %v888_v3  ;;  %v558_v49 = vld [vmem:[%s3555_s12 + $0x8] sm:$0xff]  ;;  %p347_p9 = scmp.lt.s32.totalorder %s2495_s21, 127  ;;  %s2496_s24 = sshll.u32 %s4446_s25, 7 }
  0x64   : > { %v909_v55 = vadd.f32 %v905_v48, %v899_v47  ;;  %v756_v47 = vld [vmem:[%s3545_s9 + $0x8] sm:$0xff]  ;;  %s4448_s21 = smov (!%p347_p9, %s2495_s21), 127 }
  0x65   : > { %2506 = vmatmul.msk.f32.gmra.mxu0 %vm383_vm1, %v3191_v35  ;;  %2555 = vmatmul.msk.f32.gmra.mxu3 %vm383_vm1, %v3359_v53  ;;  %v1015_v40 = vld [vmem:[#allocation2 + $0x200] sm:$0xff]  ;;  %v761_v48 = vld [vmem:[%s3549_s11 + $0x8] sm:$0xff]  ;;  %s350_s22 = sadd.s32 %s2496_s24, %s4448_s21 }
  0x66   : > { %913 = vst.msk [vmem:[#allocation2 + $0x208] sm:$0xff] %vm383_vm1, %v909_v55  ;;  %v563_v55 = vld [vmem:[%s3558_s14 + $0x8] sm:$0xff]  ;;  %s2497_s25 = sshll.u32 %s350_s22, 3 }
  0x69   : > { %2571 = vmatmul.msk.f32.gmra.mxu1 %vm383_vm1, %v3224_v50  ;;  %2639 = vmatmul.msk.f32.gmra.mxu2 %vm383_vm1, %v3367_v58  ;;  %v877_v50 = vadd.f32 %v873_v63, %v867_v62  ;;  %v900_v62 = vmul.f32 %v3441_v28, %v889_v59  ;;  %v906_v63 = vmul.f32 %v3443_v29, %v894_v60  ;;  %v755_v28 = vld [vmem:[%s3545_s9] sm:$0xff] }
  0x6a   : > { %v760_v29 = vld [vmem:[%s3549_s11] sm:$0xff] }
  0x6b   : > { %881 = vst.msk [vmem:[#allocation2 + $0x1f0] sm:$0xff] %vm383_vm1, %v877_v50  ;;  %v543_v50 = vmul.f32 %v3456_v36, %v531_v0  ;;  %v772_v33 = vmul.f32 %v3565_v31, %v760_v29  ;;  %v762_v0 = vld [vmem:[%s3549_s11 + $0x10] sm:$0xff] }
  0x6d   : > { %2507 = vmatmul.msk.f32.gmra.mxu0 %vm383_vm1, %v3233_v56  ;;  %2556 = vmatmul.msk.f32.gmra.mxu3 %vm383_vm1, %v3382_v6  ;;  %v547_v8 = vadd.f32 %v543_v50, %v537_v2  ;;  %v1016_v59 = vld [vmem:[#allocation2 + $0x208] sm:$0xff]  ;;  %v559_v2 = vld [vmem:[%s3555_s12 + $0x10] sm:$0xff] }
  0x6f   : > { %551 = vst.msk [vmem:[#allocation2 + $0xb0] sm:$0xff] %vm383_vm1, %v547_v8  ;;  %v564_v8 = vld [vmem:[%s3558_s14 + $0x10] sm:$0xff] }
  0x71   : > { %2572 = vmatmul.msk.f32.gmra.mxu1 %vm383_vm1, %v3249_v4  ;;  %2640 = vmatmul.msk.f32.gmra.mxu2 %vm383_vm1, %v3397_v9  ;;  %v515_v4 = vadd.f32 %v511_v22, %v505_v18  ;;  %v532_v18 = vld [vmem:[%s3436_s16 + $0x18] sm:$0xff]  ;;  %v538_v22 = vmul.f32 %v3454_v34, %v527_v14  ;;  %s587_s16 = sld [smem:[#allocation3 + %s586_s0]] }
  0x72   : > { %v3504_v7 = vld [vmem:[#allocation2 + $0x1f0] sm:$0xff] }
  0x73   : > { %519 = vst.msk [vmem:[#allocation2 + $0x98] sm:$0xff] %vm383_vm1, %v515_v4  ;;  %v544_v4 = vmul.f32 %v3456_v36, %v532_v18  ;;  %v562_v36 = vld [vmem:[%s3558_s14] sm:$0xff]  ;;  %v758_v18 = vld [vmem:[%s3545_s9 + $0x18] sm:$0xff] }
  0x74   : > { %v769_v25 = vmul.f32 %v3563_v30, %v758_v18 }
  0x75   : > { %2508 = vmatmul.msk.f32.gmra.mxu0 %vm383_vm1, %v3271_v11  ;;  %2557 = vmatmul.msk.f32.gmra.mxu3 %vm383_vm1, %v3413_v21 }
  0x77   : > { %s3633_s1 = scalar_lea.vmem %s3077_s18, %s587_s16 }
  0x79   : > { %2573 = vmatmul.msk.f32.gmra.mxu1 %vm383_vm1, %v3288_v19  ;;  %2641 = vmatmul.msk.f32.gmra.mxu2 %vm383_vm1, %v3429_v24  ;;  %v535_v19 = vmul.f32 %v3454_v34, %v524_v32  ;;  %v766_v32 = vmul.f32 %v3563_v30, %v755_v28  ;;  %v557_v34 = vld [vmem:[%s3555_s12] sm:$0xff]  ;;  %v565_v28 = vld [vmem:[%s3558_s14 + $0x18] sm:$0xff] }
  0x7a   : > { %v3551_v27 = vld [vmem:[#allocation2 + $0x98] sm:$0xff] }
  0x7b   : > { %v545_v41 = vadd.f32 %v541_v39, %v535_v19  ;;  %v567_v19 = vstv %s3525_s30  ;;  %v573_v39 = vstv %s572_s8  ;;  %v776_v45 = vadd.f32 %v772_v33, %v766_v32  ;;  %v1018_v32 = vld [vmem:[#allocation2 + $0x218] sm:$0xff]  ;;  %s619_s8 = sadd.s32 8, %s3065_s29  ;;  %s685_s30 = sadd.s32 10, %s3065_s29 }
  0x7c   : > { %v574_v3 = vmul.f32 %v573_v39, %v562_v36  ;;  %v575_v60 = vmul.f32 %v573_v39, %v563_v55  ;;  %v570_v12 = vmul.f32 %v567_v19, %v559_v2  ;;  %v576_v14 = vmul.f32 %v573_v39, %v564_v8  ;;  %v597_v2 = vld [vmem:[%s3636_s20 + $0x10] sm:$0xff]  ;;  %s620_s14 = sld [smem:[#allocation3 + %s619_s8]] }
  0x7d   : > { %2509 = vmatmul.msk.f32.gmra.mxu0 %vm383_vm1, %v3305_v26  ;;  %2558 = vmatmul.msk.f32.gmra.mxu3 %vm383_vm1, %v3458_v37  ;;  %549 = vst.msk [vmem:[#allocation2 + $0xa0] sm:$0xff] %vm383_vm1, %v545_v41  ;;  %v568_v41 = vmul.f32 %v567_v19, %v557_v34  ;;  %v577_v33 = vmul.f32 %v573_v39, %v565_v28  ;;  %v3645_v39 = vstv %s605_s19  ;;  %s621_s0 = sld [smem:[#allocation5 + %s619_s8]] }
  0x7e   : > { %780 = vst.msk [vmem:[#allocation2 + $0x180] sm:$0xff] %vm383_vm1, %v776_v45  ;;  %v580_v17 = vadd.f32 %v576_v14, %v570_v12  ;;  %v609_v8 = vmul.f32 %v3645_v39, %v597_v2  ;;  %s632_s16 = sld [smem:[#allocation7 + %s619_s8]] }
  0x7f   : > { %s638_s17 = sld [smem:[#allocation8 + %s619_s8]] }
  0x80   : > { %584 = vst.msk [vmem:[#allocation2 + $0xd0] sm:$0xff] %vm383_vm1, %v580_v17  ;;  %s686_s8 = sld [smem:[#allocation3 + %s685_s30]] }
  0x81   : > { %2574 = vmatmul.msk.f32.gmra.mxu1 %vm383_vm1, %v3335_v1  ;;  %2642 = vmatmul.msk.f32.gmra.mxu2 %vm383_vm1, %v3467_v42  ;;  %v546_v1 = vadd.f32 %v542_v54, %v536_v51  ;;  %v767_v51 = vmul.f32 %v3563_v30, %v756_v47  ;;  %v773_v54 = vmul.f32 %v3565_v31, %v761_v48  ;;  %v591_v47 = vld [vmem:[%s3633_s1 + $0x8] sm:$0xff] }
  0x82   : > { %v596_v48 = vld [vmem:[%s3636_s20 + $0x8] sm:$0xff] }
  0x83   : > { %550 = vst.msk [vmem:[#allocation2 + $0xa8] sm:$0xff] %vm383_vm1, %v546_v1  ;;  %v569_v1 = vmul.f32 %v567_v19, %v558_v49  ;;  %v777_v61 = vadd.f32 %v773_v54, %v767_v51  ;;  %v608_v51 = vmul.f32 %v3645_v39, %v596_v48  ;;  %s3727_s19 = scalar_lea.vmem %s3077_s18, %s621_s0 }
  0x84   : > { %v3580_v46 = vld [vmem:[#allocation2 + $0xa0] sm:$0xff] }
  0x85   : > { %2510 = vmatmul.msk.f32.gmra.mxu0 %vm383_vm1, %v3346_v44  ;;  %2559 = vmatmul.msk.f32.gmra.mxu3 %vm383_vm1, %v3481_v52  ;;  %781 = vst.msk [vmem:[#allocation2 + $0x188] sm:$0xff] %vm383_vm1, %v777_v61 }
  0x86   : > { %s3906_s0 = scalar_lea.vmem %s3077_s18, %s686_s8 }
  0x87   : > { %v3704_v18 = vld [vmem:[#allocation2 + $0xd0] sm:$0xff] }
  0x89   : > { %2575 = vmatmul.msk.f32.gmra.mxu1 %vm383_vm1, %v3191_v35  ;;  %2643 = vmatmul.msk.f32.gmra.mxu2 %vm383_vm1, %v3489_v57  ;;  %v910_v35 = vadd.f32 %v906_v63, %v900_v62  ;;  %v579_v62 = vadd.f32 %v575_v60, %v569_v1  ;;  %v757_v63 = vld [vmem:[%s3545_s9 + $0x10] sm:$0xff]  ;;  %s687_s9 = sld [smem:[#allocation5 + %s685_s30]] }
  0x8a   : > { %v768_v50 = vmul.f32 %v3563_v30, %v757_v63  ;;  %v590_v30 = vld [vmem:[%s3633_s1] sm:$0xff] }
  0x8b   : > { %914 = vst.msk [vmem:[#allocation2 + $0x210] sm:$0xff] %vm383_vm1, %v910_v35  ;;  %v774_v35 = vmul.f32 %v3565_v31, %v762_v0  ;;  %v592_v0 = vld [vmem:[%s3633_s1 + $0x10] sm:$0xff] }
  0x8c   : > { %583 = vst.msk [vmem:[#allocation2 + $0xc8] sm:$0xff] %vm383_vm1, %v579_v62  ;;  %v998_v55 = vld [vmem:[#allocation2 + $0x188] sm:$0xff]  ;;  %v3680_v62 = vld [vmem:[%s4426_s6] ss:$0 sm:$0xff] }
  0x8d   : > { %2511 = vmatmul.msk.f32.gmra.mxu0 %vm383_vm1, %v3367_v58  ;;  %2560 = vmatmul.msk.f32.gmra.mxu3 %vm383_vm1, %v3504_v7  ;;  %v778_v15 = vadd.f32 %v774_v35, %v768_v50 }
  0x8f   : > { %782 = vst.msk [vmem:[#allocation2 + $0x190] sm:$0xff] %vm383_vm1, %v778_v15 }
  0x91   : > { %2576 = vmatmul.msk.f32.gmra.mxu1 %vm383_vm1, %v3233_v56  ;;  %2644 = vmatmul.msk.f32.gmra.mxu2 %vm383_vm1, %v3519_v10  ;;  %v548_v56 = vadd.f32 %v544_v4, %v538_v22  ;;  %v763_v22 = vld [vmem:[%s3549_s11 + $0x18] sm:$0xff]  ;;  %s698_s11 = sld [smem:[#allocation7 + %s685_s30]] }
  0x92   : > { %v1017_v13 = vld [vmem:[#allocation2 + $0x210] sm:$0xff]  ;;  %v560_v4 = vld [vmem:[%s3555_s12 + $0x18] sm:$0xff]  ;;  %s3696_s12 = scalar_lea.vmem %s4427_s7, %s2497_s25 }
  0x93   : > { %552 = vst.msk [vmem:[#allocation2 + $0xb8] sm:$0xff] %vm383_vm1, %v548_v56  ;;  %v775_v56 = vmul.f32 %v3565_v31, %v763_v22  ;;  %v571_v29 = vmul.f32 %v567_v19, %v560_v4  ;;  %v595_v31 = vld [vmem:[%s3636_s20] sm:$0xff]  ;;  %v3643_v19 = vstv %s599_s10  ;;  %v3675_v60 = vld [vmem:[#allocation2 + $0xc8] sm:$0xff]  ;;  %s3724_s10 = scalar_lea.vmem %s3077_s18, %s620_s14  ;;  %s704_s14 = sld [smem:[#allocation8 + %s685_s30]] }
  0x94   : > { %v602_v49 = vmul.f32 %v3643_v19, %v591_v47  ;;  %v603_v35 = vmul.f32 %v3643_v19, %v592_v0  ;;  %v3738_v47 = vstv %s638_s17  ;;  %v624_v2 = vld [vmem:[%s3724_s10 + $0x8] sm:$0xff]  ;;  %s718_s17 = sadd.s32 11, %s3065_s29 }
  0x95   : > { %2512 = vmatmul.msk.f32.gmra.mxu0 %vm383_vm1, %v3397_v9  ;;  %2561 = vmatmul.msk.f32.gmra.mxu3 %vm383_vm1, %v3535_v23  ;;  %v779_v34 = vadd.f32 %v775_v56, %v769_v25  ;;  %v581_v36 = vadd.f32 %v577_v33, %v571_v29  ;;  %v593_v25 = vld [vmem:[%s3633_s1 + $0x18] sm:$0xff]  ;;  %s652_s1 = sadd.s32 9, %s3065_s29 }
  0x96   : > { %v612_v1 = vadd.f32 %v608_v51, %v602_v49  ;;  %v613_v14 = vadd.f32 %v609_v8, %v603_v35  ;;  %v598_v56 = vld [vmem:[%s3636_s20 + $0x18] sm:$0xff]  ;;  %v604_v29 = vmul.f32 %v3643_v19, %v593_v25  ;;  %v625_v25 = vld [vmem:[%s3724_s10 + $0x10] sm:$0xff]  ;;  %s653_s20 = sld [smem:[#allocation3 + %s652_s1]] }
  0x97   : > { %783 = vst.msk [vmem:[#allocation2 + $0x198] sm:$0xff] %vm383_vm1, %v779_v34  ;;  %s654_s21 = sld [smem:[#allocation5 + %s652_s1]] }
  0x98   : > { %585 = vst.msk [vmem:[#allocation2 + $0xd8] sm:$0xff] %vm383_vm1, %v581_v36  ;;  %s665_s24 = sld [smem:[#allocation7 + %s652_s1]] }
  0x99   : > { %2577 = vmatmul.msk.f32.gmra.mxu1 %vm383_vm1, %v3271_v11  ;;  %2645 = vmatmul.msk.f32.gmra.mxu2 %vm383_vm1, %v3551_v27  ;;  %v578_v11 = vadd.f32 %v574_v3, %v568_v41  ;;  %v607_v41 = vmul.f32 %v3645_v39, %v595_v31  ;;  %v997_v3 = vld [vmem:[#allocation2 + $0x180] sm:$0xff]  ;;  %616 = vst.msk [vmem:[#allocation2 + $0xe8] sm:$0xff] %vm383_vm1, %v612_v1  ;;  %s671_s22 = sld [smem:[#allocation8 + %s652_s1]] }
  0x9a   : > { %617 = vst.msk [vmem:[#allocation2 + $0xf0] sm:$0xff] %vm383_vm1, %v613_v14  ;;  %s731_s1 = sld [smem:[#allocation7 + %s718_s17]] }
  0x9b   : > { %582 = vst.msk [vmem:[#allocation2 + $0xc0] sm:$0xff] %vm383_vm1, %v578_v11 }
  0x9c   : > { %s3815_s25 = scalar_lea.vmem %s3077_s18, %s653_s20  ;;  %s737_s20 = sld [smem:[#allocation8 + %s718_s17]] }
  0x9d   : > { %2513 = vmatmul.msk.f32.gmra.mxu0 %vm383_vm1, %v3429_v24  ;;  %2562 = vmatmul.msk.f32.gmra.mxu3 %vm383_vm1, %v1015_v40  ;;  %v601_v40 = vmul.f32 %v3643_v19, %v590_v30  ;;  %s3818_s23 = scalar_lea.vmem %s3077_s18, %s654_s21 }
  0x9e   : > { %v1000_v34 = vld [vmem:[#allocation2 + $0x198] sm:$0xff] }
  0x9f   : > { %v611_v45 = vadd.f32 %v607_v41, %v601_v40  ;;  %v3729_v19 = vld [vmem:[#allocation2 + $0xd8] sm:$0xff]  ;;  %v623_v41 = vld [vmem:[%s3724_s10] sm:$0xff] }
  0xa1   : > { %2578 = vmatmul.msk.f32.gmra.mxu1 %vm383_vm1, %v3305_v26  ;;  %2646 = vmatmul.msk.f32.gmra.mxu2 %vm383_vm1, %v3580_v46  ;;  %v3597_v26 = vld [vmem:[#allocation2 + $0xa8] sm:$0xff]  ;;  %615 = vst.msk [vmem:[#allocation2 + $0xe0] sm:$0xff] %vm383_vm1, %v611_v45  ;;  %v3736_v45 = vstv %s632_s16  ;;  %s3909_s16 = scalar_lea.vmem %s3077_s18, %s687_s9 }
  0xa2   : > { %v3658_v11 = vld [vmem:[#allocation2 + $0xc0] sm:$0xff]  ;;  %v634_v49 = vmul.f32 %v3736_v45, %v623_v41  ;;  %v631_v41 = vld [vmem:[%s3727_s19 + $0x18] sm:$0xff] }
  0xa5   : > { %2514 = vmatmul.msk.f32.gmra.mxu0 %vm383_vm1, %v3467_v42  ;;  %2563 = vmatmul.msk.f32.gmra.mxu3 %vm383_vm1, %v1016_v59 }
  0xa9   : > { %2579 = vmatmul.msk.f32.gmra.mxu1 %vm383_vm1, %v3346_v44  ;;  %2647 = vmatmul.msk.f32.gmra.mxu2 %vm383_vm1, %v3597_v26  ;;  %v3615_v44 = vld [vmem:[#allocation2 + $0xb0] sm:$0xff] }
  0xad   : > { %2515 = vmatmul.msk.f32.gmra.mxu0 %vm383_vm1, %v3489_v57  ;;  %2564 = vmatmul.msk.f32.gmra.mxu3 %vm383_vm1, %v1017_v13  ;;  %v999_v13 = vld [vmem:[#allocation2 + $0x190] sm:$0xff] }
  0xb1   : > { %2580 = vmatmul.msk.f32.gmra.mxu1 %vm383_vm1, %v3367_v58  ;;  %2648 = vmatmul.msk.f32.gmra.mxu2 %vm383_vm1, %v3615_v44  ;;  %v3638_v58 = vld [vmem:[#allocation2 + $0xb8] sm:$0xff] }
  0xb5   : > { %2516 = vmatmul.msk.f32.gmra.mxu0 %vm383_vm1, %v3519_v10  ;;  %2565 = vmatmul.msk.f32.gmra.mxu3 %vm383_vm1, %v1018_v32  ;;  %v610_v32 = vmul.f32 %v3645_v39, %v598_v56  ;;  %v630_v56 = vld [vmem:[%s3727_s19 + $0x10] sm:$0xff] }
  0xb7   : > { %v614_v30 = vadd.f32 %v610_v32, %v604_v29  ;;  %v642_v29 = vmul.f32 %v3738_v47, %v630_v56 }
  0xb9   : > { %2581 = vmatmul.msk.f32.gmra.mxu1 %vm383_vm1, %v3397_v9  ;;  %2649 = vmatmul.msk.f32.gmra.mxu2 %vm383_vm1, %v3638_v58  ;;  %618 = vst.msk [vmem:[#allocation2 + $0xf8] sm:$0xff] %vm383_vm1, %v614_v30  ;;  %v3794_v30 = vld [vmem:[#allocation2 + $0xf0] sm:$0xff] }
  0xbd   : > { %2517 = vmatmul.msk.f32.gmra.mxu0 %vm383_vm1, %v3551_v27  ;;  %2615 = vmatmul.msk.f32.vlgmr.msrb.gmra.mxu3 %vm383_vm1, %v997_v3  ;;  %v628_v3 = vld [vmem:[%s3727_s19] sm:$0xff] }
  0xbe   : > { %v640_v51 = vmul.f32 %v3738_v47, %v628_v3 }
  0xc0   : > { %v3660_v9 = vpop.f32.mrf.mxu3  ;;  %v644_v1 = vadd.f32 %v640_v51, %v634_v49 }
  0xc1   : > { %2582 = vmatmul.msk.f32.gmra.mxu1 %vm383_vm1, %v3429_v24  ;;  %2650 = vmatmul.msk.f32.gmra.mxu2 %vm383_vm1, %v3658_v11 }
  0xc2   : > { %v1235_v54 = vpop.f32.mrf.mxu0  ;;  %648 = vst.msk [vmem:[#allocation2 + $0x100] sm:$0xff] %vm383_vm1, %v644_v1 }
  0xc4   : > { %v1930_v59 = vpop.f32.mrf.mxu2 }
  0xc5   : > { %2518 = vmatmul.msk.f32.gmra.mxu0 %vm383_vm1, %v3580_v46  ;;  %2616 = vmatmul.msk.f32.gmra.mxu3 %vm383_vm1, %v998_v55 }
  0xc6   : > { %v1459_v24 = vpop.f32.mrf.mxu1 }
  0xc7   : > { %v1460_v61 = vadd.f32 %v1459_v24, %v1235_v54  ;;  %v3753_v24 = vld [vmem:[#allocation2 + $0xe0] sm:$0xff] }
  0xc8   : > { %v3682_v63 = vpop.f32.mrf.mxu3 }
  0xc9   : > { %v2122_v50 = vadd.f32 %v1930_v59, %v1460_v61  ;;  %2583 = vmatmul.msk.f32.gmra.mxu1 %vm383_vm1, %v3467_v42  ;;  %2651 = vmatmul.msk.f32.gmra.mxu2 %vm383_vm1, %v3675_v60 }
  0xca   : > { %v1238_v12 = vpop.f32.mrf.mxu0 }
  0xcb   : > { %v2190_v42 = vadd.f32 %v3680_v62, %v2122_v50  ;;  %v629_v50 = vld [vmem:[%s3727_s19 + $0x8] sm:$0xff]  ;;  %s720_s19 = sld [smem:[#allocation5 + %s718_s17]] }
  0xcc   : > { %v1933_v15 = vpop.f32.mrf.mxu2  ;;  %v641_v8 = vmul.f32 %v3738_v47, %v629_v50 }
  0xcd   : > { %2255 = vst.msk [vmem:[%s3696_s12] sm:$0xff] %vm2254_vm2, %v2190_v42  ;;  %2519 = vmatmul.msk.f32.gmra.mxu0 %vm383_vm1, %v3597_v26  ;;  %2617 = vmatmul.msk.f32.gmra.mxu3 %vm383_vm1, %v999_v13 }
  0xce   : > { %v1462_v17 = vpop.f32.mrf.mxu1 }
  0xcf   : > { %v1463_v22 = vadd.f32 %v1462_v17, %v1238_v12 }
  0xd0   : > { %v3707_v4 = vpop.f32.mrf.mxu3 }
  0xd1   : > { %v2123_v28 = vadd.f32 %v1933_v15, %v1463_v22  ;;  %2584 = vmatmul.msk.f32.gmra.mxu1 %vm383_vm1, %v3489_v57  ;;  %2652 = vmatmul.msk.f32.gmra.mxu2 %vm383_vm1, %v3704_v18  ;;  %v3773_v15 = vld [vmem:[#allocation2 + $0xe8] sm:$0xff] }
  0xd2   : > { %v1241_v33 = vpop.f32.mrf.mxu0 }
  0xd3   : > { %v2191_v36 = vadd.f32 %v3680_v62, %v2123_v28 }
  0xd4   : > { %v1936_v31 = vpop.f32.mrf.mxu2 }
  0xd5   : > { %2256 = vst.msk [vmem:[%s3696_s12 + $0x8] sm:$0xff] %vm2254_vm2, %v2191_v36  ;;  %2520 = vmatmul.msk.f32.gmra.mxu0 %vm383_vm1, %v3615_v44  ;;  %2618 = vmatmul.msk.f32.gmra.mxu3 %vm383_vm1, %v1000_v34 }
  0xd6   : > { %v1465_v57 = vpop.f32.mrf.mxu1 }
  0xd7   : > { %v1466_v39 = vadd.f32 %v1465_v57, %v1241_v33 }
  0xd8   : > { %v3732_v40 = vpop.f32.mrf.mxu3 }
  0xd9   : > { %v2124_v48 = vadd.f32 %v1936_v31, %v1466_v39  ;;  %2585 = vmatmul.msk.f32.gmra.mxu1 %vm383_vm1, %v3519_v10  ;;  %2653 = vmatmul.msk.f32.gmra.mxu2 %vm383_vm1, %v3729_v19  ;;  %v626_v39 = vld [vmem:[%s3724_s10 + $0x18] sm:$0xff]  ;;  %s719_s10 = sld [smem:[#allocation3 + %s718_s17]] }
  0xda   : > { %v1244_v54 = vpop.f32.mrf.mxu0 }
  0xdb   : > { %v2192_v55 = vadd.f32 %v3680_v62, %v2124_v48  ;;  %v643_v48 = vmul.f32 %v3738_v47, %v631_v41 }
  0xdc   : > { %v1939_v59 = vpop.f32.mrf.mxu2 }
  0xdd   : > { %2257 = vst.msk [vmem:[%s3696_s12 + $0x10] sm:$0xff] %vm2254_vm2, %v2192_v55  ;;  %2521 = vmatmul.msk.f32.gmra.mxu0 %vm383_vm1, %v3638_v58  ;;  %2619 = vmatmul.msk.f32.gmra.mxu3 %vm383_vm1, %v3158_v16  ;;  %v635_v16 = vmul.f32 %v3736_v45, %v624_v2 }
  0xde   : > { %v1468_v10 = vpop.f32.mrf.mxu1 }
  0xdf   : > { %v1469_v61 = vadd.f32 %v1468_v10, %v1244_v54  ;;  %v645_v42 = vadd.f32 %v641_v8, %v635_v16  ;;  %v661_v10 = vld [vmem:[%s3818_s23] sm:$0xff]  ;;  %s3997_s21 = scalar_lea.vmem %s3077_s18, %s719_s10 }
  0xe0   : > { %v3756_v0 = vpop.f32.mrf.mxu3 }
  0xe1   : > { %v2125_v35 = vadd.f32 %v1939_v59, %v1469_v61  ;;  %2586 = vmatmul.msk.f32.gmra.mxu1 %vm383_vm1, %v3551_v27  ;;  %2654 = vmatmul.msk.f32.gmra.mxu2 %vm383_vm1, %v3753_v24  ;;  %649 = vst.msk [vmem:[#allocation2 + $0x108] sm:$0xff] %vm383_vm1, %v645_v42  ;;  %v656_v59 = vld [vmem:[%s3815_s25] sm:$0xff]  ;;  %v3827_v61 = vstv %s665_s24  ;;  %s4000_s24 = scalar_lea.vmem %s3077_s18, %s720_s19 }
  0xe2   : > { %v1247_v12 = vpop.f32.mrf.mxu0  ;;  %v667_v50 = vmul.f32 %v3827_v61, %v656_v59  ;;  %v3844_v42 = vld [vmem:[#allocation2 + $0x100] sm:$0xff]  ;;  %v664_v59 = vld [vmem:[%s3818_s23 + $0x18] sm:$0xff] }
  0xe3   : > { %v2193_v13 = vadd.f32 %v3680_v62, %v2125_v35 }
  0xe4   : > { %v1942_v14 = vpop.f32.mrf.mxu2 }
  0xe5   : > { %2258 = vst.msk [vmem:[%s3696_s12 + $0x18] sm:$0xff] %vm2254_vm2, %v2193_v13  ;;  %2522 = vmatmul.msk.f32.gmra.mxu0 %vm383_vm1, %v3658_v11  ;;  %2620 = vmatmul.msk.f32.gmra.mxu3 %vm383_vm1, %v3211_v43  ;;  %v636_v43 = vmul.f32 %v3736_v45, %v625_v25  ;;  %v662_v25 = vld [vmem:[%s3818_s23 + $0x8] sm:$0xff] }
  0xe6   : > { %v1471_v27 = vpop.f32.mrf.mxu1 }
  0xe7   : > { %v1472_v17 = vadd.f32 %v1471_v27, %v1247_v12  ;;  %v646_v34 = vadd.f32 %v642_v29, %v636_v43 }
  0xe8   : > { %v3776_v22 = vpop.f32.mrf.mxu3 }
  0xe9   : > { %v2126_v28 = vadd.f32 %v1942_v14, %v1472_v17  ;;  %2587 = vmatmul.msk.f32.gmra.mxu1 %vm383_vm1, %v3580_v46  ;;  %2655 = vmatmul.msk.f32.gmra.mxu2 %vm383_vm1, %v3773_v15  ;;  %650 = vst.msk [vmem:[#allocation2 + $0x110] sm:$0xff] %vm383_vm1, %v646_v34  ;;  %v657_v17 = vld [vmem:[%s3815_s25 + $0x8] sm:$0xff] }
  0xea   : > { %v1250_v32 = vpop.f32.mrf.mxu0  ;;  %v3864_v34 = vld [vmem:[#allocation2 + $0x108] sm:$0xff] }
  0xeb   : > { %v2194_v33 = vadd.f32 %v3680_v62, %v2126_v28 }
  0xec   : > { %v1945_v36 = vpop.f32.mrf.mxu2 }
  0xed   : > { %2259 = vst.msk [vmem:[%s3696_s12 + $0x20] sm:$0xff] %vm2254_vm2, %v2194_v33  ;;  %2523 = vmatmul.msk.f32.gmra.mxu0 %vm383_vm1, %v3675_v60  ;;  %2621 = vmatmul.msk.f32.gmra.mxu3 %vm383_vm1, %v3251_v5  ;;  %v637_v5 = vmul.f32 %v3736_v45, %v626_v39  ;;  %v3820_v45 = vld [vmem:[#allocation2 + $0xf8] sm:$0xff]  ;;  %v663_v39 = vld [vmem:[%s3818_s23 + $0x10] sm:$0xff] }
  0xee   : > { %v1474_v46 = vpop.f32.mrf.mxu1 }
  0xef   : > { %v1475_v31 = vadd.f32 %v1474_v46, %v1250_v32  ;;  %v647_v54 = vadd.f32 %v643_v48, %v637_v5 }
  0xf0   : > { %v3797_v57 = vpop.f32.mrf.mxu3 }
  0xf1   : > { %v2127_v3 = vadd.f32 %v1945_v36, %v1475_v31  ;;  %2588 = vmatmul.msk.f32.gmra.mxu1 %vm383_vm1, %v3597_v26  ;;  %2656 = vmatmul.msk.f32.gmra.mxu2 %vm383_vm1, %v3794_v30  ;;  %651 = vst.msk [vmem:[#allocation2 + $0x118] sm:$0xff] %vm383_vm1, %v647_v54  ;;  %v658_v31 = vld [vmem:[%s3815_s25 + $0x10] sm:$0xff] }
  0xf2   : > { %v1253_v49 = vpop.f32.mrf.mxu0  ;;  %v3885_v54 = vld [vmem:[#allocation2 + $0x110] sm:$0xff] }
  0xf3   : > { %v2195_v51 = vadd.f32 %v3680_v62, %v2127_v3 }
  0xf4   : > { %v1948_v55 = vpop.f32.mrf.mxu2 }
  0xf5   : > { %2260 = vst.msk [vmem:[%s3696_s12 + $0x28] sm:$0xff] %vm2254_vm2, %v2195_v51  ;;  %2524 = vmatmul.msk.f32.gmra.mxu0 %vm383_vm1, %v3704_v18  ;;  %2622 = vmatmul.msk.f32.gmra.mxu3 %vm383_vm1, %v3290_v20  ;;  %v3829_v20 = vstv %s671_s22  ;;  %s916_s22 = sadd.s32 17, %s3065_s29 }
  0xf6   : > { %v1477_v26 = vpop.f32.mrf.mxu1  ;;  %v673_v35 = vmul.f32 %v3829_v20, %v661_v10  ;;  %v674_v28 = vmul.f32 %v3829_v20, %v662_v25  ;;  %v675_v3 = vmul.f32 %v3829_v20, %v663_v39  ;;  %s918_s23 = sld [smem:[#allocation5 + %s916_s22]] }
  0xf7   : > { %v1478_v47 = vadd.f32 %v1477_v26, %v1253_v49  ;;  %s929_s29 = sld [smem:[#allocation7 + %s916_s22]] }
  0xf8   : > { %v3823_v1 = vpop.f32.mrf.mxu3  ;;  %v677_v12 = vadd.f32 %v673_v35, %v667_v50  ;;  %s935_s30 = sld [smem:[#allocation8 + %s916_s22]] }
  0xf9   : > { %v2128_v2 = vadd.f32 %v1948_v55, %v1478_v47  ;;  %2589 = vmatmul.msk.f32.gmra.mxu1 %vm383_vm1, %v3615_v44  ;;  %2657 = vmatmul.msk.f32.gmra.mxu2 %vm383_vm1, %v3820_v45  ;;  %v659_v47 = vld [vmem:[%s3815_s25 + $0x18] sm:$0xff]  ;;  %s917_s25 = sld [smem:[#allocation3 + %s916_s22]] }
  0xfa   : > { %v1256_v16 = vpop.f32.mrf.mxu0  ;;  %681 = vst.msk [vmem:[#allocation2 + $0x120] sm:$0xff] %vm383_vm1, %v677_v12 }
  0xfb   : > { %v2196_v8 = vadd.f32 %v3680_v62, %v2128_v2  ;;  %v676_v2 = vmul.f32 %v3829_v20, %v664_v59 }
  0xfc   : > { %v1951_v13 = vpop.f32.mrf.mxu2  ;;  %s4144_s9 = scalar_lea.vmem %s3077_s18, %s918_s23 }
  0xfd   : > { %2261 = vst.msk [vmem:[%s3696_s12 + $0x30] sm:$0xff] %vm2254_vm2, %v2196_v8  ;;  %2525 = vmatmul.msk.f32.gmra.mxu0 %vm383_vm1, %v3729_v19  ;;  %2623 = vmatmul.msk.f32.gmra.mxu3 %vm383_vm1, %v3337_v38  ;;  %v668_v38 = vmul.f32 %v3827_v61, %v657_v17 }
  0xfe   : > { %v1480_v44 = vpop.f32.mrf.mxu1 }
  0xff   : > { %v1481_v14 = vadd.f32 %v1480_v44, %v1256_v16  ;;  %v678_v32 = vadd.f32 %v674_v28, %v668_v38  ;;  %v694_v44 = vld [vmem:[%s3909_s16] sm:$0xff]  ;;  %s4141_s8 = scalar_lea.vmem %s3077_s18, %s917_s25 }
 0x100   : > { %v3847_v27 = vpop.f32.mrf.mxu3 }
 0x101   : > { %v2129_v56 = vadd.f32 %v1951_v13, %v1481_v14  ;;  %2590 = vmatmul.msk.f32.gmra.mxu1 %vm383_vm1, %v3638_v58  ;;  %2658 = vmatmul.msk.f32.gmra.mxu2 %vm383_vm1, %v3844_v42  ;;  %682 = vst.msk [vmem:[#allocation2 + $0x128] sm:$0xff] %vm383_vm1, %v678_v32  ;;  %v689_v13 = vld [vmem:[%s3906_s0] sm:$0xff]  ;;  %v3918_v14 = vstv %s698_s11 }
 0x102   : > { %v1259_v43 = vpop.f32.mrf.mxu0  ;;  %v700_v25 = vmul.f32 %v3918_v14, %v689_v13  ;;  %v3935_v32 = vld [vmem:[#allocation2 + $0x120] sm:$0xff]  ;;  %v697_v13 = vld [vmem:[%s3909_s16 + $0x18] sm:$0xff] }
 0x103   : > { %v2197_v29 = vadd.f32 %v3680_v62, %v2129_v56 }
 0x104   : > { %v1954_v33 = vpop.f32.mrf.mxu2 }
 0x105   : > { %2262 = vst.msk [vmem:[%s3696_s12 + $0x38] sm:$0xff] %vm2254_vm2, %v2197_v29  ;;  %2526 = vmatmul.msk.f32.gmra.mxu0 %vm383_vm1, %v3753_v24  ;;  %2624 = vmatmul.msk.f32.gmra.mxu3 %vm383_vm1, %v3359_v53  ;;  %v669_v53 = vmul.f32 %v3827_v61, %v658_v31  ;;  %v695_v31 = vld [vmem:[%s3909_s16 + $0x8] sm:$0xff] }
 0x106   : > { %v1483_v58 = vpop.f32.mrf.mxu1 }
 0x107   : > { %v1484_v36 = vadd.f32 %v1483_v58, %v1259_v43  ;;  %v679_v49 = vadd.f32 %v675_v3, %v669_v53 }
 0x108   : > { %v3867_v46 = vpop.f32.mrf.mxu3 }
 0x109   : > { %v2130_v41 = vadd.f32 %v1954_v33, %v1484_v36  ;;  %2591 = vmatmul.msk.f32.gmra.mxu1 %vm383_vm1, %v3658_v11  ;;  %2659 = vmatmul.msk.f32.gmra.mxu2 %vm383_vm1, %v3864_v34  ;;  %683 = vst.msk [vmem:[#allocation2 + $0x130] sm:$0xff] %vm383_vm1, %v679_v49  ;;  %v690_v36 = vld [vmem:[%s3906_s0 + $0x8] sm:$0xff] }
 0x10a   : > { %v1262_v5 = vpop.f32.mrf.mxu0  ;;  %v3955_v49 = vld [vmem:[#allocation2 + $0x128] sm:$0xff] }
 0x10b   : > { %v2198_v48 = vadd.f32 %v3680_v62, %v2130_v41 }
 0x10c   : > { %v1957_v51 = vpop.f32.mrf.mxu2 }
 0x10d   : > { %2263 = vst.msk [vmem:[%s3696_s12 + $0x40] sm:$0xff] %vm2254_vm2, %v2198_v48  ;;  %2527 = vmatmul.msk.f32.gmra.mxu0 %vm383_vm1, %v3773_v15  ;;  %2625 = vmatmul.msk.f32.gmra.mxu3 %vm383_vm1, %v3382_v6  ;;  %v670_v6 = vmul.f32 %v3827_v61, %v659_v47  ;;  %v3911_v61 = vld [vmem:[#allocation2 + $0x118] sm:$0xff]  ;;  %v696_v47 = vld [vmem:[%s3909_s16 + $0x10] sm:$0xff] }
 0x10e   : > { %v1486_v11 = vpop.f32.mrf.mxu1 }
 0x10f   : > { %v1487_v55 = vadd.f32 %v1486_v11, %v1262_v5  ;;  %v680_v16 = vadd.f32 %v676_v2, %v670_v6 }
 0x110   : > { %v3888_v26 = vpop.f32.mrf.mxu3 }
 0x111   : > { %v2131_v10 = vadd.f32 %v1957_v51, %v1487_v55  ;;  %2592 = vmatmul.msk.f32.gmra.mxu1 %vm383_vm1, %v3675_v60  ;;  %2660 = vmatmul.msk.f32.gmra.mxu2 %vm383_vm1, %v3885_v54  ;;  %684 = vst.msk [vmem:[#allocation2 + $0x138] sm:$0xff] %vm383_vm1, %v680_v16  ;;  %v691_v55 = vld [vmem:[%s3906_s0 + $0x10] sm:$0xff] }
 0x112   : > { %v1265_v50 = vpop.f32.mrf.mxu0  ;;  %v3976_v16 = vld [vmem:[#allocation2 + $0x130] sm:$0xff] }
 0x113   : > { %v2199_v35 = vadd.f32 %v3680_v62, %v2131_v10 }
 0x114   : > { %v1960_v8 = vpop.f32.mrf.mxu2 }
 0x115   : > { %2264 = vst.msk [vmem:[%s3696_s12 + $0x48] sm:$0xff] %vm2254_vm2, %v2199_v35  ;;  %2528 = vmatmul.msk.f32.gmra.mxu0 %vm383_vm1, %v3794_v30  ;;  %2626 = vmatmul.msk.f32.gmra.mxu3 %vm383_vm1, %v3413_v21  ;;  %v3920_v21 = vstv %s704_s14 }
 0x116   : > { %v1489_v60 = vpop.f32.mrf.mxu1  ;;  %v706_v56 = vmul.f32 %v3920_v21, %v694_v44  ;;  %v707_v41 = vmul.f32 %v3920_v21, %v695_v31  ;;  %v708_v10 = vmul.f32 %v3920_v21, %v696_v47  ;;  %v728_v47 = vld [vmem:[%s4000_s24 + $0x8] sm:$0xff] }
 0x117   : > { %v1490_v20 = vadd.f32 %v1489_v60, %v1265_v50 }
 0x118   : > { %v3914_v12 = vpop.f32.mrf.mxu3  ;;  %v710_v43 = vadd.f32 %v706_v56, %v700_v25 }
 0x119   : > { %v2132_v17 = vadd.f32 %v1960_v8, %v1490_v20  ;;  %2593 = vmatmul.msk.f32.gmra.mxu1 %vm383_vm1, %v3704_v18  ;;  %2661 = vmatmul.msk.f32.gmra.mxu2 %vm383_vm1, %v3911_v61  ;;  %v692_v20 = vld [vmem:[%s3906_s0 + $0x18] sm:$0xff] }
 0x11a   : > { %v1268_v38 = vpop.f32.mrf.mxu0  ;;  %714 = vst.msk [vmem:[#allocation2 + $0x140] sm:$0xff] %vm383_vm1, %v710_v43 }
 0x11b   : > { %v2200_v28 = vadd.f32 %v3680_v62, %v2132_v17  ;;  %v709_v17 = vmul.f32 %v3920_v21, %v697_v13 }
 0x11c   : > { %v1963_v29 = vpop.f32.mrf.mxu2 }
 0x11d   : > { %2265 = vst.msk [vmem:[%s3696_s12 + $0x50] sm:$0xff] %vm2254_vm2, %v2200_v28  ;;  %2529 = vmatmul.msk.f32.gmra.mxu0 %vm383_vm1, %v3820_v45  ;;  %2627 = vmatmul.msk.f32.gmra.mxu3 %vm383_vm1, %v3458_v37  ;;  %v701_v37 = vmul.f32 %v3918_v14, %v690_v36 }
 0x11e   : > { %v1492_v18 = vpop.f32.mrf.mxu1 }
 0x11f   : > { %v1493_v33 = vadd.f32 %v1492_v18, %v1268_v38  ;;  %v711_v5 = vadd.f32 %v707_v41, %v701_v37  ;;  %v727_v18 = vld [vmem:[%s4000_s24] sm:$0xff] }
 0x120   : > { %v3938_v58 = vpop.f32.mrf.mxu3  ;;  %v1699_v41 = vld [vmem:[#allocation2 + $0x1c0] sm:$0xff] }
 0x121   : > { %v2133_v39 = vadd.f32 %v1963_v29, %v1493_v33  ;;  %2594 = vmatmul.msk.f32.gmra.mxu1 %vm383_vm1, %v3729_v19  ;;  %2662 = vmatmul.msk.f32.gmra.mxu2 %vm383_vm1, %v3935_v32  ;;  %715 = vst.msk [vmem:[#allocation2 + $0x148] sm:$0xff] %vm383_vm1, %v711_v5  ;;  %v722_v29 = vld [vmem:[%s3997_s21] sm:$0xff]  ;;  %v4009_v33 = vstv %s731_s1 }
 0x122   : > { %v1271_v53 = vpop.f32.mrf.mxu0  ;;  %v733_v31 = vmul.f32 %v4009_v33, %v722_v29 }
 0x123   : > { %v2201_v3 = vadd.f32 %v3680_v62, %v2133_v39 }
 0x124   : > { %v1966_v48 = vpop.f32.mrf.mxu2 }
 0x125   : > { %2266 = vst.msk [vmem:[%s3696_s12 + $0x58] sm:$0xff] %vm2254_vm2, %v2201_v3  ;;  %2530 = vmatmul.msk.f32.gmra.mxu0 %vm383_vm1, %v3844_v42  ;;  %2628 = vmatmul.msk.f32.gmra.mxu3 %vm383_vm1, %v3481_v52  ;;  %v702_v52 = vmul.f32 %v3918_v14, %v691_v55  ;;  %v723_v55 = vld [vmem:[%s3997_s21 + $0x8] sm:$0xff] }
 0x126   : > { %v1495_v19 = vpop.f32.mrf.mxu1 }
 0x127   : > { %v1496_v51 = vadd.f32 %v1495_v19, %v1271_v53  ;;  %v712_v50 = vadd.f32 %v708_v10, %v702_v52  ;;  %v734_v52 = vmul.f32 %v4009_v33, %v723_v55 }
 0x128   : > { %v3958_v11 = vpop.f32.mrf.mxu3 }
 0x129   : > { %v2134_v59 = vadd.f32 %v1966_v48, %v1496_v51  ;;  %2595 = vmatmul.msk.f32.gmra.mxu1 %vm383_vm1, %v3753_v24  ;;  %2663 = vmatmul.msk.f32.gmra.mxu2 %vm383_vm1, %v3955_v49  ;;  %716 = vst.msk [vmem:[#allocation2 + $0x150] sm:$0xff] %vm383_vm1, %v712_v50  ;;  %v4025_v48 = vld [vmem:[#allocation2 + $0x140] sm:$0xff] }
 0x12a   : > { %v1274_v6 = vpop.f32.mrf.mxu0 }
 0x12b   : > { %v2202_v2 = vadd.f32 %v3680_v62, %v2134_v59 }
 0x12c   : > { %v1969_v35 = vpop.f32.mrf.mxu2 }
 0x12d   : > { %2267 = vst.msk [vmem:[%s3696_s12 + $0x60] sm:$0xff] %vm2254_vm2, %v2202_v2  ;;  %2531 = vmatmul.msk.f32.gmra.mxu0 %vm383_vm1, %v3864_v34  ;;  %2629 = vmatmul.msk.f32.gmra.mxu3 %vm383_vm1, %v3504_v7  ;;  %v703_v7 = vmul.f32 %v3918_v14, %v692_v20  ;;  %v4002_v14 = vld [vmem:[#allocation2 + $0x138] sm:$0xff] }
 0x12e   : > { %v1498_v24 = vpop.f32.mrf.mxu1 }
 0x12f   : > { %v1499_v8 = vadd.f32 %v1498_v24, %v1274_v6  ;;  %v713_v38 = vadd.f32 %v709_v17, %v703_v7  ;;  %v1700_v6 = vld [vmem:[#allocation2 + $0x1c8] sm:$0xff]  ;;  %v729_v7 = vld [vmem:[%s4000_s24 + $0x10] sm:$0xff] }
 0x130   : > { %v3979_v60 = vpop.f32.mrf.mxu3 }
 0x131   : > { %v2135_v44 = vadd.f32 %v1969_v35, %v1499_v8  ;;  %2596 = vmatmul.msk.f32.gmra.mxu1 %vm383_vm1, %v3773_v15  ;;  %2664 = vmatmul.msk.f32.gmra.mxu2 %vm383_vm1, %v3976_v16  ;;  %717 = vst.msk [vmem:[#allocation2 + $0x158] sm:$0xff] %vm383_vm1, %v713_v38  ;;  %v4044_v8 = vld [vmem:[#allocation2 + $0x148] sm:$0xff]  ;;  %v1701_v38 = vld [vmem:[#allocation2 + $0x1d0] sm:$0xff] }
 0x132   : > { %v1277_v25 = vpop.f32.mrf.mxu0 }
 0x133   : > { %v2203_v56 = vadd.f32 %v3680_v62, %v2135_v44  ;;  %v724_v44 = vld [vmem:[%s3997_s21 + $0x10] sm:$0xff] }
 0x134   : > { %v1972_v28 = vpop.f32.mrf.mxu2 }
 0x135   : > { %2268 = vst.msk [vmem:[%s3696_s12 + $0x68] sm:$0xff] %vm2254_vm2, %v2203_v56  ;;  %2532 = vmatmul.msk.f32.gmra.mxu0 %vm383_vm1, %v3885_v54  ;;  %2630 = vmatmul.msk.f32.gmra.mxu3 %vm383_vm1, %v3535_v23  ;;  %v4011_v23 = vstv %s737_s20 }
 0x136   : > { %v1501_v15 = vpop.f32.mrf.mxu1  ;;  %v739_v39 = vmul.f32 %v4011_v23, %v727_v18  ;;  %v740_v2 = vmul.f32 %v4011_v23, %v728_v47  ;;  %v4063_v18 = vld [vmem:[#allocation2 + $0x150] sm:$0xff] }
 0x137   : > { %v1502_v21 = vadd.f32 %v1501_v15, %v1277_v25  ;;  %v735_v25 = vmul.f32 %v4009_v33, %v724_v44 }
 0x138   : > { %v4005_v43 = vpop.f32.mrf.mxu3  ;;  %v743_v3 = vadd.f32 %v739_v39, %v733_v31  ;;  %v744_v24 = vadd.f32 %v740_v2, %v734_v52  ;;  %v725_v39 = vld [vmem:[%s3997_s21 + $0x18] sm:$0xff] }
 0x139   : > { %v2136_v36 = vadd.f32 %v1972_v28, %v1502_v21  ;;  %2597 = vmatmul.msk.f32.gmra.mxu1 %vm383_vm1, %v3794_v30  ;;  %2665 = vmatmul.msk.f32.gmra.mxu2 %vm383_vm1, %v4002_v14  ;;  %v741_v28 = vmul.f32 %v4011_v23, %v729_v7  ;;  %v1704_v7 = vld [vmem:[#allocation2 + $0x1e8] sm:$0xff] }
 0x13a   : > { %v1280_v37 = vpop.f32.mrf.mxu0  ;;  %747 = vst.msk [vmem:[#allocation2 + $0x160] sm:$0xff] %vm383_vm1, %v743_v3 }
 0x13b   : > { %v2204_v53 = vadd.f32 %v3680_v62, %v2136_v36  ;;  %748 = vst.msk [vmem:[#allocation2 + $0x168] sm:$0xff] %vm383_vm1, %v744_v24  ;;  %v745_v29 = vadd.f32 %v741_v28, %v735_v25 }
 0x13c   : > { %v1975_v5 = vpop.f32.mrf.mxu2 }
 0x13d   : > { %2269 = vst.msk [vmem:[%s3696_s12 + $0x70] sm:$0xff] %vm2254_vm2, %v2204_v53  ;;  %2533 = vmatmul.msk.f32.gmra.mxu0 %vm383_vm1, %v3911_v61  ;;  %2682 = vmatmul.msk.f32.vlgmr.msra.gmra.mxu3 %vm383_vm1, %v1699_v41  ;;  %v736_v53 = vmul.f32 %v4009_v33, %v725_v39 }
 0x13e   : > { %v1504_v30 = vpop.f32.mrf.mxu1  ;;  %749 = vst.msk [vmem:[#allocation2 + $0x170] sm:$0xff] %vm383_vm1, %v745_v29  ;;  %v1705_v29 = vld [vmem:[#allocation2 + $0x1f0] sm:$0xff] }
 0x13f   : > { %v1505_v19 = vadd.f32 %v1504_v30, %v1280_v37  ;;  %v730_v37 = vld [vmem:[%s4000_s24 + $0x18] sm:$0xff] }
 0x140   : > { %v4028_v51 = vpop.f32.mrf.mxu3  ;;  %v742_v30 = vmul.f32 %v4011_v23, %v730_v37 }
 0x141   : > { %v2137_v59 = vadd.f32 %v1975_v5, %v1505_v19  ;;  %2598 = vmatmul.msk.f32.gmra.mxu1 %vm383_vm1, %v3820_v45  ;;  %2666 = vmatmul.msk.f32.gmra.mxu2 %vm383_vm1, %v4025_v48  ;;  %v1702_v5 = vld [vmem:[#allocation2 + $0x1d8] sm:$0xff]  ;;  %v4097_v24 = vld [vmem:[#allocation2 + $0x160] sm:$0xff] }
 0x142   : > { %v1283_v10 = vpop.f32.mrf.mxu0  ;;  %v746_v47 = vadd.f32 %v742_v30, %v736_v53 }
 0x143   : > { %v2205_v50 = vadd.f32 %v3680_v62, %v2137_v59  ;;  %v4082_v59 = vld [vmem:[#allocation2 + $0x158] sm:$0xff] }
 0x144   : > { %v1978_v35 = vpop.f32.mrf.mxu2  ;;  %750 = vst.msk [vmem:[#allocation2 + $0x178] sm:$0xff] %vm383_vm1, %v746_v47 }
 0x145   : > { %2270 = vst.msk [vmem:[%s3696_s12 + $0x78] sm:$0xff] %vm2254_vm2, %v2205_v50  ;;  %2534 = vmatmul.msk.f32.gmra.mxu0 %vm383_vm1, %v3935_v32  ;;  %2683 = vmatmul.msk.f32.gmra.mxu3 %vm383_vm1, %v1700_v6  ;;  %v1703_v6 = vld [vmem:[#allocation2 + $0x1e0] sm:$0xff]  ;;  %v4126_v39 = vld [vmem:[#allocation2 + $0x170] sm:$0xff] }
 0x146   : > { %v1507_v45 = vpop.f32.mrf.mxu1 }
 0x147   : > { %v1508_v20 = vadd.f32 %v1507_v45, %v1283_v10 }
 0x148   : > { %v4047_v13 = vpop.f32.mrf.mxu3 }
 0x149   : > { %v2138_v17 = vadd.f32 %v1978_v35, %v1508_v20  ;;  %2599 = vmatmul.msk.f32.gmra.mxu1 %vm383_vm1, %v3844_v42  ;;  %2667 = vmatmul.msk.f32.gmra.mxu2 %vm383_vm1, %v4044_v8 }
 0x14a   : > { %v1286_v56 = vpop.f32.mrf.mxu0 }
 0x14b   : > { %v2206_v15 = vadd.f32 %v3680_v62, %v2138_v17 }
 0x14c   : > { %v1981_v21 = vpop.f32.mrf.mxu2 }
 0x14d   : > { %2271 = vst.msk [vmem:[%s3696_s12 + $0x80] sm:$0xff] %vm2254_vm2, %v2206_v15  ;;  %2535 = vmatmul.msk.f32.gmra.mxu0 %vm383_vm1, %v3955_v49  ;;  %2684 = vmatmul.msk.f32.gmra.mxu3 %vm383_vm1, %v1701_v38  ;;  %v4111_v38 = vld [vmem:[#allocation2 + $0x168] sm:$0xff] }
 0x14e   : > { %v1510_v42 = vpop.f32.mrf.mxu1 }
 0x14f   : > { %v1511_v36 = vadd.f32 %v1510_v42, %v1286_v56 }
 0x150   : > { %v4066_v31 = vpop.f32.mrf.mxu3 }
 0x151   : > { %v2139_v41 = vadd.f32 %v1981_v21, %v1511_v36  ;;  %2600 = vmatmul.msk.f32.gmra.mxu1 %vm383_vm1, %v3864_v34  ;;  %2668 = vmatmul.msk.f32.gmra.mxu2 %vm383_vm1, %v4063_v18 }
 0x152   : > { %v1289_v3 = vpop.f32.mrf.mxu0 }
 0x153   : > { %v2207_v19 = vadd.f32 %v3680_v62, %v2139_v41 }
 0x154   : > { %v1984_v55 = vpop.f32.mrf.mxu2 }
 0x155   : > { %2272 = vst.msk [vmem:[%s3696_s12 + $0x88] sm:$0xff] %vm2254_vm2, %v2207_v19  ;;  %2536 = vmatmul.msk.f32.gmra.mxu0 %vm383_vm1, %v3976_v16  ;;  %2685 = vmatmul.msk.f32.gmra.mxu3 %vm383_vm1, %v1702_v5  ;;  %v1706_v5 = vld [vmem:[#allocation2 + $0x1f8] sm:$0xff] }
 0x156   : > { %v1513_v34 = vpop.f32.mrf.mxu1 }
 0x157   : > { %v1514_v33 = vadd.f32 %v1513_v34, %v1289_v3 }
 0x158   : > { %v4085_v52 = vpop.f32.mrf.mxu3 }
 0x159   : > { %v2140_v23 = vadd.f32 %v1984_v55, %v1514_v33  ;;  %2601 = vmatmul.msk.f32.gmra.mxu1 %vm383_vm1, %v3885_v54  ;;  %2669 = vmatmul.msk.f32.gmra.mxu2 %vm383_vm1, %v4082_v59  ;;  %v4146_v55 = vld [vmem:[#allocation2 + $0x178] sm:$0xff]  ;;  %v920_v33 = vld [vmem:[%s4141_s8] sm:$0xff] }
 0x15a   : > { %v1292_v10 = vpop.f32.mrf.mxu0 }
 0x15b   : > { %v2208_v2 = vadd.f32 %v3680_v62, %v2140_v23  ;;  %v925_v23 = vld [vmem:[%s4144_s9] sm:$0xff] }
 0x15c   : > { %v1987_v50 = vpop.f32.mrf.mxu2 }
 0x15d   : > { %2273 = vst.msk [vmem:[%s3696_s12 + $0x90] sm:$0xff] %vm2254_vm2, %v2208_v2  ;;  %2537 = vmatmul.msk.f32.gmra.mxu0 %vm383_vm1, %v4002_v14  ;;  %2686 = vmatmul.msk.f32.gmra.mxu3 %vm383_vm1, %v1703_v6  ;;  %v4154_v6 = vstv %s935_s30 }
 0x15e   : > { %v1516_v35 = vpop.f32.mrf.mxu1 }
 0x15f   : > { %v1517_v54 = vadd.f32 %v1516_v35, %v1292_v10  ;;  %v4152_v10 = vstv %s929_s29 }
 0x160   : > { %v4099_v45 = vpop.f32.mrf.mxu3 }
 0x161   : > { %v2141_v20 = vadd.f32 %v1987_v50, %v1517_v54  ;;  %2602 = vmatmul.msk.f32.gmra.mxu1 %vm383_vm1, %v3911_v61  ;;  %2670 = vmatmul.msk.f32.gmra.mxu2 %vm383_vm1, %v4097_v24  ;;  %v931_v50 = vmul.f32 %v4152_v10, %v920_v33  ;;  %v1707_v54 = vld [vmem:[#allocation2 + $0x200] sm:$0xff]  ;;  %v927_v33 = vld [vmem:[%s4144_s9 + $0x10] sm:$0xff] }
 0x162   : > { %v1295_v44 = vpop.f32.mrf.mxu0 }
 0x163   : > { %v2209_v17 = vadd.f32 %v3680_v62, %v2141_v20  ;;  %v937_v20 = vmul.f32 %v4154_v6, %v925_v23 }
 0x164   : > { %v1990_v25 = vpop.f32.mrf.mxu2 }
 0x165   : > { %2274 = vst.msk [vmem:[%s3696_s12 + $0x98] sm:$0xff] %vm2254_vm2, %v2209_v17  ;;  %2538 = vmatmul.msk.f32.gmra.mxu0 %vm383_vm1, %v4025_v48  ;;  %2687 = vmatmul.msk.f32.gmra.mxu3 %vm383_vm1, %v1704_v7  ;;  %v941_v17 = vadd.f32 %v937_v20, %v931_v50 }
 0x166   : > { %v1519_v56 = vpop.f32.mrf.mxu1 }
 0x167   : > { %v1520_v61 = vadd.f32 %v1519_v56, %v1295_v44  ;;  %945 = vst.msk [vmem:[#allocation2 + $0x220] sm:$0xff] %vm383_vm1, %v941_v17  ;;  %v1693_v17 = vld [vmem:[#allocation2 + $0x190] sm:$0xff] }
 0x168   : > { %v4113_v28 = vpop.f32.mrf.mxu3 }
 0x169   : > { %v2142_v15 = vadd.f32 %v1990_v25, %v1520_v61  ;;  %2603 = vmatmul.msk.f32.gmra.mxu1 %vm383_vm1, %v3935_v32  ;;  %2671 = vmatmul.msk.f32.gmra.mxu2 %vm383_vm1, %v4111_v38  ;;  %v1691_v25 = vld [vmem:[#allocation2 + $0x180] sm:$0xff] }
 0x16a   : > { %v1298_v21 = vpop.f32.mrf.mxu0 }
 0x16b   : > { %v2210_v42 = vadd.f32 %v3680_v62, %v2142_v15  ;;  %v921_v15 = vld [vmem:[%s4141_s8 + $0x8] sm:$0xff] }
 0x16c   : > { %v1993_v36 = vpop.f32.mrf.mxu2 }
 0x16d   : > { %2275 = vst.msk [vmem:[%s3696_s12 + $0xa0] sm:$0xff] %vm2254_vm2, %v2210_v42  ;;  %2539 = vmatmul.msk.f32.gmra.mxu0 %vm383_vm1, %v4044_v8  ;;  %2688 = vmatmul.msk.f32.gmra.mxu3 %vm383_vm1, %v1705_v29  ;;  %v932_v42 = vmul.f32 %v4152_v10, %v921_v15  ;;  %v928_v15 = vld [vmem:[%s4144_s9 + $0x18] sm:$0xff] }
 0x16e   : > { %v1522_v32 = vpop.f32.mrf.mxu1 }
 0x16f   : > { %v1523_v37 = vadd.f32 %v1522_v32, %v1298_v21  ;;  %v926_v21 = vld [vmem:[%s4144_s9 + $0x8] sm:$0xff] }
 0x170   : > { %v4128_v41 = vpop.f32.mrf.mxu3  ;;  %v1708_v32 = vld [vmem:[#allocation2 + $0x208] sm:$0xff] }
 0x171   : > { %v2143_v53 = vadd.f32 %v1993_v36, %v1523_v37  ;;  %2604 = vmatmul.msk.f32.gmra.mxu1 %vm383_vm1, %v3955_v49  ;;  %2672 = vmatmul.msk.f32.gmra.mxu2 %vm383_vm1, %v4126_v39  ;;  %v938_v37 = vmul.f32 %v4154_v6, %v926_v21 }
 0x172   : > { %v1301_v3 = vpop.f32.mrf.mxu0 }
 0x173   : > { %v2211_v30 = vadd.f32 %v3680_v62, %v2143_v53 }
 0x174   : > { %v1996_v19 = vpop.f32.mrf.mxu2 }
 0x175   : > { %2276 = vst.msk [vmem:[%s3696_s12 + $0xa8] sm:$0xff] %vm2254_vm2, %v2211_v30  ;;  %2540 = vmatmul.msk.f32.gmra.mxu0 %vm383_vm1, %v4063_v18  ;;  %2689 = vmatmul.msk.f32.gmra.mxu3 %vm383_vm1, %v1706_v5  ;;  %v942_v5 = vadd.f32 %v938_v37, %v932_v42  ;;  %v1692_v30 = vld [vmem:[#allocation2 + $0x188] sm:$0xff]  ;;  %v1710_v42 = vld [vmem:[#allocation2 + $0x218] sm:$0xff] }
 0x176   : > { %v1525_v49 = vpop.f32.mrf.mxu1 }
 0x177   : > { %v1526_v47 = vadd.f32 %v1525_v49, %v1301_v3  ;;  %946 = vst.msk [vmem:[#allocation2 + $0x228] sm:$0xff] %vm383_vm1, %v942_v5 }
 0x178   : > { %v4148_v34 = vpop.f32.mrf.mxu3 }
 0x179   : > { %v2144_v2 = vadd.f32 %v1996_v19, %v1526_v47  ;;  %2605 = vmatmul.msk.f32.gmra.mxu1 %vm383_vm1, %v3976_v16  ;;  %2673 = vmatmul.msk.f32.gmra.mxu2 %vm383_vm1, %v4146_v55  ;;  %v922_v47 = vld [vmem:[%s4141_s8 + $0x10] sm:$0xff] }
 0x17a   : > { %v1304_v35 = vpop.f32.mrf.mxu0 }
 0x17b   : > { %v2212_v44 = vadd.f32 %v3680_v62, %v2144_v2  ;;  %v933_v2 = vmul.f32 %v4152_v10, %v922_v47 }
 0x17c   : > { %v1999_v7 = vpop.f32.mrf.mxu2 }
 0x17d   : > { %2277 = vst.msk [vmem:[%s3696_s12 + $0xb0] sm:$0xff] %vm2254_vm2, %v2212_v44  ;;  %2541 = vmatmul.msk.f32.gmra.mxu0 %vm383_vm1, %v4082_v59  ;;  %2690 = vmatmul.msk.f32.gmra.mxu3 %vm383_vm1, %v1707_v54  ;;  %v939_v54 = vmul.f32 %v4154_v6, %v927_v33 }
 0x17e   : > { %v1528_v16 = vpop.f32.mrf.mxu1 }
 0x17f   : > { %v1529_v56 = vadd.f32 %v1528_v16, %v1304_v35  ;;  %v1709_v35 = vld [vmem:[#allocation2 + $0x210] sm:$0xff] }
 0x180   : > { %v4169_v61 = vpop.f32.mrf.mxu3 }
 0x181   : > { %v2145_v29 = vadd.f32 %v1999_v7, %v1529_v56  ;;  %2606 = vmatmul.msk.f32.gmra.mxu1 %vm383_vm1, %v4002_v14  ;;  %2674 = vmatmul.msk.f32.gmra.mxu2 %vm383_vm1, %v1691_v25  ;;  %v943_v7 = vadd.f32 %v939_v54, %v933_v2  ;;  %v923_v56 = vld [vmem:[%s4141_s8 + $0x18] sm:$0xff]  ;;  %v1695_v2 = vld [vmem:[#allocation2 + $0x1a0] sm:$0xff] }
 0x182   : > { %v1307_v36 = vpop.f32.mrf.mxu0  ;;  %v934_v21 = vmul.f32 %v4152_v10, %v923_v56  ;;  %v1694_v10 = vld [vmem:[#allocation2 + $0x198] sm:$0xff] }
 0x183   : > { %v2213_v53 = vadd.f32 %v3680_v62, %v2145_v29  ;;  %947 = vst.msk [vmem:[#allocation2 + $0x230] sm:$0xff] %vm383_vm1, %v943_v7 }
 0x184   : > { %v2002_v3 = vpop.f32.mrf.mxu2 }
 0x185   : > { %2278 = vst.msk [vmem:[%s3696_s12 + $0xb8] sm:$0xff] %vm2254_vm2, %v2213_v53  ;;  %2542 = vmatmul.msk.f32.gmra.mxu0 %vm383_vm1, %v4097_v24  ;;  %2691 = vmatmul.msk.f32.gmra.mxu3 %vm383_vm1, %v1708_v32  ;;  %v4213_v32 = vld [vmem:[%s4426_s6] ss:$0 sm:$0xff] }
 0x186   : > { %v1531_v14 = vpop.f32.mrf.mxu1 }
 0x187   : > { %v1532_v19 = vadd.f32 %v1531_v14, %v1307_v36  ;;  %v940_v36 = vmul.f32 %v4154_v6, %v928_v15 }
 0x188   : > { %v4185_v49 = vpop.f32.mrf.mxu3 }
 0x189   : > { %v2146_v23 = vadd.f32 %v2002_v3, %v1532_v19  ;;  %2607 = vmatmul.msk.f32.gmra.mxu1 %vm383_vm1, %v4025_v48  ;;  %2675 = vmatmul.msk.f32.gmra.mxu2 %vm383_vm1, %v1692_v30  ;;  %v944_v3 = vadd.f32 %v940_v36, %v934_v21  ;;  %v1711_v19 = vld [vmem:[#allocation2 + $0x220] sm:$0xff]  ;;  %v2791_v36 = vld [vmem:[#allocation2 + $0x188] sm:$0xff] }
 0x18a   : > { %v1310_v50 = vpop.f32.mrf.mxu0  ;;  %v1713_v21 = vld [vmem:[#allocation2 + $0x230] sm:$0xff] }
 0x18b   : > { %v2214_v20 = vadd.f32 %v3680_v62, %v2146_v23  ;;  %948 = vst.msk [vmem:[#allocation2 + $0x238] sm:$0xff] %vm383_vm1, %v944_v3 }
 0x18c   : > { %v2005_v44 = vpop.f32.mrf.mxu2 }
 0x18d   : > { %2279 = vst.msk [vmem:[%s3696_s12 + $0xc0] sm:$0xff] %vm2254_vm2, %v2214_v20  ;;  %2543 = vmatmul.msk.f32.gmra.mxu0 %vm383_vm1, %v4111_v38  ;;  %2692 = vmatmul.msk.f32.gmra.mxu3 %vm383_vm1, %v1709_v35  ;;  %v1712_v20 = vld [vmem:[#allocation2 + $0x228] sm:$0xff] }
 0x18e   : > { %v1534_v48 = vpop.f32.mrf.mxu1 }
 0x18f   : > { %v1535_v16 = vadd.f32 %v1534_v48, %v1310_v50  ;;  %v2790_v48 = vld [vmem:[#allocation2 + $0x180] sm:$0xff] }
 0x190   : > { %v4201_v25 = vpop.f32.mrf.mxu3 }
 0x191   : > { %v2147_v62 = vadd.f32 %v2005_v44, %v1535_v16  ;;  %2608 = vmatmul.msk.f32.gmra.mxu1 %vm383_vm1, %v4044_v8  ;;  %2676 = vmatmul.msk.f32.gmra.mxu2 %vm383_vm1, %v1693_v17  ;;  %v1696_v16 = vld [vmem:[#allocation2 + $0x1a8] sm:$0xff] }
 0x192   : > { %v1313_v29 = vpop.f32.mrf.mxu0 }
 0x193   : > { %v2215_v37 = vadd.f32 %v4213_v32, %v2147_v62 }
 0x194   : > { %v2008_v53 = vpop.f32.mrf.mxu2 }
 0x195   : > { %2280 = vst.msk [vmem:[%s3696_s12 + $0xc8] sm:$0xff] %vm2254_vm2, %v2215_v37  ;;  %2544 = vmatmul.msk.f32.gmra.mxu0 %vm383_vm1, %v4126_v39  ;;  %2693 = vmatmul.msk.f32.gmra.mxu3 %vm383_vm1, %v1710_v42 }
 0x196   : > { %v1537_v8 = vpop.f32.mrf.mxu1 }
 0x197   : > { %v1538_v6 = vadd.f32 %v1537_v8, %v1313_v29 }
 0x198   : > { %v4222_v5 = vpop.f32.mrf.mxu3 }
 0x199   : > { %v2148_v14 = vadd.f32 %v2008_v53, %v1538_v6  ;;  %2609 = vmatmul.msk.f32.gmra.mxu1 %vm383_vm1, %v4063_v18  ;;  %2677 = vmatmul.msk.f32.gmra.mxu2 %vm383_vm1, %v1694_v10  ;;  %v1697_v53 = vld [vmem:[#allocation2 + $0x1b0] sm:$0xff]  ;;  %v1714_v6 = vld [vmem:[#allocation2 + $0x238] sm:$0xff] }
 0x19a   : > { %v1316_v30 = vpop.f32.mrf.mxu0 }
 0x19b   : > { %v2216_v47 = vadd.f32 %v4213_v32, %v2148_v14 }
 0x19c   : > { %v2011_v33 = vpop.f32.mrf.mxu2 }
 0x19d   : > { %2281 = vst.msk [vmem:[%s3696_s12 + $0xd0] sm:$0xff] %vm2254_vm2, %v2216_v47  ;;  %2545 = vmatmul.msk.f32.gmra.mxu0 %vm383_vm1, %v4146_v55  ;;  %2694 = vmatmul.msk.f32.gmra.mxu3 %vm383_vm1, %v1711_v19  ;;  %v2792_v19 = vld [vmem:[#allocation2 + $0x190] sm:$0xff] }
 0x19e   : > { %v1540_v23 = vpop.f32.mrf.mxu1 }
 0x19f   : > { %v1541_v50 = vadd.f32 %v1540_v23, %v1316_v30 }
 0x1a0   : > { %v4233_v35 = vpop.f32.mrf.mxu3 }
 0x1a1   : > { %v2149_v18 = vadd.f32 %v2011_v33, %v1541_v50  ;;  %2610 = vmatmul.msk.f32.gmra.mxu1 %vm383_vm1, %v4082_v59  ;;  %2678 = vmatmul.msk.f32.gmra.mxu2 %vm383_vm1, %v1695_v2  ;;  %v1698_v33 = vld [vmem:[#allocation2 + $0x1b8] sm:$0xff] }
 0x1a2   : > { %v1319_v54 = vpop.f32.mrf.mxu0 }
 0x1a3   : > { %v2217_v44 = vadd.f32 %v4213_v32, %v2149_v18 }
 0x1a4   : > { %v2014_v7 = vpop.f32.mrf.mxu2 }
 0x1a5   : > { %2282 = vst.msk [vmem:[%s3696_s12 + $0xd8] sm:$0xff] %vm2254_vm2, %v2217_v44  ;;  %2546 = vmatmul.msk.f32.gmra.mxu0 %vm383_vm1, %v2790_v48  ;;  %2695 = vmatmul.msk.f32.gmra.mxu3 %vm383_vm1, %v1712_v20  ;;  %v2793_v20 = vld [vmem:[#allocation2 + $0x198] sm:$0xff] }
 0x1a6   : > { %v1543_v17 = vpop.f32.mrf.mxu1 }
 0x1a7   : > { %v1544_v56 = vadd.f32 %v1543_v17, %v1319_v54 }
 0x1a8   : > { %v4243_v15 = vpop.f32.mrf.mxu3 }
 0x1a9   : > { %v2150_v59 = vadd.f32 %v2014_v7, %v1544_v56  ;;  %2611 = vmatmul.msk.f32.gmra.mxu1 %vm383_vm1, %v4097_v24  ;;  %2679 = vmatmul.msk.f32.gmra.mxu2 %vm383_vm1, %v1696_v16  ;;  %v1604_v7 = vadd.f32 %v4028_v51, %v3660_v9  ;;  %v1607_v9 = vadd.f32 %v4047_v13, %v3682_v63 }
 0x1aa   : > { %v1322_v62 = vpop.f32.mrf.mxu0  ;;  %v1610_v63 = vadd.f32 %v4066_v31, %v3707_v4  ;;  %v1613_v4 = vadd.f32 %v4085_v52, %v3732_v40  ;;  %v1616_v40 = vadd.f32 %v4099_v45, %v3756_v0  ;;  %v1619_v0 = vadd.f32 %v4113_v28, %v3776_v22 }
 0x1ab   : > { %v2218_v29 = vadd.f32 %v4213_v32, %v2150_v59  ;;  %v1622_v22 = vadd.f32 %v4128_v41, %v3797_v57  ;;  %v1625_v57 = vadd.f32 %v4148_v34, %v3823_v1  ;;  %v1628_v1 = vadd.f32 %v4169_v61, %v3847_v27 }
 0x1ac   : > { %v2017_v42 = vpop.f32.mrf.mxu2  ;;  %v1631_v27 = vadd.f32 %v4185_v49, %v3867_v46  ;;  %v1634_v46 = vadd.f32 %v4201_v25, %v3888_v26  ;;  %v1637_v26 = vadd.f32 %v4222_v5, %v3914_v12  ;;  %v1640_v12 = vadd.f32 %v4233_v35, %v3938_v58 }
 0x1ad   : > { %2283 = vst.msk [vmem:[%s3696_s12 + $0xe0] sm:$0xff] %vm2254_vm2, %v2218_v29  ;;  %2547 = vmatmul.msk.f32.gmra.mxu0 %vm383_vm1, %v2791_v36  ;;  %2696 = vmatmul.msk.f32.gmra.mxu3 %vm383_vm1, %v1713_v21  ;;  %v1643_v58 = vadd.f32 %v4243_v15, %v3958_v11 }
 0x1ae   : > { %v1546_v37 = vpop.f32.mrf.mxu1 }
 0x1af   : > { %v1547_v3 = vadd.f32 %v1546_v37, %v1322_v62 }
 0x1b0   : > { %v4253_v8 = vpop.f32.mrf.mxu3 }
 0x1b1   : > { %v2151_v24 = vadd.f32 %v2017_v42, %v1547_v3  ;;  %2612 = vmatmul.msk.f32.gmra.mxu1 %vm383_vm1, %v4111_v38  ;;  %2680 = vmatmul.msk.f32.gmra.mxu2 %vm383_vm1, %v1697_v53  ;;  %v1646_v11 = vadd.f32 %v4253_v8, %v3979_v60 }
 0x1b2   : > { %v1325_v10 = vpop.f32.mrf.mxu0 }
 0x1b3   : > { %v2219_v14 = vadd.f32 %v4213_v32, %v2151_v24 }
 0x1b4   : > { %v2020_v30 = vpop.f32.mrf.mxu2 }
 0x1b5   : > { %2284 = vst.msk [vmem:[%s3696_s12 + $0xe8] sm:$0xff] %vm2254_vm2, %v2219_v14  ;;  %2548 = vmatmul.msk.f32.gmra.mxu0 %vm383_vm1, %v2792_v19  ;;  %2697 = vmatmul.msk.f32.gmra.mxu3 %vm383_vm1, %v1714_v6 }
 0x1b6   : > { %v1549_v47 = vpop.f32.mrf.mxu1 }
 0x1b7   : > { %v1550_v23 = vadd.f32 %v1549_v47, %v1325_v10 }
 0x1b8   : > { %v4263_v2 = vpop.f32.mrf.mxu3 }
 0x1b9   : > { %v2152_v38 = vadd.f32 %v2020_v30, %v1550_v23  ;;  %2613 = vmatmul.msk.f32.gmra.mxu1 %vm383_vm1, %v4126_v39  ;;  %2681 = vmatmul.msk.f32.gmra.mxu2 %vm383_vm1, %v1698_v33  ;;  %v1649_v60 = vadd.f32 %v4263_v2, %v4005_v43 }
 0x1ba   : > { %v1328_v50 = vpop.f32.mrf.mxu0 }
 0x1bb   : > { %v2220_v18 = vadd.f32 %v4213_v32, %v2152_v38 }
 0x1bc   : > { %v2023_v54 = vpop.f32.mrf.mxu2 }
 0x1bd   : > { %2285 = vst.msk [vmem:[%s3696_s12 + $0xf0] sm:$0xff] %vm2254_vm2, %v2220_v18  ;;  %2549 = vmatmul.msk.f32.gmra.mxu0 %vm383_vm1, %v2793_v20 }
 0x1be   : > { %v1552_v44 = vpop.f32.mrf.mxu1 }
 0x1bf   : > { %v1553_v48 = vadd.f32 %v1552_v44, %v1328_v50 }
 0x1c0   : > { %v2074_v17 = vpop.f32.mrf.mxu3 }
 0x1c1   : > { %v2153_v39 = vadd.f32 %v2023_v54, %v1553_v48  ;;  %2614 = vmatmul.msk.f32.gmra.mxu1 %vm383_vm1, %v4146_v55  ;;  %v2170_v16 = vadd.f32 %v2074_v17, %v1604_v7 }
 0x1c2   : > { %v1331_v56 = vpop.f32.mrf.mxu0 }
 0x1c3   : > { %v2221_v59 = vadd.f32 %v4213_v32, %v2153_v39  ;;  %v2238_v62 = vadd.f32 %v4213_v32, %v2170_v16 }
 0x1c4   : > { %v2026_v21 = vpop.f32.mrf.mxu2 }
 0x1c5   : > { %2286 = vst.msk [vmem:[%s3696_s12 + $0xf8] sm:$0xff] %vm2254_vm2, %v2221_v59 }
 0x1c6   : > { %v1555_v29 = vpop.f32.mrf.mxu1  ;;  %2303 = vst.msk [vmem:[%s3696_s12 + $0x180] sm:$0xff] %vm2254_vm2, %v2238_v62 }
 0x1c7   : > { %v1556_v51 = vadd.f32 %v1555_v29, %v1331_v56 }
 0x1c8   : > { %v2077_v42 = vpop.f32.mrf.mxu3 }
 0x1c9   : > { %v2154_v55 = vadd.f32 %v2026_v21, %v1556_v51  ;;  %v2171_v36 = vadd.f32 %v2077_v42, %v1607_v9 }
 0x1ca   : > { %v1334_v37 = vpop.f32.mrf.mxu0 }
 0x1cb   : > { %v2222_v53 = vadd.f32 %v4213_v32, %v2154_v55  ;;  %v2239_v3 = vadd.f32 %v4213_v32, %v2171_v36 }
 0x1cc   : > { %v2029_v24 = vpop.f32.mrf.mxu2 }
 0x1cd   : > { %2287 = vst.msk [vmem:[%s3696_s12 + $0x100] sm:$0xff] %vm2254_vm2, %v2222_v53 }
 0x1ce   : > { %v1558_v10 = vpop.f32.mrf.mxu1  ;;  %2304 = vst.msk [vmem:[%s3696_s12 + $0x188] sm:$0xff] %vm2254_vm2, %v2239_v3 }
 0x1cf   : > { %v1559_v13 = vadd.f32 %v1558_v10, %v1334_v37 }
 0x1d0   : > { %v2080_v6 = vpop.f32.mrf.mxu3 }
 0x1d1   : > { %v2155_v14 = vadd.f32 %v2029_v24, %v1559_v13  ;;  %v2172_v30 = vadd.f32 %v2080_v6, %v1610_v63 }
 0x1d2   : > { %v1337_v19 = vpop.f32.mrf.mxu0 }
 0x1d3   : > { %v2223_v47 = vadd.f32 %v4213_v32, %v2155_v14  ;;  %v2240_v33 = vadd.f32 %v4213_v32, %v2172_v30 }
 0x1d4   : > { %v2032_v23 = vpop.f32.mrf.mxu2 }
 0x1d5   : > { %2288 = vst.msk [vmem:[%s3696_s12 + $0x108] sm:$0xff] %vm2254_vm2, %v2223_v47 }
 0x1d6   : > { %v1561_v38 = vpop.f32.mrf.mxu1  ;;  %2305 = vst.msk [vmem:[%s3696_s12 + $0x190] sm:$0xff] %vm2254_vm2, %v2240_v33 }
 0x1d7   : > { %v1562_v31 = vadd.f32 %v1561_v38, %v1337_v19 }
 0x1d8   : > { %v2083_v50 = vpop.f32.mrf.mxu3 }
 0x1d9   : > { %v2156_v18 = vadd.f32 %v2032_v23, %v1562_v31  ;;  %v2173_v54 = vadd.f32 %v2083_v50, %v1613_v4 }
 0x1da   : > { %v1340_v20 = vpop.f32.mrf.mxu0 }
 0x1db   : > { %v2224_v44 = vadd.f32 %v4213_v32, %v2156_v18  ;;  %v2241_v7 = vadd.f32 %v4213_v32, %v2173_v54 }
 0x1dc   : > { %v2035_v48 = vpop.f32.mrf.mxu2 }
 0x1dd   : > { %2289 = vst.msk [vmem:[%s3696_s12 + $0x110] sm:$0xff] %vm2254_vm2, %v2224_v44 }
 0x1de   : > { %v1564_v17 = vpop.f32.mrf.mxu1  ;;  %2306 = vst.msk [vmem:[%s3696_s12 + $0x198] sm:$0xff] %vm2254_vm2, %v2241_v7 }
 0x1df   : > { %v1565_v52 = vadd.f32 %v1564_v17, %v1340_v20 }
 0x1e0   : > { %v2086_v39 = vpop.f32.mrf.mxu3 }
 0x1e1   : > { %v2157_v16 = vadd.f32 %v2035_v48, %v1565_v52  ;;  %v2174_v56 = vadd.f32 %v2086_v39, %v1616_v40 }
 0x1e2   : > { %v1343_v59 = vpop.f32.mrf.mxu0 }
 0x1e3   : > { %v2225_v62 = vadd.f32 %v4213_v32, %v2157_v16  ;;  %v2242_v21 = vadd.f32 %v4213_v32, %v2174_v56 }
 0x1e4   : > { %v2038_v29 = vpop.f32.mrf.mxu2 }
 0x1e5   : > { %2290 = vst.msk [vmem:[%s3696_s12 + $0x118] sm:$0xff] %vm2254_vm2, %v2225_v62 }
 0x1e6   : > { %v1567_v9 = vpop.f32.mrf.mxu1  ;;  %2307 = vst.msk [vmem:[%s3696_s12 + $0x1a0] sm:$0xff] %vm2254_vm2, %v2242_v21 }
 0x1e7   : > { %v1568_v45 = vadd.f32 %v1567_v9, %v1343_v59 }
 0x1e8   : > { %v2089_v51 = vpop.f32.mrf.mxu3 }
 0x1e9   : > { %v2158_v42 = vadd.f32 %v2038_v29, %v1568_v45  ;;  %v2175_v55 = vadd.f32 %v2089_v51, %v1619_v0 }
 0x1ea   : > { %v1346_v36 = vpop.f32.mrf.mxu0 }
 0x1eb   : > { %v2226_v37 = vadd.f32 %v4213_v32, %v2158_v42  ;;  %v2243_v53 = vadd.f32 %v4213_v32, %v2175_v55 }
 0x1ec   : > { %v2041_v3 = vpop.f32.mrf.mxu2 }
 0x1ed   : > { %2291 = vst.msk [vmem:[%s3696_s12 + $0x120] sm:$0xff] %vm2254_vm2, %v2226_v37 }
 0x1ee   : > { %v1570_v24 = vpop.f32.mrf.mxu1  ;;  %2308 = vst.msk [vmem:[%s3696_s12 + $0x1a8] sm:$0xff] %vm2254_vm2, %v2243_v53 }
 0x1ef   : > { %v1571_v28 = vadd.f32 %v1570_v24, %v1346_v36 }
 0x1f0   : > { %v2092_v10 = vpop.f32.mrf.mxu3 }
 0x1f1   : > { %v2159_v63 = vadd.f32 %v2041_v3, %v1571_v28  ;;  %v2176_v13 = vadd.f32 %v2092_v10, %v1622_v22 }
 0x1f2   : > { %v1349_v6 = vpop.f32.mrf.mxu0 }
 0x1f3   : > { %v2227_v14 = vadd.f32 %v4213_v32, %v2159_v63  ;;  %v2244_v30 = vadd.f32 %v4213_v32, %v2176_v13 }
 0x1f4   : > { %v2044_v19 = vpop.f32.mrf.mxu2 }
 0x1f5   : > { %2292 = vst.msk [vmem:[%s3696_s12 + $0x128] sm:$0xff] %vm2254_vm2, %v2227_v14 }
 0x1f6   : > { %v1573_v47 = vpop.f32.mrf.mxu1  ;;  %2309 = vst.msk [vmem:[%s3696_s12 + $0x1b0] sm:$0xff] %vm2254_vm2, %v2244_v30 }
 0x1f7   : > { %v1574_v41 = vadd.f32 %v1573_v47, %v1349_v6 }
 0x1f8   : > { %v2095_v33 = vpop.f32.mrf.mxu3 }
 0x1f9   : > { %v2160_v23 = vadd.f32 %v2044_v19, %v1574_v41  ;;  %v2177_v38 = vadd.f32 %v2095_v33, %v1625_v57 }
 0x1fa   : > { %v1352_v4 = vpop.f32.mrf.mxu0 }
 0x1fb   : > { %v2228_v31 = vadd.f32 %v4213_v32, %v2160_v23  ;;  %v2245_v50 = vadd.f32 %v4213_v32, %v2177_v38 }
 0x1fc   : > { %v2047_v18 = vpop.f32.mrf.mxu2 }
 0x1fd   : > { %2293 = vst.msk [vmem:[%s3696_s12 + $0x130] sm:$0xff] %vm2254_vm2, %v2228_v31 }
 0x1fe   : > { %v1576_v54 = vpop.f32.mrf.mxu1  ;;  %2310 = vst.msk [vmem:[%s3696_s12 + $0x1b8] sm:$0xff] %vm2254_vm2, %v2245_v50 }
 0x1ff   : > { %v1577_v34 = vadd.f32 %v1576_v54, %v1352_v4 }
 0x200   : > { %v2098_v20 = vpop.f32.mrf.mxu3 }
 0x201   : > { %v2161_v44 = vadd.f32 %v2047_v18, %v1577_v34  ;;  %v2178_v7 = vadd.f32 %v2098_v20, %v1628_v1 }
 0x202   : > { %v1355_v48 = vpop.f32.mrf.mxu0 }
 0x203   : > { %v2229_v17 = vadd.f32 %v4213_v32, %v2161_v44  ;;  %v2246_v40 = vadd.f32 %v4213_v32, %v2178_v7 }
 0x204   : > { %v2050_v52 = vpop.f32.mrf.mxu2 }
 0x205   : > { %2294 = vst.msk [vmem:[%s3696_s12 + $0x138] sm:$0xff] %vm2254_vm2, %v2229_v17 }
 0x206   : > { %v1579_v39 = vpop.f32.mrf.mxu1  ;;  %2311 = vst.msk [vmem:[%s3696_s12 + $0x1c0] sm:$0xff] %vm2254_vm2, %v2246_v40 }
 0x207   : > { %v1580_v61 = vadd.f32 %v1579_v39, %v1355_v48 }
 0x208   : > { %v2101_v16 = vpop.f32.mrf.mxu3 }
 0x209   : > { %v2162_v56 = vadd.f32 %v2050_v52, %v1580_v61  ;;  %v2179_v59 = vadd.f32 %v2101_v16, %v1631_v27 }
 0x20a   : > { %v1358_v62 = vpop.f32.mrf.mxu0 }
 0x20b   : > { %v2230_v21 = vadd.f32 %v4213_v32, %v2162_v56  ;;  %v2247_v29 = vadd.f32 %v4213_v32, %v2179_v59 }
 0x20c   : > { %v2053_v9 = vpop.f32.mrf.mxu2 }
 0x20d   : > { %2295 = vst.msk [vmem:[%s3696_s12 + $0x140] sm:$0xff] %vm2254_vm2, %v2230_v21 }
 0x20e   : > { %v1582_v0 = vpop.f32.mrf.mxu1  ;;  %2312 = vst.msk [vmem:[%s3696_s12 + $0x1c8] sm:$0xff] %vm2254_vm2, %v2247_v29 }
 0x20f   : > { %v1583_v49 = vadd.f32 %v1582_v0, %v1358_v62 }
 0x210   : > { %v2104_v45 = vpop.f32.mrf.mxu3 }
 0x211   : > { %v2163_v51 = vadd.f32 %v2053_v9, %v1583_v49  ;;  %v2180_v42 = vadd.f32 %v2104_v45, %v1634_v46 }
 0x212   : > { %v1361_v55 = vpop.f32.mrf.mxu0 }
 0x213   : > { %v2231_v36 = vadd.f32 %v4213_v32, %v2163_v51  ;;  %v2248_v37 = vadd.f32 %v4213_v32, %v2180_v42 }
 0x214   : > { %v2056_v53 = vpop.f32.mrf.mxu2 }
 0x215   : > { %2296 = vst.msk [vmem:[%s3696_s12 + $0x148] sm:$0xff] %vm2254_vm2, %v2231_v36 }
 0x216   : > { %v1585_v3 = vpop.f32.mrf.mxu1  ;;  %2313 = vst.msk [vmem:[%s3696_s12 + $0x1d0] sm:$0xff] %vm2254_vm2, %v2248_v37 }
 0x217   : > { %v1586_v25 = vadd.f32 %v1585_v3, %v1361_v55 }
 0x218   : > { %v2107_v24 = vpop.f32.mrf.mxu3 }
 0x219   : > { %v2164_v22 = vadd.f32 %v2056_v53, %v1586_v25  ;;  %v2181_v28 = vadd.f32 %v2107_v24, %v1637_v26 }
 0x21a   : > { %v1364_v10 = vpop.f32.mrf.mxu0 }
 0x21b   : > { %v2232_v63 = vadd.f32 %v4213_v32, %v2164_v22  ;;  %v2249_v13 = vadd.f32 %v4213_v32, %v2181_v28 }
 0x21c   : > { %v2059_v6 = vpop.f32.mrf.mxu2 }
 0x21d   : > { %2297 = vst.msk [vmem:[%s3696_s12 + $0x150] sm:$0xff] %vm2254_vm2, %v2232_v63 }
 0x21e   : > { %v1588_v14 = vpop.f32.mrf.mxu1  ;;  %2314 = vst.msk [vmem:[%s3696_s12 + $0x1d8] sm:$0xff] %vm2254_vm2, %v2249_v13 }
 0x21f   : > { %v1589_v5 = vadd.f32 %v1588_v14, %v1364_v10 }
 0x220   : > { %v2110_v30 = vpop.f32.mrf.mxu3 }
 0x221   : > { %v2165_v19 = vadd.f32 %v2059_v6, %v1589_v5  ;;  %v2182_v47 = vadd.f32 %v2110_v30, %v1640_v12 }
 0x222   : > { %v1367_v57 = vpop.f32.mrf.mxu0 }
 0x223   : > { %v2233_v41 = vadd.f32 %v4213_v32, %v2165_v19  ;;  %v2250_v33 = vadd.f32 %v4213_v32, %v2182_v47 }
 0x224   : > { %v2062_v23 = vpop.f32.mrf.mxu2 }
 0x225   : > { %2298 = vst.msk [vmem:[%s3696_s12 + $0x158] sm:$0xff] %vm2254_vm2, %v2233_v41 }
 0x226   : > { %v1591_v38 = vpop.f32.mrf.mxu1  ;;  %2315 = vst.msk [vmem:[%s3696_s12 + $0x1e0] sm:$0xff] %vm2254_vm2, %v2250_v33 }
 0x227   : > { %v1592_v35 = vadd.f32 %v1591_v38, %v1367_v57 }
 0x228   : > { %v2113_v4 = vpop.f32.mrf.mxu3 }
 0x229   : > { %v2166_v31 = vadd.f32 %v2062_v23, %v1592_v35  ;;  %v2183_v50 = vadd.f32 %v2113_v4, %v1643_v58 }
 0x22a   : > { %v1370_v18 = vpop.f32.mrf.mxu0 }
 0x22b   : > { %v2234_v54 = vadd.f32 %v4213_v32, %v2166_v31  ;;  %v2251_v1 = vadd.f32 %v4213_v32, %v2183_v50 }
 0x22c   : > { %v2065_v34 = vpop.f32.mrf.mxu2 }
 0x22d   : > { %2299 = vst.msk [vmem:[%s3696_s12 + $0x160] sm:$0xff] %vm2254_vm2, %v2234_v54 }
 0x22e   : > { %v1594_v20 = vpop.f32.mrf.mxu1  ;;  %2316 = vst.msk [vmem:[%s3696_s12 + $0x1e8] sm:$0xff] %vm2254_vm2, %v2251_v1 }
 0x22f   : > { %v1595_v15 = vadd.f32 %v1594_v20, %v1370_v18 }
 0x230   : > { %v2116_v44 = vpop.f32.mrf.mxu3 }
 0x231   : > { %v2167_v7 = vadd.f32 %v2065_v34, %v1595_v15  ;;  %v2184_v48 = vadd.f32 %v2116_v44, %v1646_v11 }
 0x232   : > { %v1373_v17 = vpop.f32.mrf.mxu0 }
 0x233   : > { %v2235_v40 = vadd.f32 %v4213_v32, %v2167_v7  ;;  %v2252_v52 = vadd.f32 %v4213_v32, %v2184_v48 }
 0x234   : > { %v2068_v39 = vpop.f32.mrf.mxu2 }
 0x235   : > { %2300 = vst.msk [vmem:[%s3696_s12 + $0x168] sm:$0xff] %vm2254_vm2, %v2235_v40 }
 0x236   : > { %v1597_v27 = vpop.f32.mrf.mxu1  ;;  %2317 = vst.msk [vmem:[%s3696_s12 + $0x1f0] sm:$0xff] %vm2254_vm2, %v2252_v52 }
 0x237   : > { %v1598_v8 = vadd.f32 %v1597_v27, %v1373_v17 }
 0x238   : > { %v2119_v61 = vpop.f32.mrf.mxu3 }
 0x239   : > { %v2168_v16 = vadd.f32 %v2068_v39, %v1598_v8  ;;  %v2185_v56 = vadd.f32 %v2119_v61, %v1649_v60 }
 0x23a   : > { %v1376_v21 = vpop.f32.mrf.mxu0 }
 0x23b   : > { %v2236_v59 = vadd.f32 %v4213_v32, %v2168_v16  ;;  %v2253_v62 = vadd.f32 %v4213_v32, %v2185_v56 }
 0x23c   : > { %v2071_v9 = vpop.f32.mrf.mxu2 }
 0x23d   : > { %2301 = vst.msk [vmem:[%s3696_s12 + $0x170] sm:$0xff] %vm2254_vm2, %v2236_v59 }
 0x23e   : > { %v1600_v29 = vpop.f32.mrf.mxu1  ;;  %2318 = vst.msk [vmem:[%s3696_s12 + $0x1f8] sm:$0xff] %vm2254_vm2, %v2253_v62 }
 0x23f   : > { %v1601_v0 = vadd.f32 %v1600_v29, %v1376_v21 }
 0x241   : > { %v2169_v46 = vadd.f32 %v2071_v9, %v1601_v0 }
 0x243   : > { %v2237_v49 = vadd.f32 %v4213_v32, %v2169_v46 }
 0x245   : > { %2302 = vst.msk [vmem:[%s3696_s12 + $0x178] sm:$0xff] %vm2254_vm2, %v2237_v49 }
 0x246 PF: > { %s20_s28 = sadd.s32 1, %s2904_s28   ;;  %s4435_s24 = smov %s2896_s26 }
 0x247   : > { %p17_p10 = scmp.ge.s32.totalorder %s20_s28, 6   ;;  %s4436_s25 = smov %s2900_s27 }
 0x248   : > { %s4437_s26 = smov %s4440_s13  ;;  %s4438_s27 = smov %s4444_s15 }
 0x249   :  { %19 = sbr.rel (!%p17_p10) target bundleno = 8 (0x8), region = 133 }
 0x24e   :  { %2349 = vsyncpa [#allocation4], 1 }
 0x24f   :  { %2351 = vsyncpa [#allocation4 + $0x1], 1 }
 0x250   :  { %2352 = vsyncpa [#allocation6], 1 }
 0x251   :  { %2353 = vsyncpa [#allocation9], 1 }

</bundles_post_ra>
